<compile_context>
chip_gen: v7x
topology: tpu7x:2x2x1
jax: 0.10.0
libtpu: 0.0.40
codegen_flags: <defaults>
</compile_context>

<pallas_src>
import functools

import jax
import jax.numpy as jnp
from jax.experimental import pallas as pl
from jax.experimental.pallas import tpu as pltpu

n_code = 64
n_feats = 28 * 28      # 784
n_hidden = 256

_LANE = 128
CODE_PAD = ((n_code + _LANE - 1) // _LANE) * _LANE    # 64 -> 128 (lane-dense latent)


def _round_up(x, m):
    return ((x + m - 1) // m) * m


def _pick_tile(batch, tile_b):
    """Pick the batch tile: as large as requested, but keep >= 4 grid steps
    when the batch allows (>= 2 steps per TensorCore on v7x) so DMA is hidden
    behind compute, never below 128 rows, never above the 8-rounded batch."""
    b8 = _round_up(batch, 8)
    tb = min(tile_b, b8)
    while tb > 128 and -(-b8 // tb) < 4:   # cdiv(b8, tb) < 4
        tb //= 2
    return tb


def _ae_kernel(x_ref,
               w1_ref, b1_ref, w2_ref, b2_ref, w3_ref, b3_ref,
               w4_ref, b4_ref, w5_ref, b5_ref, w6_ref, b6_ref,
               o_ref):
    """Full AE forward (6 matmuls + 4 ReLUs) on one batch tile, all in VMEM."""

    def dense(h, w_ref, b_ref, relu):
        # bf16 operands feed the MXU at full rate; accumulate in f32 and keep
        # bias-add / ReLU in f32 on the VPU.
        y = jnp.dot(h.astype(jnp.bfloat16), w_ref[...],
                    preferred_element_type=jnp.float32) + b_ref[...]
        return jnp.maximum(y, 0.0) if relu else y

    h = x_ref[...]                          # [tb, 784] f32
    # ---- encoder ----
    h = dense(h, w1_ref, b1_ref, True)
    h = dense(h, w2_ref, b2_ref, True)
    code = dense(h, w3_ref, b3_ref, False)  # [tb, CODE_PAD]; cols 64.. are exactly 0
    # ---- decoder ----
    # NOTE: layers 3/4 have no nonlinearity between them and could be fused
    # into one 256x256 matmul (W34 = W3 @ W4); kept separate so the numerics
    # match the PyTorch module exactly.
    h = dense(code, w4_ref, b4_ref, True)
    h = dense(h, w5_ref, b5_ref, True)
    o_ref[...] = dense(h, w6_ref, b6_ref, False).astype(o_ref.dtype)


def prepare_params(params):
    """One-time preparation: cast weights to bf16 and pad the 64-wide latent
    dim to 128 so every tile is lane-dense.  Call ONCE and reuse the result —
    this keeps per-call HBM traffic limited to x and the output."""
    def pw(w, rows=None, cols=None):
        r = rows if rows is not None else w.shape[0]
        c = cols if cols is not None else w.shape[1]
        return jnp.pad(
            w, ((0, r - w.shape[0]), (0, c - w.shape[1]))
        ).astype(jnp.bfloat16)

    def pb(b, cols=None):
        c = cols if cols is not None else b.shape[1]
        return jnp.pad(b, ((0, 0), (0, c - b.shape[1]))).astype(jnp.float32)

    return {
        "w1": pw(params["w1"]),                "b1": pb(params["b1"]),
        "w2": pw(params["w2"]),                "b2": pb(params["b2"]),
        "w3": pw(params["w3"], cols=CODE_PAD), "b3": pb(params["b3"], cols=CODE_PAD),
        "w4": pw(params["w4"], rows=CODE_PAD), "b4": pb(params["b4"]),
        "w5": pw(params["w5"]),                "b5": pb(params["b5"]),
        "w6": pw(params["w6"]),                "b6": pb(params["b6"]),
    }


@functools.partial(jax.jit, static_argnames=("tile_b",))
def ae_forward(x, prep, tile_b=256):
    """x: [B, 784] float32 (bf16 also accepted). prep: output of prepare_params()."""
    B, F = x.shape
    assert F == n_feats

    tb = _pick_tile(B, tile_b)
    B_pad = _round_up(B, tb)
    if B_pad != B:                       # only pad rows when the batch is ragged
        x = jnp.pad(x, ((0, B_pad - B), (0, 0)))

    order = ("w1", "b1", "w2", "b2", "w3", "b3", "w4", "b4", "w5", "b5", "w6", "b6")
    args = [prep[k] for k in order]

    def resident(arr):
        # Constant index_map: whole array stays resident in VMEM across steps.
        return pl.BlockSpec(arr.shape, lambda i: (0, 0))

    out = pl.pallas_call(
        _ae_kernel,
        out_shape=jax.ShapeDtypeStruct((B_pad, n_feats), jnp.float32),
        grid_spec=pltpu.PrefetchScalarGridSpec(
            num_scalar_prefetch=0,
            grid=(B_pad // tb,),
            in_specs=[pl.BlockSpec((tb, n_feats), lambda i: (i, 0))]   # x batch tile
                     + [resident(a) for a in args],
            out_specs=pl.BlockSpec((tb, n_feats), lambda i: (i, 0)),
        ),
        compiler_params=pltpu.CompilerParams(
            dimension_semantics=("parallel",),
        ),
    )(x, *args)

    return out if B_pad == B else out[:B]


def init_params(key):
    """Deterministic init mimicking nn.Linear (uniform +-1/sqrt(fan_in)).

    Weights are stored as [in_features, out_features] (transpose of PyTorch's
    [out, in]) so the kernel computes x @ W + b directly.
    """
    dims = [
        ("w1", "b1", n_feats, n_hidden),
        ("w2", "b2", n_hidden, n_hidden),
        ("w3", "b3", n_hidden, n_code),
        ("w4", "b4", n_code, n_hidden),
        ("w5", "b5", n_hidden, n_hidden),
        ("w6", "b6", n_hidden, n_feats),
    ]
    params = {}
    for idx, (wn, bn, fan_in, fan_out) in enumerate(dims):
        kw, kb = jax.random.split(jax.random.fold_in(key, idx))
        bound = 1.0 / jnp.sqrt(jnp.float32(fan_in))
        params[wn] = jax.random.uniform(
            kw, (fan_in, fan_out), jnp.float32, -bound, bound)
        params[bn] = jax.random.uniform(
            kb, (1, fan_out), jnp.float32, -bound, bound)
    return params


def ae_forward_ref(x, params):
    """Pure-JAX reference mirroring the kernel's bf16-matmul / f32-accumulate math."""
    def dense(h, w, b, relu):
        y = jnp.dot(h.astype(jnp.bfloat16), w.astype(jnp.bfloat16),
                    preferred_element_type=jnp.float32) + b
        return jnp.maximum(y, 0.0) if relu else y

    h = dense(x, params["w1"], params["b1"], True)
    h = dense(h, params["w2"], params["b2"], True)
    code = dense(h, params["w3"], params["b3"], False)
    h = dense(code, params["w4"], params["b4"], True)
    h = dense(h, params["w5"], params["b5"], True)
    return dense(h, params["w6"], params["b6"], False)


if __name__ == "__main__":
    key = jax.random.PRNGKey(0)
    pkey, xkey = jax.random.split(key)

    params = init_params(pkey)
    prep = prepare_params(params)          # one-time pad/cast of weights

    # Main case: grid of 4 batch tiles of 128 rows (>= 2 steps per TensorCore
    # on v7x), MXU-friendly tiles, no wrapper-side pad/slice copies.
    B = 512
    x = jax.random.uniform(xkey, (B, n_feats), jnp.float32)

    out = jax.block_until_ready(ae_forward(x, prep))
    ref = ae_forward_ref(x, params)
    assert out.shape == (B, n_feats)
    assert jnp.max(jnp.abs(out - ref)) < 1e-2, "mismatch vs reference"

    # Small / ragged batch path (row padding + single grid step).
    xs = x[:10]
    outs = jax.block_until_ready(ae_forward(xs, prep))
    refs = ae_forward_ref(xs, params)
    assert outs.shape == (10, n_feats)
    assert jnp.max(jnp.abs(outs - refs)) < 1e-2, "mismatch vs reference (small batch)"

    print("KERNEL_OK")
</pallas_src>

<mosaic_0001>
module attributes {stable_mosaic.version = 11 : i64} {
  func.func @_ae_kernel(%arg0: i32, %arg1: memref<128x784xf32, #tpu.memory_space<vmem>>, %arg2: memref<784x256xbf16, #tpu.memory_space<vmem>>, %arg3: memref<1x256xf32, #tpu.memory_space<vmem>>, %arg4: memref<256x256xbf16, #tpu.memory_space<vmem>>, %arg5: memref<1x256xf32, #tpu.memory_space<vmem>>, %arg6: memref<256x128xbf16, #tpu.memory_space<vmem>>, %arg7: memref<1x128xf32, #tpu.memory_space<vmem>>, %arg8: memref<128x256xbf16, #tpu.memory_space<vmem>>, %arg9: memref<1x256xf32, #tpu.memory_space<vmem>>, %arg10: memref<256x256xbf16, #tpu.memory_space<vmem>>, %arg11: memref<1x256xf32, #tpu.memory_space<vmem>>, %arg12: memref<256x784xbf16, #tpu.memory_space<vmem>>, %arg13: memref<1x784xf32, #tpu.memory_space<vmem>>, %arg14: memref<128x784xf32, #tpu.memory_space<vmem>>) attributes {dimension_semantics = [#tpu.dimension_semantics<parallel>], iteration_bounds = array<i64: 4>, scalar_prefetch = 0 : i64, scratch_operands = 0 : i64, tpu.core_type = #tpu.core_type<tc>, window_params = [{transform_indices = @transform_0, window_bounds = array<i64: 128, 784>}, {pipeline_mode = #tpu.pipeline_mode<synchronous>, transform_indices = @transform_1, window_bounds = array<i64: 784, 256>}, {pipeline_mode = #tpu.pipeline_mode<synchronous>, transform_indices = @transform_2, window_bounds = array<i64: 1, 256>}, {pipeline_mode = #tpu.pipeline_mode<synchronous>, transform_indices = @transform_3, window_bounds = array<i64: 256, 256>}, {pipeline_mode = #tpu.pipeline_mode<synchronous>, transform_indices = @transform_4, window_bounds = array<i64: 1, 256>}, {pipeline_mode = #tpu.pipeline_mode<synchronous>, transform_indices = @transform_5, window_bounds = array<i64: 256, 128>}, {pipeline_mode = #tpu.pipeline_mode<synchronous>, transform_indices = @transform_6, window_bounds = array<i64: 1, 128>}, {pipeline_mode = #tpu.pipeline_mode<synchronous>, transform_indices = @transform_7, window_bounds = array<i64: 128, 256>}, {pipeline_mode = #tpu.pipeline_mode<synchronous>, transform_indices = @transform_8, window_bounds = array<i64: 1, 256>}, {pipeline_mode = #tpu.pipeline_mode<synchronous>, transform_indices = @transform_9, window_bounds = array<i64: 256, 256>}, {pipeline_mode = #tpu.pipeline_mode<synchronous>, transform_indices = @transform_10, window_bounds = array<i64: 1, 256>}, {pipeline_mode = #tpu.pipeline_mode<synchronous>, transform_indices = @transform_11, window_bounds = array<i64: 256, 784>}, {pipeline_mode = #tpu.pipeline_mode<synchronous>, transform_indices = @transform_12, window_bounds = array<i64: 1, 784>}, {transform_indices = @transform_13, window_bounds = array<i64: 128, 784>}]} {
    %c0 = arith.constant 0 : index
    %c0_0 = arith.constant 0 : index
    %0 = vector.load %arg1[%c0, %c0_0] : memref<128x784xf32, #tpu.memory_space<vmem>>, vector<128x784xf32>
    %1 = arith.truncf %0 : vector<128x784xf32> to vector<128x784xbf16>
    %c0_1 = arith.constant 0 : index
    %c0_2 = arith.constant 0 : index
    %2 = vector.load %arg2[%c0_1, %c0_2] : memref<784x256xbf16, #tpu.memory_space<vmem>>, vector<784x256xbf16>
    %cst = arith.constant dense<0.000000e+00> : vector<128x256xf32>
    %3 = tpu.matmul %1, %2, %cst {dimension_numbers = #tpu.dot_dimension_numbers<[1], [0], [0], [1], [0, 0, 1, 1], [], []>} : vector<128x784xbf16>, vector<784x256xbf16>, vector<128x256xf32> -> vector<128x256xf32>
    %c0_3 = arith.constant 0 : index
    %c0_4 = arith.constant 0 : index
    %4 = vector.load %arg3[%c0_3, %c0_4] : memref<1x256xf32, #tpu.memory_space<vmem>>, vector<1x256xf32>
    %5 = vector.broadcast %4 : vector<1x256xf32> to vector<128x256xf32>
    %6 = arith.addf %3, %5 : vector<128x256xf32>
    %cst_5 = arith.constant 0.000000e+00 : f32
    %7 = vector.broadcast %cst_5 : f32 to vector<128x256xf32>
    %8 = arith.maximumf %6, %7 : vector<128x256xf32>
    %9 = arith.truncf %8 : vector<128x256xf32> to vector<128x256xbf16>
    %c0_6 = arith.constant 0 : index
    %c0_7 = arith.constant 0 : index
    %10 = vector.load %arg4[%c0_6, %c0_7] : memref<256x256xbf16, #tpu.memory_space<vmem>>, vector<256x256xbf16>
    %cst_8 = arith.constant dense<0.000000e+00> : vector<128x256xf32>
    %11 = tpu.matmul %9, %10, %cst_8 {dimension_numbers = #tpu.dot_dimension_numbers<[1], [0], [0], [1], [0, 0, 1, 1], [], []>} : vector<128x256xbf16>, vector<256x256xbf16>, vector<128x256xf32> -> vector<128x256xf32>
    %c0_9 = arith.constant 0 : index
    %c0_10 = arith.constant 0 : index
    %12 = vector.load %arg5[%c0_9, %c0_10] : memref<1x256xf32, #tpu.memory_space<vmem>>, vector<1x256xf32>
    %13 = vector.broadcast %12 : vector<1x256xf32> to vector<128x256xf32>
    %14 = arith.addf %11, %13 : vector<128x256xf32>
    %cst_11 = arith.constant 0.000000e+00 : f32
    %15 = vector.broadcast %cst_11 : f32 to vector<128x256xf32>
    %16 = arith.maximumf %14, %15 : vector<128x256xf32>
    %17 = arith.truncf %16 : vector<128x256xf32> to vector<128x256xbf16>
    %c0_12 = arith.constant 0 : index
    %c0_13 = arith.constant 0 : index
    %18 = vector.load %arg6[%c0_12, %c0_13] : memref<256x128xbf16, #tpu.memory_space<vmem>>, vector<256x128xbf16>
    %cst_14 = arith.constant dense<0.000000e+00> : vector<128x128xf32>
    %19 = tpu.matmul %17, %18, %cst_14 {dimension_numbers = #tpu.dot_dimension_numbers<[1], [0], [0], [1], [0, 0, 1, 1], [], []>} : vector<128x256xbf16>, vector<256x128xbf16>, vector<128x128xf32> -> vector<128x128xf32>
    %c0_15 = arith.constant 0 : index
    %c0_16 = arith.constant 0 : index
    %20 = vector.load %arg7[%c0_15, %c0_16] : memref<1x128xf32, #tpu.memory_space<vmem>>, vector<1x128xf32>
    %21 = vector.broadcast %20 : vector<1x128xf32> to vector<128x128xf32>
    %22 = arith.addf %19, %21 : vector<128x128xf32>
    %23 = arith.truncf %22 : vector<128x128xf32> to vector<128x128xbf16>
    %c0_17 = arith.constant 0 : index
    %c0_18 = arith.constant 0 : index
    %24 = vector.load %arg8[%c0_17, %c0_18] : memref<128x256xbf16, #tpu.memory_space<vmem>>, vector<128x256xbf16>
    %cst_19 = arith.constant dense<0.000000e+00> : vector<128x256xf32>
    %25 = tpu.matmul %23, %24, %cst_19 {dimension_numbers = #tpu.dot_dimension_numbers<[1], [0], [0], [1], [0, 0, 1, 1], [], []>} : vector<128x128xbf16>, vector<128x256xbf16>, vector<128x256xf32> -> vector<128x256xf32>
    %c0_20 = arith.constant 0 : index
    %c0_21 = arith.constant 0 : index
    %26 = vector.load %arg9[%c0_20, %c0_21] : memref<1x256xf32, #tpu.memory_space<vmem>>, vector<1x256xf32>
    %27 = vector.broadcast %26 : vector<1x256xf32> to vector<128x256xf32>
    %28 = arith.addf %25, %27 : vector<128x256xf32>
    %cst_22 = arith.constant 0.000000e+00 : f32
    %29 = vector.broadcast %cst_22 : f32 to vector<128x256xf32>
    %30 = arith.maximumf %28, %29 : vector<128x256xf32>
    %31 = arith.truncf %30 : vector<128x256xf32> to vector<128x256xbf16>
    %c0_23 = arith.constant 0 : index
    %c0_24 = arith.constant 0 : index
    %32 = vector.load %arg10[%c0_23, %c0_24] : memref<256x256xbf16, #tpu.memory_space<vmem>>, vector<256x256xbf16>
    %cst_25 = arith.constant dense<0.000000e+00> : vector<128x256xf32>
    %33 = tpu.matmul %31, %32, %cst_25 {dimension_numbers = #tpu.dot_dimension_numbers<[1], [0], [0], [1], [0, 0, 1, 1], [], []>} : vector<128x256xbf16>, vector<256x256xbf16>, vector<128x256xf32> -> vector<128x256xf32>
    %c0_26 = arith.constant 0 : index
    %c0_27 = arith.constant 0 : index
    %34 = vector.load %arg11[%c0_26, %c0_27] : memref<1x256xf32, #tpu.memory_space<vmem>>, vector<1x256xf32>
    %35 = vector.broadcast %34 : vector<1x256xf32> to vector<128x256xf32>
    %36 = arith.addf %33, %35 : vector<128x256xf32>
    %cst_28 = arith.constant 0.000000e+00 : f32
    %37 = vector.broadcast %cst_28 : f32 to vector<128x256xf32>
    %38 = arith.maximumf %36, %37 : vector<128x256xf32>
    %39 = arith.truncf %38 : vector<128x256xf32> to vector<128x256xbf16>
    %c0_29 = arith.constant 0 : index
    %c0_30 = arith.constant 0 : index
    %40 = vector.load %arg12[%c0_29, %c0_30] : memref<256x784xbf16, #tpu.memory_space<vmem>>, vector<256x784xbf16>
    %cst_31 = arith.constant dense<0.000000e+00> : vector<128x784xf32>
    %41 = tpu.matmul %39, %40, %cst_31 {dimension_numbers = #tpu.dot_dimension_numbers<[1], [0], [0], [1], [0, 0, 1, 1], [], []>} : vector<128x256xbf16>, vector<256x784xbf16>, vector<128x784xf32> -> vector<128x784xf32>
    %c0_32 = arith.constant 0 : index
    %c0_33 = arith.constant 0 : index
    %42 = vector.load %arg13[%c0_32, %c0_33] : memref<1x784xf32, #tpu.memory_space<vmem>>, vector<1x784xf32>
    %43 = vector.broadcast %42 : vector<1x784xf32> to vector<128x784xf32>
    %44 = arith.addf %41, %43 : vector<128x784xf32>
    %c0_34 = arith.constant 0 : index
    %c0_35 = arith.constant 0 : index
    %45 = vector.load %arg14[%c0_34, %c0_35] : memref<128x784xf32, #tpu.memory_space<vmem>>, vector<128x784xf32>
    tpu.vector_store %arg14[%c0_34, %c0_35], %44 {strides = array<i32>} : memref<128x784xf32, #tpu.memory_space<vmem>>, vector<128x784xf32>,
    return
  }
  func.func @transform_0(%arg0: i32) -> (i32, i32) {
    %c0_i32 = arith.constant 0 : i32
    %c0_i32_0 = arith.constant 0 : i32
    return %arg0, %c0_i32 : i32, i32
  }
  func.func @transform_1(%arg0: i32) -> (i32, i32) {
    %c0_i32 = arith.constant 0 : i32
    %c0_i32_0 = arith.constant 0 : i32
    %c0_i32_1 = arith.constant 0 : i32
    return %c0_i32, %c0_i32_0 : i32, i32
  }
  func.func @transform_2(%arg0: i32) -> (i32, i32) {
    %c0_i32 = arith.constant 0 : i32
    %c0_i32_0 = arith.constant 0 : i32
    %c0_i32_1 = arith.constant 0 : i32
    return %c0_i32, %c0_i32_0 : i32, i32
  }
  func.func @transform_3(%arg0: i32) -> (i32, i32) {
    %c0_i32 = arith.constant 0 : i32
    %c0_i32_0 = arith.constant 0 : i32
    %c0_i32_1 = arith.constant 0 : i32
    return %c0_i32, %c0_i32_0 : i32, i32
  }
  func.func @transform_4(%arg0: i32) -> (i32, i32) {
    %c0_i32 = arith.constant 0 : i32
    %c0_i32_0 = arith.constant 0 : i32
    %c0_i32_1 = arith.constant 0 : i32
    return %c0_i32, %c0_i32_0 : i32, i32
  }
  func.func @transform_5(%arg0: i32) -> (i32, i32) {
    %c0_i32 = arith.constant 0 : i32
    %c0_i32_0 = arith.constant 0 : i32
    %c0_i32_1 = arith.constant 0 : i32
    return %c0_i32, %c0_i32_0 : i32, i32
  }
  func.func @transform_6(%arg0: i32) -> (i32, i32) {
    %c0_i32 = arith.constant 0 : i32
    %c0_i32_0 = arith.constant 0 : i32
    %c0_i32_1 = arith.constant 0 : i32
    return %c0_i32, %c0_i32_0 : i32, i32
  }
  func.func @transform_7(%arg0: i32) -> (i32, i32) {
    %c0_i32 = arith.constant 0 : i32
    %c0_i32_0 = arith.constant 0 : i32
    %c0_i32_1 = arith.constant 0 : i32
    return %c0_i32, %c0_i32_0 : i32, i32
  }
  func.func @transform_8(%arg0: i32) -> (i32, i32) {
    %c0_i32 = arith.constant 0 : i32
    %c0_i32_0 = arith.constant 0 : i32
    %c0_i32_1 = arith.constant 0 : i32
    return %c0_i32, %c0_i32_0 : i32, i32
  }
  func.func @transform_9(%arg0: i32) -> (i32, i32) {
    %c0_i32 = arith.constant 0 : i32
    %c0_i32_0 = arith.constant 0 : i32
    %c0_i32_1 = arith.constant 0 : i32
    return %c0_i32, %c0_i32_0 : i32, i32
  }
  func.func @transform_10(%arg0: i32) -> (i32, i32) {
    %c0_i32 = arith.constant 0 : i32
    %c0_i32_0 = arith.constant 0 : i32
    %c0_i32_1 = arith.constant 0 : i32
    return %c0_i32, %c0_i32_0 : i32, i32
  }
  func.func @transform_11(%arg0: i32) -> (i32, i32) {
    %c0_i32 = arith.constant 0 : i32
    %c0_i32_0 = arith.constant 0 : i32
    %c0_i32_1 = arith.constant 0 : i32
    return %c0_i32, %c0_i32_0 : i32, i32
  }
  func.func @transform_12(%arg0: i32) -> (i32, i32) {
    %c0_i32 = arith.constant 0 : i32
    %c0_i32_0 = arith.constant 0 : i32
    %c0_i32_1 = arith.constant 0 : i32
    return %c0_i32, %c0_i32_0 : i32, i32
  }
  func.func @transform_13(%arg0: i32) -> (i32, i32) {
    %c0_i32 = arith.constant 0 : i32
    %c0_i32_0 = arith.constant 0 : i32
    return %arg0, %c0_i32 : i32, i32
  }
}

</mosaic_0001>

<bundles_post_ra>
// kernel: ae_forward.1
= control target key start
LH: loop header
LB: loop body
LE: loop exit
PB: predicated region body
PF: predicated region fallthrough
CT: control target
= control target key end

     0   :  { %s5443_s25 = smov 0   ;;  %s7075_s0 = inlined_call_operand.vmem [shape: f32[512,784], index: 0, kind: input, shape index: {}]   ;;  %s7076_s1 = inlined_call_operand.vmem [shape: bf16[784,256], index: 1, kind: input, shape index: {}]   ;;  %s7077_s2 = inlined_call_operand.vmem [shape: f32[1,256], index: 2, kind: input, shape index: {}]   ;;  %s7078_s3 = inlined_call_operand.vmem [shape: bf16[256,256], index: 3, kind: input, shape index: {}]   ;;  %s7079_s4 = inlined_call_operand.vmem [shape: f32[1,256], index: 4, kind: input, shape index: {}]   ;;  %s7080_s5 = inlined_call_operand.vmem [shape: bf16[256,128], index: 5, kind: input, shape index: {}]   ;;  %s7081_s6 = inlined_call_operand.vmem [shape: f32[1,128], index: 6, kind: input, shape index: {}]   ;;  %s7082_s7 = inlined_call_operand.vmem [shape: bf16[128,256], index: 7, kind: input, shape index: {}]   ;;  %s7083_s8 = inlined_call_operand.vmem [shape: f32[1,256], index: 8, kind: input, shape index: {}]   ;;  %s7084_s9 = inlined_call_operand.vmem [shape: bf16[256,256], index: 9, kind: input, shape index: {}]   ;;  %s7085_s10 = inlined_call_operand.vmem [shape: f32[1,256], index: 10, kind: input, shape index: {}]   ;;  %s7086_s11 = inlined_call_operand.vmem [shape: bf16[256,784], index: 11, kind: input, shape index: {}]   ;;  %s7087_s12 = inlined_call_operand.vmem [shape: f32[1,784], index: 12, kind: input, shape index: {}]   ;;  %s7088_s13 = inlined_call_operand.vmem [shape: f32[512,784], index: 13, kind: output, shape index: {}]  }
   0x1 LB: > { %s4329_s26 = sadd.s32 4294967295, %s5370_s25   ;;  %p4333_p0 = scmp.ge.s32.totalorder %s5370_s25, 1  ;;  %s5370_s25 = sphi %s5443_s25, %s23_s25  }
   0x2   : > { %p389_p1 = scmp.lt.s32.totalorder %s5370_s25, 5 }
   0x4   : > { %p390_p2 = pnand %p4333_p0, %p389_p1 }
   0x5   : > { %v4921_v0 = vld [vmem:[%s7076_s1 + $0x4] ss:$8 sps:$4 sm:$0xff] (!%p390_p2)   ;;  %v4923_v1 = vld [vmem:[%s7076_s1] ss:$8 sps:$4 sm:$0xff] (!%p390_p2)   ;;  %v4924_v2 = vld [vmem:[%s7076_s1 + $0x14] ss:$8 sps:$4 sm:$0xff] (!%p390_p2)  }
   0x6   : > { %393 = sbr.rel (%p390_p2) target bundleno = 1711 (0x6af), region = 72  ;;  %1243 = vmatprep.subr.bf16.mxu0 (!%p390_p2), %v4921_v0  ;;  %v4926_v3 = vld [vmem:[%s7076_s1 + $0x10] ss:$8 sps:$4 sm:$0xff] (!%p390_p2)   ;;  %s4334_s18 = sshll.u32 (!%p390_p2), %s4329_s26, 4  ;;  %v4927_v4 = vld [vmem:[%s7076_s1 + $0x24] ss:$8 sps:$4 sm:$0xff] (!%p390_p2)  }
   0x7   : > { %1244 = vmatpush1.bf16.msra.mxu0 (!%p390_p2), %v4923_v1  ;;  %p436_p3 = scmp.lt.s32.totalorder (!%p390_p2), %s4334_s18, 63  ;;  %v4929_v5 = vld [vmem:[%s7076_s1 + $0x20] ss:$8 sps:$4 sm:$0xff] (!%p390_p2)   ;;  %v4930_v6 = vld [vmem:[%s7076_s1 + $0x34] ss:$8 sps:$4 sm:$0xff] (!%p390_p2)   ;;  %vm1218_vm0 = vcmask (!%p390_p2), 130048  }
   0x8   : > { %1245 = vmatprep.subr.bf16.mxu0 (!%p390_p2), %v4924_v2  ;;  %v4932_v7 = vld [vmem:[%s7076_s1 + $0x30] ss:$8 sps:$4 sm:$0xff] (!%p390_p2)   ;;  %v4933_v8 = vld [vmem:[%s7076_s1 + $0x44] ss:$8 sps:$4 sm:$0xff] (!%p390_p2)   ;;  %v4935_v9 = vld [vmem:[%s7076_s1 + $0x40] ss:$8 sps:$4 sm:$0xff] (!%p390_p2)  }
   0x9   : > { %v4936_v10 = vld [vmem:[%s7076_s1 + $0x54] ss:$8 sps:$4 sm:$0xff] (!%p390_p2)   ;;  %v4938_v11 = vld [vmem:[%s7076_s1 + $0x50] ss:$8 sps:$4 sm:$0xff] (!%p390_p2)   ;;  %v4939_v12 = vld [vmem:[%s7076_s1 + $0x64] ss:$8 sps:$4 sm:$0xff] (!%p390_p2)  }
   0xa   : > { %v4941_v16 = vld [vmem:[%s7076_s1 + $0x60] ss:$8 sps:$4 sm:$0xff] (!%p390_p2)   ;;  %v4942_v17 = vld [vmem:[%s7076_s1 + $0x74] ss:$8 sps:$4 sm:$0xff] (!%p390_p2)   ;;  %v4944_v18 = vld [vmem:[%s7076_s1 + $0x70] ss:$8 sps:$4 sm:$0xff] (!%p390_p2)  }
   0xb   : > { %1246 = vmatpush1.bf16.msra.mxu0 (!%p390_p2), %v4926_v3  ;;  %v4945_v19 = vld [vmem:[%s7076_s1 + $0x84] ss:$8 sps:$4 sm:$0xff] (!%p390_p2)   ;;  %v4947_v20 = vld [vmem:[%s7076_s1 + $0x80] ss:$8 sps:$4 sm:$0xff] (!%p390_p2)   ;;  %v4948_v21 = vld [vmem:[%s7076_s1 + $0x94] ss:$8 sps:$4 sm:$0xff] (!%p390_p2)  }
   0xc   : > { %1247 = vmatprep.subr.bf16.mxu0 (!%p390_p2), %v4927_v4  ;;  %v4950_v22 = vld [vmem:[%s7076_s1 + $0x90] ss:$8 sps:$4 sm:$0xff] (!%p390_p2)   ;;  %v4951_v23 = vld [vmem:[%s7076_s1 + $0xa4] ss:$8 sps:$4 sm:$0xff] (!%p390_p2)   ;;  %v4953_v24 = vld [vmem:[%s7076_s1 + $0xa0] ss:$8 sps:$4 sm:$0xff] (!%p390_p2)  }
   0xd   : > { %s7090_s18 = smov (!%p436_p3, %s4334_s18), 63  ;;  %v4954_v25 = vld [vmem:[%s7076_s1 + $0xb4] ss:$8 sps:$4 sm:$0xff]   ;;  %v4956_v26 = vld [vmem:[%s7076_s1 + $0xb0] ss:$8 sps:$4 sm:$0xff]  }
   0xe   : > { %s4911_s30 = smul.u32 56, %s7090_s18  ;;  %v4957_v27 = vld [vmem:[%s7076_s1 + $0xc4] ss:$8 sps:$4 sm:$0xff]   ;;  %v4959_v28 = vld [vmem:[%s7076_s1 + $0xc0] ss:$8 sps:$4 sm:$0xff]  }
   0xf   : > { %1248 = vmatpush1.bf16.msra.mxu0 %v4929_v5  ;;  %v4960_v29 = vld [vmem:[%s7076_s1 + $0xd4] ss:$8 sps:$4 sm:$0xff]   ;;  %v4962_v30 = vld [vmem:[%s7076_s1 + $0xd0] ss:$8 sps:$4 sm:$0xff]   ;;  %v4963_v31 = vld [vmem:[%s7076_s1 + $0xe4] ss:$8 sps:$4 sm:$0xff]  }
  0x10   : > { %1249 = vmatprep.subr.bf16.mxu0 %v4930_v6  ;;  %s5492_s21 = scalar_lea.vmem %s7075_s0, %s4911_s30  ;;  %v4965_v32 = vld [vmem:[%s7076_s1 + $0xe0] ss:$8 sps:$4 sm:$0xff]   ;;  %v4966_v33 = vld [vmem:[%s7076_s1 + $0xf4] ss:$8 sps:$4 sm:$0xff]   ;;  %v4968_v34 = vld [vmem:[%s7076_s1 + $0xf0] ss:$8 sps:$4 sm:$0xff]   ;;  %s6818_s28 = scalar_lea.vmem %s7088_s13, %s4911_s30 }
  0x11   : > { %v451_v13 = vld [vmem:[%s5492_s21 + $0x8] sm:$0xff]  ;;  %v458_v14 = vld [vmem:[%s5492_s21 + $0x40] sm:$0xff]  ;;  %v457_v36 = vld [vmem:[%s5492_s21 + $0x38] sm:$0xff] }
  0x12   : > { %v563_v15 = vpack.c.bf16 %v458_v14, %v451_v13  ;;  %v450_v35 = vld [vmem:[%s5492_s21] sm:$0xff]  ;;  %v465_v38 = vld [vmem:[%s5492_s21 + $0x78] sm:$0xff]  ;;  %v472_v39 = vld [vmem:[%s5492_s21 + $0xb0] sm:$0xff] }
  0x13   : > { %1250 = vmatpush1.bf16.msra.mxu0 %v4932_v7  ;;  %v4971_v37 = vld [vmem:[%s7076_s1 + $0x104] ss:$8 sps:$4 sm:$0xff]   ;;  %v562_v40 = vpack.c.bf16 %v457_v36, %v450_v35  ;;  %v4969_v41 = vld [vmem:[%s7076_s1 + $0x100] ss:$8 sps:$4 sm:$0xff]   ;;  %v570_v42 = vpack.c.bf16 %v472_v39, %v465_v38  ;;  %v4974_v43 = vld [vmem:[%s7076_s1 + $0x114] ss:$8 sps:$4 sm:$0xff]  }
  0x14   : > { %1251 = vmatprep.subr.bf16.mxu0 %v4933_v8  ;;  %1275 = vmatprep.mubr.bf16.mxu0 %v563_v15  ;;  %v4972_v44 = vld [vmem:[%s7076_s1 + $0x110] ss:$8 sps:$4 sm:$0xff]   ;;  %v471_v46 = vld [vmem:[%s5492_s21 + $0xa8] sm:$0xff]  ;;  %v486_v49 = vld [vmem:[%s5492_s21 + $0x120] sm:$0xff] }
  0x15   : > { %v464_v45 = vld [vmem:[%s5492_s21 + $0x70] sm:$0xff]  ;;  %v4977_v47 = vld [vmem:[%s7076_s1 + $0x124] ss:$8 sps:$4 sm:$0xff]   ;;  %v4975_v51 = vld [vmem:[%s7076_s1 + $0x120] ss:$8 sps:$4 sm:$0xff]  }
  0x16   : > { %v479_v48 = vld [vmem:[%s5492_s21 + $0xe8] sm:$0xff]  ;;  %v569_v50 = vpack.c.bf16 %v471_v46, %v464_v45  ;;  %v4980_v53 = vld [vmem:[%s7076_s1 + $0x134] ss:$8 sps:$4 sm:$0xff]   ;;  %v4978_v54 = vld [vmem:[%s7076_s1 + $0x130] ss:$8 sps:$4 sm:$0xff]  }
  0x17   : > { %1252 = vmatpush1.bf16.msra.mxu0 %v4935_v9  ;;  %v577_v52 = vpack.c.bf16 %v486_v49, %v479_v48  ;;  %v478_v55 = vld [vmem:[%s5492_s21 + $0xe0] sm:$0xff]  ;;  %v485_v56 = vld [vmem:[%s5492_s21 + $0x118] sm:$0xff]  ;;  %v500_v59 = vld [vmem:[%s5492_s21 + $0x190] sm:$0xff] }
  0x18   : > { %1253 = vmatprep.subr.bf16.mxu0 %v4936_v10  ;;  %v4983_v57 = vld [vmem:[%s7076_s1 + $0x144] ss:$8 sps:$4 sm:$0xff]   ;;  %v493_v58 = vld [vmem:[%s5492_s21 + $0x158] sm:$0xff]  ;;  %v576_v60 = vpack.c.bf16 %v485_v56, %v478_v55  ;;  %v4981_v61 = vld [vmem:[%s7076_s1 + $0x140] ss:$8 sps:$4 sm:$0xff]  }
  0x19   : > { %v584_v62 = vpack.c.bf16 %v500_v59, %v493_v58  ;;  %v4986_v63 = vld [vmem:[%s7076_s1 + $0x154] ss:$8 sps:$4 sm:$0xff]   ;;  %v4984_v0 = vld [vmem:[%s7076_s1 + $0x150] ss:$8 sps:$4 sm:$0xff]   ;;  %v499_v2 = vld [vmem:[%s5492_s21 + $0x188] sm:$0xff] }
  0x1a   : > { %v492_v1 = vld [vmem:[%s5492_s21 + $0x150] sm:$0xff]  ;;  %v4989_v3 = vld [vmem:[%s7076_s1 + $0x164] ss:$8 sps:$4 sm:$0xff]   ;;  %v4987_v7 = vld [vmem:[%s7076_s1 + $0x160] ss:$8 sps:$4 sm:$0xff]  }
  0x1b   : > { %1254 = vmatpush1.bf16.msra.mxu0 %v4938_v11  ;;  %v507_v4 = vld [vmem:[%s5492_s21 + $0x1c8] sm:$0xff]  ;;  %v514_v5 = vld [vmem:[%s5492_s21 + $0x200] sm:$0xff]  ;;  %v583_v6 = vpack.c.bf16 %v499_v2, %v492_v1  ;;  %v4992_v9 = vld [vmem:[%s7076_s1 + $0x174] ss:$8 sps:$4 sm:$0xff]  }
  0x1c   : > { %1255 = vmatprep.subr.bf16.mxu0 %v4939_v12  ;;  %v591_v8 = vpack.c.bf16 %v514_v5, %v507_v4  ;;  %v4990_v10 = vld [vmem:[%s7076_s1 + $0x170] ss:$8 sps:$4 sm:$0xff]   ;;  %v506_v11 = vld [vmem:[%s5492_s21 + $0x1c0] sm:$0xff]  ;;  %v5010_v38 = vld [vmem:[%s7076_s1 + $0x1d4] ss:$8 sps:$4 sm:$0xff]  }
  0x1d   : > { %v513_v12 = vld [vmem:[%s5492_s21 + $0x1f8] sm:$0xff]  ;;  %v4995_v13 = vld [vmem:[%s7076_s1 + $0x184] ss:$8 sps:$4 sm:$0xff]   ;;  %v528_v15 = vld [vmem:[%s5492_s21 + $0x270] sm:$0xff] }
  0x1e   : > { %v521_v14 = vld [vmem:[%s5492_s21 + $0x238] sm:$0xff]  ;;  %v556_v35 = vld [vmem:[%s5492_s21 + $0x350] sm:$0xff]  ;;  %v5005_v36 = vld [vmem:[%s7076_s1 + $0x1c0] ss:$8 sps:$4 sm:$0xff]  }
  0x1f   : > { %1256 = vmatpush1.bf16.msra.mxu0 %v4941_v16  ;;  %v4993_v16 = vld [vmem:[%s7076_s1 + $0x180] ss:$8 sps:$4 sm:$0xff]   ;;  %v460_v45 = vld [vmem:[%s5492_s21 + $0x50] sm:$0xff] }
  0x20   : > { %1257 = vmatprep.subr.bf16.mxu0 %v4942_v17  ;;  %v590_v17 = vpack.c.bf16 %v513_v12, %v506_v11  ;;  %v5011_v46 = vld [vmem:[%s7076_s1 + $0x1e0] ss:$8 sps:$4 sm:$0xff]   ;;  %v5016_v48 = vld [vmem:[%s7076_s1 + $0x1f4] ss:$8 sps:$4 sm:$0xff]  }
  0x21   : > { %v474_v55 = vld [vmem:[%s5492_s21 + $0xc0] sm:$0xff]  ;;  %v5022_v58 = vld [vmem:[%s7076_s1 + $0x214] ss:$8 sps:$4 sm:$0xff]  }
  0x22   : > { %v5017_v56 = vld [vmem:[%s7076_s1 + $0x200] ss:$8 sps:$4 sm:$0xff]   ;;  %v488_v1 = vld [vmem:[%s5492_s21 + $0x130] sm:$0xff] }
  0x23   : > { %1258 = vmatpush1.bf16.msra.mxu0 %v4944_v18  ;;  %v4998_v18 = vld [vmem:[%s7076_s1 + $0x194] ss:$8 sps:$4 sm:$0xff]   ;;  %v5023_v2 = vld [vmem:[%s7076_s1 + $0x220] ss:$8 sps:$4 sm:$0xff]  }
  0x24   : > { %1259 = vmatprep.subr.bf16.mxu0 %v4945_v19  ;;  %v598_v19 = vpack.c.bf16 %v528_v15, %v521_v14  ;;  %v5028_v4 = vld [vmem:[%s7076_s1 + $0x234] ss:$8 sps:$4 sm:$0xff]   ;;  %v502_v11 = vld [vmem:[%s5492_s21 + $0x1a0] sm:$0xff] }
  0x25   : > { %v5029_v12 = vld [vmem:[%s7076_s1 + $0x240] ss:$8 sps:$4 sm:$0xff]   ;;  %v5034_v14 = vld [vmem:[%s7076_s1 + $0x254] ss:$8 sps:$4 sm:$0xff]  }
  0x27   : > { %1260 = vmatpush1.bf16.msra.mxu0 %v4947_v20  ;;  %v4996_v20 = vld [vmem:[%s7076_s1 + $0x190] ss:$8 sps:$4 sm:$0xff]  }
  0x28   : > { %1261 = vmatprep.subr.bf16.mxu0 %v4948_v21  ;;  %v520_v21 = vld [vmem:[%s5492_s21 + $0x230] sm:$0xff] }
  0x2b   : > { %1262 = vmatpush1.bf16.msra.mxu0 %v4950_v22  ;;  %v527_v22 = vld [vmem:[%s5492_s21 + $0x268] sm:$0xff] }
  0x2c   : > { %1263 = vmatprep.subr.bf16.mxu0 %v4951_v23  ;;  %v5001_v23 = vld [vmem:[%s7076_s1 + $0x1a4] ss:$8 sps:$4 sm:$0xff]  }
  0x2f   : > { %1264 = vmatpush1.bf16.msra.mxu0 %v4953_v24  ;;  %v535_v24 = vld [vmem:[%s5492_s21 + $0x2a8] sm:$0xff] }
  0x30   : > { %1265 = vmatprep.subr.bf16.mxu0 %v4954_v25  ;;  %v542_v25 = vld [vmem:[%s5492_s21 + $0x2e0] sm:$0xff] }
  0x33   : > { %1266 = vmatpush1.bf16.msra.mxu0 %v4956_v26  ;;  %v4999_v26 = vld [vmem:[%s7076_s1 + $0x1a0] ss:$8 sps:$4 sm:$0xff]  }
  0x34   : > { %1267 = vmatprep.subr.bf16.mxu0 %v4957_v27  ;;  %v597_v27 = vpack.c.bf16 %v527_v22, %v520_v21  ;;  %v516_v21 = vld [vmem:[%s5492_s21 + $0x210] sm:$0xff]  ;;  %v5035_v22 = vld [vmem:[%s7076_s1 + $0x260] ss:$8 sps:$4 sm:$0xff]  }
  0x37   : > { %1268 = vmatpush1.bf16.msra.mxu0 %v4959_v28  ;;  %v5004_v28 = vld [vmem:[%s7076_s1 + $0x1b4] ss:$8 sps:$4 sm:$0xff]  }
  0x38   : > { %1269 = vmatprep.subr.bf16.mxu0 %v4960_v29  ;;  %v605_v29 = vpack.c.bf16 %v542_v25, %v535_v24  ;;  %v5040_v24 = vld [vmem:[%s7076_s1 + $0x274] ss:$8 sps:$4 sm:$0xff]  }
  0x3b   : > { %1270 = vmatpush1.bf16.msra.mxu0 %v4962_v30  ;;  %v5002_v30 = vld [vmem:[%s7076_s1 + $0x1b0] ss:$8 sps:$4 sm:$0xff]  }
  0x3c   : > { %1271 = vmatprep.subr.bf16.mxu0 %v4963_v31  ;;  %v534_v31 = vld [vmem:[%s5492_s21 + $0x2a0] sm:$0xff] }
  0x3f   : > { %1272 = vmatpush1.bf16.msra.mxu0 %v4965_v32  ;;  %v541_v32 = vld [vmem:[%s5492_s21 + $0x2d8] sm:$0xff] }
  0x40   : > { %1273 = vmatprep.subr.bf16.mxu0 %v4966_v33  ;;  %v5007_v33 = vld [vmem:[%s7076_s1 + $0x1c4] ss:$8 sps:$4 sm:$0xff]  }
  0x43   : > { %1274 = vmatpush1.bf16.msra.mxu0 %v4968_v34  ;;  %v549_v34 = vld [vmem:[%s5492_s21 + $0x318] sm:$0xff] }
  0x44   : > { %1356 = vmatprep.subr.bf16.mxu0 %v4971_v37  ;;  %v604_v37 = vpack.c.bf16 %v541_v32, %v534_v31  ;;  %v612_v39 = vpack.c.bf16 %v556_v35, %v549_v34  ;;  %v530_v31 = vld [vmem:[%s5492_s21 + $0x280] sm:$0xff]  ;;  %v5046_v34 = vld [vmem:[%s7076_s1 + $0x294] ss:$8 sps:$4 sm:$0xff]  }
  0x45   : > { %v5041_v32 = vld [vmem:[%s7076_s1 + $0x280] ss:$8 sps:$4 sm:$0xff]  }
  0x46   : > { %1276 = vmatmul.mubr.bf16.vlgmr.msra.gmra.mrb[0].mxu0 %v562_v40  ;;  %v5008_v40 = vld [vmem:[%s7076_s1 + $0x1d0] ss:$8 sps:$4 sm:$0xff]  }
  0x47   : > { %1357 = vmatpush1.bf16.msra.mxu0 %v4969_v41  ;;  %1285 = vmatprep.mubr.bf16.mxu0 %v570_v42  ;;  %v548_v41 = vld [vmem:[%s5492_s21 + $0x310] sm:$0xff]  ;;  %v555_v42 = vld [vmem:[%s5492_s21 + $0x348] sm:$0xff] }
  0x48   : > { %1358 = vmatprep.subr.bf16.mxu0 %v4974_v43  ;;  %v5013_v43 = vld [vmem:[%s7076_s1 + $0x1e4] ss:$8 sps:$4 sm:$0xff]  }
  0x4b   : > { %1359 = vmatpush1.bf16.msra.mxu0 %v4972_v44  ;;  %v453_v44 = vld [vmem:[%s5492_s21 + $0x18] sm:$0xff] }
  0x4c   : > { %1360 = vmatprep.subr.bf16.mxu0 %v4977_v47  ;;  %v611_v47 = vpack.c.bf16 %v555_v42, %v548_v41  ;;  %v565_v49 = vpack.c.bf16 %v460_v45, %v453_v44  ;;  %v544_v41 = vld [vmem:[%s5492_s21 + $0x2f0] sm:$0xff]  ;;  %v5047_v42 = vld [vmem:[%s7076_s1 + $0x2a0] ss:$8 sps:$4 sm:$0xff]  }
  0x4d   : > { %v5052_v44 = vld [vmem:[%s7076_s1 + $0x2b4] ss:$8 sps:$4 sm:$0xff]  }
  0x4e   : > { %1286 = vmatmul.mubr.bf16.gmra.mrb[4].mxu0 %v569_v50  ;;  %v5014_v50 = vld [vmem:[%s7076_s1 + $0x1f0] ss:$8 sps:$4 sm:$0xff]  }
  0x4f   : > { %1361 = vmatpush1.bf16.msra.mxu0 %v4975_v51  ;;  %1295 = vmatprep.mubr.bf16.mxu0 %v577_v52  ;;  %v452_v51 = vld [vmem:[%s5492_s21 + $0x10] sm:$0xff]  ;;  %v459_v52 = vld [vmem:[%s5492_s21 + $0x48] sm:$0xff] }
  0x50   : > { %1362 = vmatprep.subr.bf16.mxu0 %v4980_v53  ;;  %v5019_v53 = vld [vmem:[%s7076_s1 + $0x204] ss:$8 sps:$4 sm:$0xff]  }
  0x53   : > { %1363 = vmatpush1.bf16.msra.mxu0 %v4978_v54  ;;  %v467_v54 = vld [vmem:[%s5492_s21 + $0x88] sm:$0xff] }
  0x54   : > { %1364 = vmatprep.subr.bf16.mxu0 %v4983_v57  ;;  %v564_v57 = vpack.c.bf16 %v459_v52, %v452_v51  ;;  %v572_v59 = vpack.c.bf16 %v474_v55, %v467_v54  ;;  %v558_v51 = vld [vmem:[%s5492_s21 + $0x360] sm:$0xff]  ;;  %v5058_v54 = vld [vmem:[%s7076_s1 + $0x2d4] ss:$8 sps:$4 sm:$0xff]  }
  0x55   : > { %v5053_v52 = vld [vmem:[%s7076_s1 + $0x2c0] ss:$8 sps:$4 sm:$0xff]  }
  0x56   : > { %1296 = vmatmul.mubr.bf16.gmra.mrb[8].mxu0 %v576_v60  ;;  %v5020_v60 = vld [vmem:[%s7076_s1 + $0x210] ss:$8 sps:$4 sm:$0xff]  }
  0x57   : > { %1365 = vmatpush1.bf16.msra.mxu0 %v4981_v61  ;;  %1305 = vmatprep.mubr.bf16.mxu0 %v584_v62  ;;  %v466_v61 = vld [vmem:[%s5492_s21 + $0x80] sm:$0xff]  ;;  %v473_v62 = vld [vmem:[%s5492_s21 + $0xb8] sm:$0xff] }
  0x58   : > { %1366 = vmatprep.subr.bf16.mxu0 %v4986_v63  ;;  %v5025_v63 = vld [vmem:[%s7076_s1 + $0x224] ss:$8 sps:$4 sm:$0xff]  }
  0x5b   : > { %1367 = vmatpush1.bf16.msra.mxu0 %v4984_v0  ;;  %v481_v0 = vld [vmem:[%s5492_s21 + $0xf8] sm:$0xff] }
  0x5c   : > { %1368 = vmatprep.subr.bf16.mxu0 %v4989_v3  ;;  %v571_v3 = vpack.c.bf16 %v473_v62, %v466_v61  ;;  %v579_v5 = vpack.c.bf16 %v488_v1, %v481_v0  ;;  %v462_v61 = vld [vmem:[%s5492_s21 + $0x60] sm:$0xff]  ;;  %v5064_v1 = vld [vmem:[%s7076_s1 + $0x2f4] ss:$8 sps:$4 sm:$0xff]  }
  0x5e   : > { %1306 = vmatmul.mubr.bf16.gmra.mrb[12].mxu0 %v583_v6  ;;  %v5026_v6 = vld [vmem:[%s7076_s1 + $0x230] ss:$8 sps:$4 sm:$0xff]  }
  0x5f   : > { %1369 = vmatpush1.bf16.msra.mxu0 %v4987_v7  ;;  %1315 = vmatprep.mubr.bf16.mxu0 %v591_v8  ;;  %v480_v7 = vld [vmem:[%s5492_s21 + $0xf0] sm:$0xff]  ;;  %v487_v8 = vld [vmem:[%s5492_s21 + $0x128] sm:$0xff] }
  0x60   : > { %1370 = vmatprep.subr.bf16.mxu0 %v4992_v9  ;;  %v5031_v9 = vld [vmem:[%s7076_s1 + $0x244] ss:$8 sps:$4 sm:$0xff]  }
  0x63   : > { %1371 = vmatpush1.bf16.msra.mxu0 %v4990_v10  ;;  %v495_v10 = vld [vmem:[%s5492_s21 + $0x168] sm:$0xff] }
  0x64   : > { %1372 = vmatprep.subr.bf16.mxu0 %v4995_v13  ;;  %v578_v13 = vpack.c.bf16 %v487_v8, %v480_v7  ;;  %v586_v15 = vpack.c.bf16 %v502_v11, %v495_v10  ;;  %v461_v7 = vld [vmem:[%s5492_s21 + $0x58] sm:$0xff]  ;;  %v5067_v8 = vld [vmem:[%s7076_s1 + $0x304] ss:$8 sps:$4 sm:$0xff]   ;;  %v476_v10 = vld [vmem:[%s5492_s21 + $0xd0] sm:$0xff] }
  0x65   : > { %v5073_v11 = vld [vmem:[%s7078_s3 + $0x10] ss:$8 sps:$4 sm:$0xff]  }
  0x66   : > { %1316 = vmatmul.mubr.bf16.gmra.mrb[16].mxu0 %v590_v17  ;;  %v494_v17 = vld [vmem:[%s5492_s21 + $0x160] sm:$0xff] }
  0x67   : > { %1373 = vmatpush1.bf16.msra.mxu0 %v4993_v16  ;;  %1325 = vmatprep.mubr.bf16.mxu0 %v598_v19  ;;  %v5032_v16 = vld [vmem:[%s7076_s1 + $0x250] ss:$8 sps:$4 sm:$0xff]   ;;  %v5037_v19 = vld [vmem:[%s7076_s1 + $0x264] ss:$8 sps:$4 sm:$0xff]  }
  0x68   : > { %1374 = vmatprep.subr.bf16.mxu0 %v4998_v18  ;;  %v501_v18 = vld [vmem:[%s5492_s21 + $0x198] sm:$0xff] }
  0x6b   : > { %1375 = vmatpush1.bf16.msra.mxu0 %v4996_v20  ;;  %v509_v20 = vld [vmem:[%s5492_s21 + $0x1d8] sm:$0xff] }
  0x6c   : > { %1376 = vmatprep.subr.bf16.mxu0 %v5001_v23  ;;  %v585_v23 = vpack.c.bf16 %v501_v18, %v494_v17  ;;  %v593_v25 = vpack.c.bf16 %v516_v21, %v509_v20  ;;  %v5077_v17 = vld [vmem:[%s7078_s3 + $0x34] ss:$8 sps:$4 sm:$0xff]   ;;  %v483_v20 = vld [vmem:[%s5492_s21 + $0x108] sm:$0xff]  ;;  %v490_v21 = vld [vmem:[%s5492_s21 + $0x140] sm:$0xff] }
  0x6d   : > { %v468_v18 = vld [vmem:[%s5492_s21 + $0x90] sm:$0xff] }
  0x6e   : > { %1326 = vmatmul.mubr.bf16.gmra.mrb[20].mxu0 %v597_v27  ;;  %v508_v27 = vld [vmem:[%s5492_s21 + $0x1d0] sm:$0xff] }
  0x6f   : > { %1377 = vmatpush1.bf16.msra.mxu0 %v4999_v26  ;;  %1335 = vmatprep.mubr.bf16.mxu0 %v605_v29  ;;  %v5038_v26 = vld [vmem:[%s7076_s1 + $0x270] ss:$8 sps:$4 sm:$0xff]   ;;  %v5043_v29 = vld [vmem:[%s7076_s1 + $0x284] ss:$8 sps:$4 sm:$0xff]  }
  0x70   : > { %1378 = vmatprep.subr.bf16.mxu0 %v5004_v28  ;;  %v515_v28 = vld [vmem:[%s5492_s21 + $0x208] sm:$0xff] }
  0x73   : > { %1379 = vmatpush1.bf16.msra.mxu0 %v5002_v30  ;;  %v523_v30 = vld [vmem:[%s5492_s21 + $0x248] sm:$0xff] }
  0x74   : > { %1380 = vmatprep.subr.bf16.mxu0 %v5007_v33  ;;  %v592_v33 = vpack.c.bf16 %v515_v28, %v508_v27  ;;  %v600_v35 = vpack.c.bf16 %v530_v31, %v523_v30  ;;  %v5083_v27 = vld [vmem:[%s7078_s3 + $0x54] ss:$8 sps:$4 sm:$0xff]   ;;  %v482_v28 = vld [vmem:[%s5492_s21 + $0x100] sm:$0xff] }
  0x75   : > { %v497_v30 = vld [vmem:[%s5492_s21 + $0x178] sm:$0xff]  ;;  %v504_v31 = vld [vmem:[%s5492_s21 + $0x1b0] sm:$0xff] }
  0x76   : > { %1336 = vmatmul.mubr.bf16.gmra.mrb[24].mxu0 %v604_v37  ;;  %v522_v37 = vld [vmem:[%s5492_s21 + $0x240] sm:$0xff] }
  0x77   : > { %1381 = vmatpush1.bf16.msra.mxu0 %v5005_v36  ;;  %1345 = vmatprep.mubr.bf16.mxu0 %v612_v39  ;;  %v5044_v36 = vld [vmem:[%s7076_s1 + $0x290] ss:$8 sps:$4 sm:$0xff]   ;;  %v5049_v39 = vld [vmem:[%s7076_s1 + $0x2a4] ss:$8 sps:$4 sm:$0xff]  }
  0x78   : > { %1382 = vmatprep.subr.bf16.mxu0 %v5010_v38  ;;  %v529_v38 = vld [vmem:[%s5492_s21 + $0x278] sm:$0xff] }
  0x7b   : > { %1383 = vmatpush1.bf16.msra.mxu0 %v5008_v40  ;;  %v537_v40 = vld [vmem:[%s5492_s21 + $0x2b8] sm:$0xff] }
  0x7c   : > { %1384 = vmatprep.subr.bf16.mxu0 %v5013_v43  ;;  %v599_v43 = vpack.c.bf16 %v529_v38, %v522_v37  ;;  %v607_v45 = vpack.c.bf16 %v544_v41, %v537_v40  ;;  %v5089_v37 = vld [vmem:[%s7078_s3 + $0x74] ss:$8 sps:$4 sm:$0xff]   ;;  %v511_v40 = vld [vmem:[%s5492_s21 + $0x1e8] sm:$0xff]  ;;  %v518_v41 = vld [vmem:[%s5492_s21 + $0x220] sm:$0xff] }
  0x7d   : > { %v496_v38 = vld [vmem:[%s5492_s21 + $0x170] sm:$0xff] }
  0x7e   : > { %1346 = vmatmul.mubr.bf16.gmra.mrb[28].mxu0 %v611_v47  ;;  %v536_v47 = vld [vmem:[%s5492_s21 + $0x2b0] sm:$0xff] }
  0x7f   : > { %1385 = vmatpush1.bf16.msra.mxu0 %v5011_v46  ;;  %1388 = vmatprep.mubr.bf16.mxu0 %v565_v49  ;;  %v5050_v46 = vld [vmem:[%s7076_s1 + $0x2b0] ss:$8 sps:$4 sm:$0xff]   ;;  %v5055_v49 = vld [vmem:[%s7076_s1 + $0x2c4] ss:$8 sps:$4 sm:$0xff]  }
  0x80   : > { %1386 = vmatprep.subr.bf16.mxu0 %v5016_v48  ;;  %v543_v48 = vld [vmem:[%s5492_s21 + $0x2e8] sm:$0xff] }
  0x83   : > { %1387 = vmatpush1.bf16.msra.mxu0 %v5014_v50  ;;  %v551_v50 = vld [vmem:[%s5492_s21 + $0x328] sm:$0xff] }
  0x84   : > { %1469 = vmatprep.subr.bf16.mxu0 %v5019_v53  ;;  %v606_v53 = vpack.c.bf16 %v543_v48, %v536_v47  ;;  %v614_v55 = vpack.c.bf16 %v558_v51, %v551_v50  ;;  %v5095_v47 = vld [vmem:[%s7078_s3 + $0x94] ss:$8 sps:$4 sm:$0xff]   ;;  %v510_v48 = vld [vmem:[%s5492_s21 + $0x1e0] sm:$0xff] }
  0x85   : > { %v525_v50 = vld [vmem:[%s5492_s21 + $0x258] sm:$0xff]  ;;  %v532_v51 = vld [vmem:[%s5492_s21 + $0x290] sm:$0xff] }
  0x86   : > { %1389 = vmatmul.mubr.bf16.vlgmr.msra.gmra.mrb[0].mxu0 %v564_v57  ;;  %v550_v57 = vld [vmem:[%s5492_s21 + $0x320] sm:$0xff] }
  0x87   : > { %1470 = vmatpush1.bf16.msra.mxu0 %v5017_v56  ;;  %1398 = vmatprep.mubr.bf16.mxu0 %v572_v59  ;;  %v5056_v56 = vld [vmem:[%s7076_s1 + $0x2d0] ss:$8 sps:$4 sm:$0xff]   ;;  %v5061_v59 = vld [vmem:[%s7076_s1 + $0x2e4] ss:$8 sps:$4 sm:$0xff]  }
  0x88   : > { %1471 = vmatprep.subr.bf16.mxu0 %v5022_v58  ;;  %v557_v58 = vld [vmem:[%s5492_s21 + $0x358] sm:$0xff] }
  0x89   : > { %v613_v62 = vpack.c.bf16 %v557_v58, %v550_v57  ;;  %v5101_v57 = vld [vmem:[%s7078_s3 + $0xb4] ss:$8 sps:$4 sm:$0xff]  }
  0x8a   : > { %v524_v58 = vld [vmem:[%s5492_s21 + $0x250] sm:$0xff] }
  0x8b   : > { %1472 = vmatpush1.bf16.msra.mxu0 %v5020_v60  ;;  %v455_v60 = vld [vmem:[%s5492_s21 + $0x28] sm:$0xff] }
  0x8c   : > { %1473 = vmatprep.subr.bf16.mxu0 %v5025_v63  ;;  %v5059_v63 = vld [vmem:[%s7076_s1 + $0x2e0] ss:$8 sps:$4 sm:$0xff]   ;;  %v567_v0 = vpack.c.bf16 %v462_v61, %v455_v60 }
  0x8d   : > { %v539_v60 = vld [vmem:[%s5492_s21 + $0x2c8] sm:$0xff]  ;;  %v546_v61 = vld [vmem:[%s5492_s21 + $0x300] sm:$0xff] }
  0x8e   : > { %1399 = vmatmul.mubr.bf16.gmra.mrb[4].mxu0 %v571_v3  ;;  %v5070_v3 = vld [vmem:[%s7078_s3] ss:$8 sps:$4 sm:$0xff]  }
  0x8f   : > { %1474 = vmatpush1.bf16.msra.mxu0 %v5023_v2  ;;  %1408 = vmatprep.mubr.bf16.mxu0 %v579_v5  ;;  %v5068_v2 = vld [vmem:[%s7078_s3 + $0x4] ss:$8 sps:$4 sm:$0xff]   ;;  %v5062_v5 = vld [vmem:[%s7076_s1 + $0x2f0] ss:$8 sps:$4 sm:$0xff]  }
  0x90   : > { %1475 = vmatprep.subr.bf16.mxu0 %v5028_v4  ;;  %v5071_v4 = vld [vmem:[%s7078_s3 + $0x14] ss:$8 sps:$4 sm:$0xff]   ;;  %1947 = vmatprep.subr.bf16.mxu1 %v5068_v2  ;;  %v5106_v2 = vld [vmem:[%s7078_s3 + $0xc0] ss:$8 sps:$4 sm:$0xff]  }
  0x91   : > { %1948 = vmatpush1.bf16.msra.mxu1 %v5070_v3  ;;  %v5107_v3 = vld [vmem:[%s7078_s3 + $0xd4] ss:$8 sps:$4 sm:$0xff]  }
  0x92   : > { %1949 = vmatprep.subr.bf16.mxu1 %v5071_v4  ;;  %v538_v4 = vld [vmem:[%s5492_s21 + $0x2c0] sm:$0xff] }
  0x93   : > { %1476 = vmatpush1.bf16.msra.mxu0 %v5026_v6  ;;  %v454_v6 = vld [vmem:[%s5492_s21 + $0x20] sm:$0xff] }
  0x94   : > { %1477 = vmatprep.subr.bf16.mxu0 %v5031_v9  ;;  %v469_v9 = vld [vmem:[%s5492_s21 + $0x98] sm:$0xff] }
  0x95   : > { %1950 = vmatpush1.bf16.msra.mxu1 %v5073_v11  ;;  %v559_v11 = vld [vmem:[%s5492_s21 + $0x368] sm:$0xff] }
  0x96   : > { %1409 = vmatmul.mubr.bf16.gmra.mrb[8].mxu0 %v578_v13  ;;  %v5074_v13 = vld [vmem:[%s7078_s3 + $0x24] ss:$8 sps:$4 sm:$0xff]  }
  0x97   : > { %1478 = vmatpush1.bf16.msra.mxu0 %v5029_v12  ;;  %1418 = vmatprep.mubr.bf16.mxu0 %v586_v15  ;;  %v566_v12 = vpack.c.bf16 %v461_v7, %v454_v6  ;;  %v574_v15 = vpack.c.bf16 %v476_v10, %v469_v9  ;;  %v553_v6 = vld [vmem:[%s5492_s21 + $0x338] sm:$0xff]  ;;  %v560_v7 = vld [vmem:[%s5492_s21 + $0x370] sm:$0xff] }
  0x98   : > { %1479 = vmatprep.subr.bf16.mxu0 %v5034_v14  ;;  %v5065_v14 = vld [vmem:[%s7076_s1 + $0x300] ss:$8 sps:$4 sm:$0xff]   ;;  %1951 = vmatprep.subr.bf16.mxu1 %v5074_v13  ;;  %v616_v9 = vpack.c.bf16 %v560_v7, %v553_v6  ;;  %v552_v10 = vld [vmem:[%s5492_s21 + $0x330] sm:$0xff]  ;;  %v5372_v13 = vmov 0  }
  0x9b   : > { %1480 = vmatpush1.bf16.msra.mxu0 %v5032_v16  ;;  %v5076_v16 = vld [vmem:[%s7078_s3 + $0x20] ss:$8 sps:$4 sm:$0xff]  }
  0x9c   : > { %1481 = vmatprep.subr.bf16.mxu0 %v5037_v19  ;;  %v475_v19 = vld [vmem:[%s5492_s21 + $0xc8] sm:$0xff]  ;;  %1952 = vmatpush1.bf16.msra.mxu1 %v5076_v16 }
  0x9d   : > { %1953 = vmatprep.subr.bf16.mxu1 %v5077_v17  ;;  %v470_v17 = vld [vmem:[%s5492_s21 + $0xa0] sm:$0xff] }
  0x9e   : > { %1419 = vmatmul.mubr.bf16.gmra.mrb[12].mxu0 %v585_v23  ;;  %v573_v23 = vpack.c.bf16 %v475_v19, %v468_v18  ;;  %v477_v18 = vld [vmem:[%s5492_s21 + $0xd8] sm:$0xff] }
  0x9f   : > { %1482 = vmatpush1.bf16.msra.mxu0 %v5035_v22  ;;  %1428 = vmatprep.mubr.bf16.mxu0 %v593_v25  ;;  %v5079_v22 = vld [vmem:[%s7078_s3 + $0x30] ss:$8 sps:$4 sm:$0xff]   ;;  %v581_v25 = vpack.c.bf16 %v490_v21, %v483_v20  ;;  %v575_v19 = vpack.c.bf16 %v477_v18, %v470_v17  ;;  %v491_v21 = vld [vmem:[%s5492_s21 + $0x148] sm:$0xff] }
  0xa0   : > { %1483 = vmatprep.subr.bf16.mxu0 %v5040_v24  ;;  %v5080_v24 = vld [vmem:[%s7078_s3 + $0x44] ss:$8 sps:$4 sm:$0xff]   ;;  %1954 = vmatpush1.bf16.msra.mxu1 %v5079_v22  ;;  %v484_v20 = vld [vmem:[%s5492_s21 + $0x110] sm:$0xff] }
  0xa1   : > { %1955 = vmatprep.subr.bf16.mxu1 %v5080_v24  ;;  %v582_v22 = vpack.c.bf16 %v491_v21, %v484_v20  ;;  %v505_v24 = vld [vmem:[%s5492_s21 + $0x1b8] sm:$0xff]  ;;  %v5121_v21 = vld [vmem:[%s7080_s5 + $0x10] sm:$0xff]  }
  0xa3   : > { %1484 = vmatpush1.bf16.msra.mxu0 %v5038_v26  ;;  %v5082_v26 = vld [vmem:[%s7078_s3 + $0x40] ss:$8 sps:$4 sm:$0xff]  }
  0xa4   : > { %1485 = vmatprep.subr.bf16.mxu0 %v5043_v29  ;;  %v489_v29 = vld [vmem:[%s5492_s21 + $0x138] sm:$0xff]  ;;  %1956 = vmatpush1.bf16.msra.mxu1 %v5082_v26  ;;  %v512_v26 = vld [vmem:[%s5492_s21 + $0x1f0] sm:$0xff] }
  0xa5   : > { %1957 = vmatprep.subr.bf16.mxu1 %v5083_v27  ;;  %v519_v27 = vld [vmem:[%s5492_s21 + $0x228] sm:$0xff] }
  0xa6   : > { %1429 = vmatmul.mubr.bf16.gmra.mrb[16].mxu0 %v592_v33  ;;  %v580_v33 = vpack.c.bf16 %v489_v29, %v482_v28  ;;  %v596_v28 = vpack.c.bf16 %v519_v27, %v512_v26  ;;  %v526_v29 = vld [vmem:[%s5492_s21 + $0x260] sm:$0xff] }
  0xa7   : > { %1486 = vmatpush1.bf16.msra.mxu0 %v5041_v32  ;;  %1438 = vmatprep.mubr.bf16.mxu0 %v600_v35  ;;  %v5085_v32 = vld [vmem:[%s7078_s3 + $0x50] ss:$8 sps:$4 sm:$0xff]   ;;  %v588_v35 = vpack.c.bf16 %v504_v31, %v497_v30 }
  0xa8   : > { %1487 = vmatprep.subr.bf16.mxu0 %v5046_v34  ;;  %v5086_v34 = vld [vmem:[%s7078_s3 + $0x64] ss:$8 sps:$4 sm:$0xff]   ;;  %1958 = vmatpush1.bf16.msra.mxu1 %v5085_v32  ;;  %v533_v30 = vld [vmem:[%s5492_s21 + $0x298] sm:$0xff]  ;;  %v540_v32 = vld [vmem:[%s5492_s21 + $0x2d0] sm:$0xff] }
  0xa9   : > { %1959 = vmatprep.subr.bf16.mxu1 %v5086_v34  ;;  %v603_v31 = vpack.c.bf16 %v533_v30, %v526_v29  ;;  %v5123_v30 = vld [vmem:[%s7080_s5 + $0x18] sm:$0xff]  }
  0xab   : > { %1488 = vmatpush1.bf16.msra.mxu0 %v5044_v36  ;;  %v5088_v36 = vld [vmem:[%s7078_s3 + $0x60] ss:$8 sps:$4 sm:$0xff]  }
  0xac   : > { %1489 = vmatprep.subr.bf16.mxu0 %v5049_v39  ;;  %v503_v39 = vld [vmem:[%s5492_s21 + $0x1a8] sm:$0xff]  ;;  %1960 = vmatpush1.bf16.msra.mxu1 %v5088_v36  ;;  %v561_v36 = vld [vmem:[%s5492_s21 + $0x378] sm:$0xff] }
  0xad   : > { %1961 = vmatprep.subr.bf16.mxu1 %v5089_v37 }
  0xae   : > { %1439 = vmatmul.mubr.bf16.gmra.mrb[20].mxu0 %v599_v43  ;;  %v587_v43 = vpack.c.bf16 %v503_v39, %v496_v38  ;;  %v5109_v38 = vld [vmem:[%s7078_s3 + $0xd0] ss:$8 sps:$4 sm:$0xff]   ;;  %v5110_v39 = vld [vmem:[%s7078_s3 + $0xe4] ss:$8 sps:$4 sm:$0xff]  }
  0xaf   : > { %1490 = vmatpush1.bf16.msra.mxu0 %v5047_v42  ;;  %1448 = vmatprep.mubr.bf16.mxu0 %v607_v45  ;;  %v5091_v42 = vld [vmem:[%s7078_s3 + $0x70] ss:$8 sps:$4 sm:$0xff]   ;;  %v595_v45 = vpack.c.bf16 %v518_v41, %v511_v40  ;;  %v5112_v40 = vld [vmem:[%s7078_s3 + $0xe0] ss:$8 sps:$4 sm:$0xff]   ;;  %v5113_v41 = vld [vmem:[%s7078_s3 + $0xf4] ss:$8 sps:$4 sm:$0xff]  }
  0xb0   : > { %1491 = vmatprep.subr.bf16.mxu0 %v5052_v44  ;;  %v5092_v44 = vld [vmem:[%s7078_s3 + $0x84] ss:$8 sps:$4 sm:$0xff]   ;;  %1962 = vmatpush1.bf16.msra.mxu1 %v5091_v42  ;;  %v5115_v42 = vld [vmem:[%s7078_s3 + $0xf0] ss:$8 sps:$4 sm:$0xff]  }
  0xb1   : > { %1963 = vmatprep.subr.bf16.mxu1 %v5092_v44  ;;  %v718_v44 = vlaneseq }
  0xb3   : > { %1492 = vmatpush1.bf16.msra.mxu0 %v5050_v46  ;;  %v5094_v46 = vld [vmem:[%s7078_s3 + $0x80] ss:$8 sps:$4 sm:$0xff]  }
  0xb4   : > { %1493 = vmatprep.subr.bf16.mxu0 %v5055_v49  ;;  %v517_v49 = vld [vmem:[%s5492_s21 + $0x218] sm:$0xff]  ;;  %1964 = vmatpush1.bf16.msra.mxu1 %v5094_v46 }
  0xb5   : > { %1965 = vmatprep.subr.bf16.mxu1 %v5095_v47  ;;  %v716_v47 = vld [vmem:[%s7077_s2] sm:$0x3] }
  0xb6   : > { %1449 = vmatmul.mubr.bf16.gmra.mrb[24].mxu0 %v606_v53  ;;  %v594_v53 = vpack.c.bf16 %v517_v49, %v510_v48 }
  0xb7   : > { %1494 = vmatpush1.bf16.msra.mxu0 %v5053_v52  ;;  %1458 = vmatprep.mubr.bf16.mxu0 %v614_v55  ;;  %v5097_v52 = vld [vmem:[%s7078_s3 + $0x90] ss:$8 sps:$4 sm:$0xff]   ;;  %v602_v55 = vpack.c.bf16 %v532_v51, %v525_v50 }
  0xb8   : > { %1495 = vmatprep.subr.bf16.mxu0 %v5058_v54  ;;  %v5098_v54 = vld [vmem:[%s7078_s3 + $0xa4] ss:$8 sps:$4 sm:$0xff]   ;;  %1966 = vmatpush1.bf16.msra.mxu1 %v5097_v52 }
  0xb9   : > { %1967 = vmatprep.subr.bf16.mxu1 %v5098_v54 }
  0xbb   : > { %1496 = vmatpush1.bf16.msra.mxu0 %v5056_v56  ;;  %v5100_v56 = vld [vmem:[%s7078_s3 + $0xa0] ss:$8 sps:$4 sm:$0xff]  }
  0xbc   : > { %1497 = vmatprep.subr.bf16.mxu0 %v5061_v59  ;;  %v531_v59 = vld [vmem:[%s5492_s21 + $0x288] sm:$0xff]  ;;  %1968 = vmatpush1.bf16.msra.mxu1 %v5100_v56 }
  0xbd   : > { %1969 = vmatprep.subr.bf16.mxu1 %v5101_v57 }
  0xbe   : > { %1459 = vmatmul.mubr.bf16.gmra.mrb[28].mxu0 %v613_v62  ;;  %v5103_v62 = vld [vmem:[%s7078_s3 + $0xb0] ss:$8 sps:$4 sm:$0xff]  }
  0xbf   : > { %1498 = vmatpush1.bf16.msra.mxu0 %v5059_v63  ;;  %1501 = vmatprep.mubr.bf16.mxu0 %v567_v0  ;;  %v601_v63 = vpack.c.bf16 %v531_v59, %v524_v58  ;;  %v5104_v0 = vld [vmem:[%s7078_s3 + $0xc4] ss:$8 sps:$4 sm:$0xff]  }
  0xc0   : > { %1499 = vmatprep.subr.bf16.mxu0 %v5064_v1  ;;  %v609_v1 = vpack.c.bf16 %v546_v61, %v539_v60  ;;  %1970 = vmatpush1.bf16.msra.mxu1 %v5103_v62 }
  0xc1   : > { %1971 = vmatprep.subr.bf16.mxu1 %v5104_v0 }
  0xc3   : > { %1500 = vmatpush1.bf16.msra.mxu0 %v5062_v5  ;;  %v545_v5 = vld [vmem:[%s5492_s21 + $0x2f8] sm:$0xff] }
  0xc4   : > { %1582 = vmatprep.subr.bf16.mxu0 %v5067_v8  ;;  %1972 = vmatpush1.bf16.msra.mxu1 %v5106_v2  ;;  %v608_v8 = vpack.c.bf16 %v545_v5, %v538_v4  ;;  %v5117_v2 = vld [vmem:[%s7080_s5] sm:$0xff]   ;;  %v5118_v5 = vld [vmem:[%s7080_s5 + $0x48] sm:$0xff]  }
  0xc5   : > { %1973 = vmatprep.subr.bf16.mxu1 %v5107_v3 }
  0xc6   : > { %1502 = vmatmul.mubr.bf16.vlgmr.msra.gmra.mrb[0].mxu0 %v566_v12  ;;  %v615_v12 = vpack.c.bf16 %v559_v11, %v552_v10  ;;  %v5119_v11 = vld [vmem:[%s7080_s5 + $0x8] sm:$0xff]  }
  0xc7   : > { %1583 = vmatpush1.bf16.msra.mxu0 %v5065_v14  ;;  %1511 = vmatprep.mubr.bf16.mxu0 %v574_v15  ;;  %v456_v14 = vld [vmem:[%s5492_s21 + $0x30] sm:$0xff]  ;;  %v463_v15 = vld [vmem:[%s5492_s21 + $0x68] sm:$0xff] }
  0xc8   : > { %v568_v16 = vpack.c.bf16 %v463_v15, %v456_v14  ;;  %1974 = vmatpush1.bf16.msra.mxu1 %v5109_v38  ;;  %v5120_v15 = vld [vmem:[%s7080_s5 + $0x50] sm:$0xff]  }
  0xc9   : > { %1975 = vmatprep.subr.bf16.mxu1 %v5110_v39  ;;  %v5125_v39 = vld [vmem:[%s7080_s5 + $0x20] sm:$0xff]  }
  0xcc   : > { %1976 = vmatpush1.bf16.msra.mxu1 %v5112_v40 }
  0xcd   : > { %1977 = vmatprep.subr.bf16.mxu1 %v5113_v41 }
  0xce   : > { %1512 = vmatmul.mubr.bf16.gmra.mrb[4].mxu0 %v573_v23  ;;  %v498_v23 = vld [vmem:[%s5492_s21 + $0x180] sm:$0xff] }
  0xcf   : > { %1521 = vmatprep.mubr.bf16.mxu0 %v581_v25  ;;  %v589_v25 = vpack.c.bf16 %v505_v24, %v498_v23  ;;  %v5122_v24 = vld [vmem:[%s7080_s5 + $0x58] sm:$0xff]  }
  0xd0   : > { %1978 = vmatpush1.bf16.msra.mxu1 %v5115_v42  ;;  %v5126_v42 = vld [vmem:[%s7080_s5 + $0x68] sm:$0xff]  }
  0xd6   : > { %1522 = vmatmul.mubr.bf16.gmra.mrb[8].mxu0 %v580_v33  ;;  %v547_v33 = vld [vmem:[%s5492_s21 + $0x308] sm:$0xff] }
  0xd7   : > { %1531 = vmatprep.mubr.bf16.mxu0 %v588_v35  ;;  %v610_v34 = vpack.c.bf16 %v547_v33, %v540_v32  ;;  %v554_v35 = vld [vmem:[%s5492_s21 + $0x340] sm:$0xff] }
  0xd8   : > { %v617_v37 = vpack.c.bf16 %v561_v36, %v554_v35  ;;  %v5124_v33 = vld [vmem:[%s7080_s5 + $0x60] sm:$0xff]  }
  0xde   : > { %1532 = vmatmul.mubr.bf16.gmra.mrb[12].mxu0 %v587_v43  ;;  %v5116_v43 = vld [vmem:[%s7080_s5 + $0x40] sm:$0xff]  }
  0xdf   : > { %1541 = vmatprep.mubr.bf16.mxu0 %v595_v45  ;;  %4655 = vmatprep.subr.bf16.mxu1 %v5116_v43  ;;  %v5982_v45 = vshrl.u32 %v718_v44, 7 }
  0xe1   : > { %v5985_v46 = vsub.s32 0, %v5982_v45  ;;  %v5991_v48 = vsub.s32 1, %v5982_v45 }
  0xe3   : > { %v5994_v49 = vrot.slane %v716_v47, %v5985_v46  ;;  %v5997_v50 = vrot.slane %v716_v47, %v5991_v48 }
  0xe6   : > { %1542 = vmatmul.mubr.bf16.gmra.mrb[16].mxu0 %v594_v53 }
  0xe7   : > { %1551 = vmatprep.mubr.bf16.mxu0 %v602_v55 }
  0xee   : > { %1552 = vmatmul.mubr.bf16.gmra.mrb[20].mxu0 %v601_v63 }
  0xef   : > { %1561 = vmatprep.mubr.bf16.mxu0 %v609_v1 }
  0xf6   : > { %1562 = vmatmul.mubr.bf16.gmra.mrb[24].mxu0 %v608_v8 }
  0xf7   : > { %1571 = vmatprep.mubr.bf16.mxu0 %v616_v9 }
  0xfe   : > { %1572 = vmatmul.mubr.bf16.gmra.mrb[28].mxu0 %v615_v12 }
  0xff   : > { %1614 = vmatprep.mubr.bf16.mxu0 %v5372_v13 }
 0x106   : > { %4436 = vmatmul.mubr.msk.bf16.vlgmr.msra.gmra.mrb[0].mxu0 %vm1218_vm0, %v568_v16 }
 0x107   : > { %1624 = vmatprep.mubr.bf16.mxu0 %v5372_v13 }
 0x10e   : > { %4437 = vmatmul.mubr.msk.bf16.gmra.mrb[4].mxu0 %vm1218_vm0, %v575_v19 }
 0x10f   : > { %1634 = vmatprep.mubr.bf16.mxu0 %v5372_v13 }
 0x116   : > { %4438 = vmatmul.mubr.msk.bf16.gmra.mrb[8].mxu0 %vm1218_vm0, %v582_v22 }
 0x117   : > { %1644 = vmatprep.mubr.bf16.mxu0 %v5372_v13 }
 0x11e   : > { %4439 = vmatmul.mubr.msk.bf16.gmra.mrb[12].mxu0 %vm1218_vm0, %v589_v25 }
 0x11f   : > { %1654 = vmatprep.mubr.bf16.mxu0 %v5372_v13 }
 0x126   : > { %4440 = vmatmul.mubr.msk.bf16.gmra.mrb[16].mxu0 %vm1218_vm0, %v596_v28 }
 0x127   : > { %1664 = vmatprep.mubr.bf16.mxu0 %v5372_v13 }
 0x12e   : > { %4441 = vmatmul.mubr.msk.bf16.gmra.mrb[20].mxu0 %vm1218_vm0, %v603_v31 }
 0x12f   : > { %1674 = vmatprep.mubr.bf16.mxu0 %v5372_v13 }
 0x136   : > { %4442 = vmatmul.mubr.msk.bf16.gmra.mrb[24].mxu0 %vm1218_vm0, %v610_v34 }
 0x137   : > { %1684 = vmatprep.mubr.bf16.mxu0 %v5372_v13 }
 0x13e   : > { %4443 = vmatmul.mubr.msk.bf16.gmra.mrb[28].mxu0 %vm1218_vm0, %v617_v37 }
 0x1d9   : > { %v1616_v51 = vpop.f32.mrb[0].mxu0 }
 0x1da   : > { %v4783_v52 = vadd.f32 %v1616_v51, %v5994_v49  ;;  %v1618_v53 = vpop.f32.mrb[1].mxu0 }
 0x1db   : > { %v4784_v54 = vadd.f32 %v1618_v53, %v5997_v50  ;;  %v1620_v55 = vpop.f32.mrb[2].mxu0  ;;  %v5127_v53 = vld [vmem:[%s7080_s5 + $0x28] sm:$0xff]  }
 0x1dc   : > { %v4785_v56 = vadd.f32 %v1620_v55, %v5994_v49  ;;  %v1622_v57 = vpop.f32.mrb[3].mxu0  ;;  %v1695_v59 = vmax.f32 %v4783_v52, 0.0 }
 0x1dd   : > { %v4786_v58 = vadd.f32 %v1622_v57, %v5997_v50  ;;  %v1696_v61 = vmax.f32 %v4784_v54, 0.0 }
 0x1de   : > { %v1697_v60 = vmax.f32 %v4785_v56, 0.0  ;;  %v5128_v56 = vld [vmem:[%s7080_s5 + $0x70] sm:$0xff]  }
 0x1df   : > { %v1698_v62 = vmax.f32 %v4786_v58, 0.0 }
 0x1e0   : > { %v1727_v63 = vpack.c.bf16 %v1697_v60, %v1695_v59 }
 0x1e1   : > { %v1626_v0 = vpop.f32.mrb[4].mxu0  ;;  %v1728_v1 = vpack.c.bf16 %v1698_v62, %v1696_v61  ;;  %v5129_v62 = vld [vmem:[%s7080_s5 + $0x30] sm:$0xff]  }
 0x1e2   : > { %v4787_v3 = vadd.f32 %v1626_v0, %v5994_v49  ;;  %v1628_v4 = vpop.f32.mrb[5].mxu0 }
 0x1e3   : > { %v4788_v6 = vadd.f32 %v1628_v4, %v5997_v50  ;;  %v1630_v7 = vpop.f32.mrb[6].mxu0  ;;  %1979 = vmatprep.mubr.bf16.mxu1 %v1728_v1 }
 0x1e4   : > { %v4789_v8 = vadd.f32 %v1630_v7, %v5994_v49  ;;  %v1632_v9 = vpop.f32.mrb[7].mxu0  ;;  %1980 = vmatmul.mubr.bf16.vlgmr.msra.gmra.mrb[0].mxu1 %v1727_v63  ;;  %v1699_v12 = vmax.f32 %v4787_v3, 0.0 }
 0x1e5   : > { %v4790_v10 = vadd.f32 %v1632_v9, %v5997_v50  ;;  %4656 = vmatpush3.bf16.msra.mxu1 %v5117_v2  ;;  %v1700_v16 = vmax.f32 %v4788_v6, 0.0 }
 0x1e6   : > { %v1701_v14 = vmax.f32 %v4789_v8, 0.0  ;;  %4657 = vmatprep.subr.bf16.mxu1 %v5118_v5 }
 0x1e7   : > { %v1702_v17 = vmax.f32 %v4790_v10, 0.0 }
 0x1e8   : > { %v1729_v18 = vpack.c.bf16 %v1701_v14, %v1699_v12 }
 0x1e9   : > { %v1730_v19 = vpack.c.bf16 %v1702_v17, %v1700_v16  ;;  %v1636_v20 = vpop.f32.mrb[8].mxu0  ;;  %4658 = vmatpush3.bf16.msra.mxu1 %v5119_v11 }
 0x1ea   : > { %v4791_v22 = vadd.f32 %v1636_v20, %v5994_v49  ;;  %v1638_v23 = vpop.f32.mrb[9].mxu0  ;;  %4659 = vmatprep.subr.bf16.mxu1 %v5120_v15 }
 0x1eb   : > { %v4792_v25 = vadd.f32 %v1638_v23, %v5997_v50  ;;  %v1640_v26 = vpop.f32.mrb[10].mxu0  ;;  %1989 = vmatprep.mubr.bf16.mxu1 %v1730_v19 }
 0x1ec   : > { %v4793_v27 = vadd.f32 %v1640_v26, %v5994_v49  ;;  %v1642_v28 = vpop.f32.mrb[11].mxu0  ;;  %1990 = vmatmul.mubr.bf16.gmra.mrb[4].mxu1 %v1729_v18  ;;  %v1703_v31 = vmax.f32 %v4791_v22, 0.0 }
 0x1ed   : > { %v4794_v29 = vadd.f32 %v1642_v28, %v5997_v50  ;;  %4660 = vmatpush3.bf16.msra.mxu1 %v5121_v21  ;;  %v1704_v34 = vmax.f32 %v4792_v25, 0.0 }
 0x1ee   : > { %v1705_v32 = vmax.f32 %v4793_v27, 0.0  ;;  %4661 = vmatprep.subr.bf16.mxu1 %v5122_v24 }
 0x1ef   : > { %v1706_v35 = vmax.f32 %v4794_v29, 0.0 }
 0x1f0   : > { %v1731_v36 = vpack.c.bf16 %v1705_v32, %v1703_v31 }
 0x1f1   : > { %v1732_v37 = vpack.c.bf16 %v1706_v35, %v1704_v34  ;;  %v1646_v38 = vpop.f32.mrb[12].mxu0  ;;  %4662 = vmatpush3.bf16.msra.mxu1 %v5123_v30 }
 0x1f2   : > { %v4795_v40 = vadd.f32 %v1646_v38, %v5994_v49  ;;  %v1648_v41 = vpop.f32.mrb[13].mxu0  ;;  %4663 = vmatprep.subr.bf16.mxu1 %v5124_v33 }
 0x1f3   : > { %v4796_v43 = vadd.f32 %v1648_v41, %v5997_v50  ;;  %v1650_v44 = vpop.f32.mrb[14].mxu0  ;;  %1999 = vmatprep.mubr.bf16.mxu1 %v1732_v37 }
 0x1f4   : > { %v4797_v47 = vadd.f32 %v1650_v44, %v5994_v49  ;;  %v1652_v51 = vpop.f32.mrb[15].mxu0  ;;  %2000 = vmatmul.mubr.bf16.gmra.mrb[8].mxu1 %v1731_v36  ;;  %v1707_v54 = vmax.f32 %v4795_v40, 0.0 }
 0x1f5   : > { %v4798_v52 = vadd.f32 %v1652_v51, %v5997_v50  ;;  %4664 = vmatpush3.bf16.msra.mxu1 %v5125_v39  ;;  %v1708_v57 = vmax.f32 %v4796_v43, 0.0 }
 0x1f6   : > { %v1709_v55 = vmax.f32 %v4797_v47, 0.0  ;;  %4665 = vmatprep.subr.bf16.mxu1 %v5126_v42 }
 0x1f7   : > { %v1710_v58 = vmax.f32 %v4798_v52, 0.0 }
 0x1f8   : > { %v1733_v59 = vpack.c.bf16 %v1709_v55, %v1707_v54 }
 0x1f9   : > { %v1734_v60 = vpack.c.bf16 %v1710_v58, %v1708_v57  ;;  %v1656_v61 = vpop.f32.mrb[16].mxu0  ;;  %4666 = vmatpush3.bf16.msra.mxu1 %v5127_v53 }
 0x1fa   : > { %v4799_v63 = vadd.f32 %v1656_v61, %v5994_v49  ;;  %v1658_v0 = vpop.f32.mrb[17].mxu0  ;;  %4667 = vmatprep.subr.bf16.mxu1 %v5128_v56  ;;  %v1775_v61 = vld [vmem:[%s7079_s4] sm:$0x3] }
 0x1fb   : > { %v4800_v1 = vadd.f32 %v1658_v0, %v5997_v50  ;;  %v1660_v2 = vpop.f32.mrb[18].mxu0  ;;  %2009 = vmatprep.mubr.bf16.mxu1 %v1734_v60  ;;  %v5130_v60 = vld [vmem:[%s7080_s5 + $0x78] sm:$0xff]  }
 0x1fc   : > { %v4801_v3 = vadd.f32 %v1660_v2, %v5994_v49  ;;  %v1662_v4 = vpop.f32.mrb[19].mxu0  ;;  %2010 = vmatmul.mubr.bf16.gmra.mrb[12].mxu1 %v1733_v59  ;;  %v1711_v6 = vmax.f32 %v4799_v63, 0.0  ;;  %v6086_v63 = vrot.slane %v1775_v61, %v5991_v48 }
 0x1fd   : > { %v4802_v5 = vadd.f32 %v1662_v4, %v5997_v50  ;;  %4668 = vmatpush3.bf16.msra.mxu1 %v5129_v62  ;;  %v1712_v8 = vmax.f32 %v4800_v1, 0.0  ;;  %v6083_v62 = vrot.slane %v1775_v61, %v5985_v46 }
 0x1fe   : > { %v1713_v7 = vmax.f32 %v4801_v3, 0.0  ;;  %4669 = vmatprep.subr.bf16.mxu1 %v5130_v60  ;;  %v5149_v60 = vld [vmem:[%s7082_s7 + $0x54] ss:$8 sps:$4 sm:$0xff]  }
 0x1ff   : > { %v1714_v9 = vmax.f32 %v4802_v5, 0.0 }
 0x200   : > { %v1735_v10 = vpack.c.bf16 %v1713_v7, %v1711_v6 }
 0x201   : > { %v1736_v11 = vpack.c.bf16 %v1714_v9, %v1712_v8  ;;  %v1666_v12 = vpop.f32.mrb[20].mxu0 }
 0x202   : > { %v4803_v14 = vadd.f32 %v1666_v12, %v5994_v49  ;;  %v1668_v15 = vpop.f32.mrb[21].mxu0 }
 0x203   : > { %v4804_v16 = vadd.f32 %v1668_v15, %v5997_v50  ;;  %v1670_v17 = vpop.f32.mrb[22].mxu0  ;;  %2019 = vmatprep.mubr.bf16.mxu1 %v1736_v11 }
 0x204   : > { %v4805_v18 = vadd.f32 %v1670_v17, %v5994_v49  ;;  %v1672_v19 = vpop.f32.mrb[23].mxu0  ;;  %2020 = vmatmul.mubr.bf16.gmra.mrb[16].mxu1 %v1735_v10  ;;  %v1715_v21 = vmax.f32 %v4803_v14, 0.0 }
 0x205   : > { %v4806_v20 = vadd.f32 %v1672_v19, %v5997_v50  ;;  %v1716_v23 = vmax.f32 %v4804_v16, 0.0  ;;  %v5132_v16 = vld [vmem:[%s7082_s7] ss:$8 sps:$4 sm:$0xff]   ;;  %v5137_v19 = vld [vmem:[%s7082_s7 + $0x14] ss:$8 sps:$4 sm:$0xff]  }
 0x206   : > { %v1717_v22 = vmax.f32 %v4805_v18, 0.0 }
 0x207   : > { %v1718_v24 = vmax.f32 %v4806_v20, 0.0 }
 0x208   : > { %v1737_v25 = vpack.c.bf16 %v1717_v22, %v1715_v21 }
 0x209   : > { %v1738_v26 = vpack.c.bf16 %v1718_v24, %v1716_v23  ;;  %v1676_v27 = vpop.f32.mrb[24].mxu0 }
 0x20a   : > { %v4807_v28 = vadd.f32 %v1676_v27, %v5994_v49  ;;  %v1678_v29 = vpop.f32.mrb[25].mxu0 }
 0x20b   : > { %v4808_v30 = vadd.f32 %v1678_v29, %v5997_v50  ;;  %v1680_v31 = vpop.f32.mrb[26].mxu0  ;;  %2029 = vmatprep.mubr.bf16.mxu1 %v1738_v26 }
 0x20c   : > { %v4809_v32 = vadd.f32 %v1680_v31, %v5994_v49  ;;  %v1682_v33 = vpop.f32.mrb[27].mxu0  ;;  %2030 = vmatmul.mubr.bf16.gmra.mrb[20].mxu1 %v1737_v25  ;;  %v1719_v35 = vmax.f32 %v4807_v28, 0.0  ;;  %v5135_v25 = vld [vmem:[%s7082_s7 + $0x10] ss:$8 sps:$4 sm:$0xff]   ;;  %v5140_v28 = vld [vmem:[%s7082_s7 + $0x24] ss:$8 sps:$4 sm:$0xff]  }
 0x20d   : > { %v4810_v34 = vadd.f32 %v1682_v33, %v5997_v50  ;;  %v1720_v37 = vmax.f32 %v4808_v30, 0.0 }
 0x20e   : > { %v1721_v36 = vmax.f32 %v4809_v32, 0.0 }
 0x20f   : > { %v1722_v38 = vmax.f32 %v4810_v34, 0.0  ;;  %v5138_v34 = vld [vmem:[%s7082_s7 + $0x20] ss:$8 sps:$4 sm:$0xff]  }
 0x210   : > { %v1739_v39 = vpack.c.bf16 %v1721_v36, %v1719_v35 }
 0x211   : > { %v1740_v40 = vpack.c.bf16 %v1722_v38, %v1720_v37  ;;  %v1686_v41 = vpop.f32.mrb[28].mxu0  ;;  %v5143_v37 = vld [vmem:[%s7082_s7 + $0x34] ss:$8 sps:$4 sm:$0xff]  }
 0x212   : > { %v4811_v42 = vadd.f32 %v1686_v41, %v5994_v49  ;;  %v1688_v43 = vpop.f32.mrb[29].mxu0 }
 0x213   : > { %v4812_v44 = vadd.f32 %v1688_v43, %v5997_v50  ;;  %v1690_v47 = vpop.f32.mrb[30].mxu0  ;;  %2039 = vmatprep.mubr.bf16.mxu1 %v1740_v40  ;;  %v5141_v43 = vld [vmem:[%s7082_s7 + $0x30] ss:$8 sps:$4 sm:$0xff]  }
 0x214   : > { %v4813_v51 = vadd.f32 %v1690_v47, %v5994_v49  ;;  %v1692_v52 = vpop.f32.mrb[31].mxu0  ;;  %2040 = vmatmul.mubr.bf16.gmra.mrb[24].mxu1 %v1739_v39  ;;  %v1723_v54 = vmax.f32 %v4811_v42, 0.0  ;;  %v5131_v49 = vld [vmem:[%s7080_s5 + $0x38] sm:$0xff]  }
 0x215   : > { %v4814_v53 = vadd.f32 %v1692_v52, %v5997_v50  ;;  %v1724_v56 = vmax.f32 %v4812_v44, 0.0  ;;  %4670 = vmatpush3.bf16.msra.mxu1 %v5131_v49  ;;  %v5134_v50 = vld [vmem:[%s7082_s7 + $0x4] ss:$8 sps:$4 sm:$0xff]  }
 0x216   : > { %v1725_v55 = vmax.f32 %v4813_v51, 0.0  ;;  %2456 = vmatprep.subr.bf16.mxu1 %v5134_v50  ;;  %v5146_v51 = vld [vmem:[%s7082_s7 + $0x44] ss:$8 sps:$4 sm:$0xff]  }
 0x217   : > { %v1726_v57 = vmax.f32 %v4814_v53, 0.0 }
 0x218   : > { %v1741_v58 = vpack.c.bf16 %v1725_v55, %v1723_v54 }
 0x219   : > { %v1742_v59 = vpack.c.bf16 %v1726_v57, %v1724_v56  ;;  %v5144_v57 = vld [vmem:[%s7082_s7 + $0x40] ss:$8 sps:$4 sm:$0xff]  }
 0x21b   : > { %2049 = vmatprep.mubr.bf16.mxu1 %v1742_v59 }
 0x21c   : > { %2050 = vmatmul.mubr.bf16.gmra.mrb[28].mxu1 %v1741_v58 }
 0x2b7   : > { %v1981_v0 = vpop.f32.mrb[0].mxu1 }
 0x2b8   : > { %v1982_v1 = vadd.f32 %v1981_v0, %v6083_v62  ;;  %v1983_v2 = vpop.f32.mrb[1].mxu1 }
 0x2b9   : > { %v1984_v3 = vadd.f32 %v1983_v2, %v6086_v63  ;;  %v1985_v4 = vpop.f32.mrb[2].mxu1  ;;  %v5147_v2 = vld [vmem:[%s7082_s7 + $0x50] ss:$8 sps:$4 sm:$0xff]  }
 0x2ba   : > { %v1986_v5 = vadd.f32 %v1985_v4, %v6083_v62  ;;  %v1987_v6 = vpop.f32.mrb[3].mxu1  ;;  %v2060_v8 = vmax.f32 %v1982_v1, 0.0 }
 0x2bb   : > { %v1988_v7 = vadd.f32 %v1987_v6, %v6086_v63  ;;  %v2061_v10 = vmax.f32 %v1984_v3, 0.0 }
 0x2bc   : > { %v2062_v9 = vmax.f32 %v1986_v5, 0.0  ;;  %v5152_v5 = vld [vmem:[%s7082_s7 + $0x64] ss:$8 sps:$4 sm:$0xff]  }
 0x2bd   : > { %v2063_v11 = vmax.f32 %v1988_v7, 0.0 }
 0x2be   : > { %v2092_v12 = vpack.c.bf16 %v2062_v9, %v2060_v8 }
 0x2bf   : > { %v2093_v14 = vpack.c.bf16 %v2063_v11, %v2061_v10  ;;  %v1991_v15 = vpop.f32.mrb[4].mxu1  ;;  %v5150_v11 = vld [vmem:[%s7082_s7 + $0x60] ss:$8 sps:$4 sm:$0xff]  }
 0x2c0   : > { %v1992_v17 = vadd.f32 %v1991_v15, %v6083_v62  ;;  %v1993_v18 = vpop.f32.mrb[5].mxu1 }
 0x2c1   : > { %v1994_v20 = vadd.f32 %v1993_v18, %v6086_v63  ;;  %v1995_v21 = vpop.f32.mrb[6].mxu1  ;;  %2275 = vmatprep.mubr.bf16.mxu1 %v2093_v14 }
 0x2c2   : > { %v1996_v22 = vadd.f32 %v1995_v21, %v6083_v62  ;;  %v1997_v23 = vpop.f32.mrb[7].mxu1  ;;  %2276 = vmatmul.mubr.bf16.vlgmr.msra.gmra.mrb[32].mxu1 %v2092_v12  ;;  %v2064_v26 = vmax.f32 %v1992_v17, 0.0 }
 0x2c3   : > { %v1998_v24 = vadd.f32 %v1997_v23, %v6086_v63  ;;  %2457 = vmatpush1.bf16.msra.mxu1 %v5132_v16  ;;  %v2065_v29 = vmax.f32 %v1994_v20, 0.0 }
 0x2c4   : > { %v2066_v27 = vmax.f32 %v1996_v22, 0.0  ;;  %2458 = vmatprep.subr.bf16.mxu1 %v5137_v19 }
 0x2c5   : > { %v2067_v30 = vmax.f32 %v1998_v24, 0.0 }
 0x2c6   : > { %v2094_v31 = vpack.c.bf16 %v2066_v27, %v2064_v26 }
 0x2c7   : > { %v2095_v32 = vpack.c.bf16 %v2067_v30, %v2065_v29  ;;  %v2001_v33 = vpop.f32.mrb[8].mxu1  ;;  %2459 = vmatpush1.bf16.msra.mxu1 %v5135_v25 }
 0x2c8   : > { %v2002_v35 = vadd.f32 %v2001_v33, %v6083_v62  ;;  %v2003_v36 = vpop.f32.mrb[9].mxu1  ;;  %2460 = vmatprep.subr.bf16.mxu1 %v5140_v28 }
 0x2c9   : > { %v2004_v38 = vadd.f32 %v2003_v36, %v6086_v63  ;;  %v2005_v39 = vpop.f32.mrb[10].mxu1  ;;  %2283 = vmatprep.mubr.bf16.mxu1 %v2095_v32 }
 0x2ca   : > { %v2006_v40 = vadd.f32 %v2005_v39, %v6083_v62  ;;  %v2007_v41 = vpop.f32.mrb[11].mxu1  ;;  %2284 = vmatmul.mubr.bf16.gmra.mrb[36].mxu1 %v2094_v31  ;;  %v2068_v44 = vmax.f32 %v2002_v35, 0.0 }
 0x2cb   : > { %v2008_v42 = vadd.f32 %v2007_v41, %v6086_v63  ;;  %2461 = vmatpush1.bf16.msra.mxu1 %v5138_v34  ;;  %v2069_v52 = vmax.f32 %v2004_v38, 0.0 }
 0x2cc   : > { %v2070_v47 = vmax.f32 %v2006_v40, 0.0  ;;  %2462 = vmatprep.subr.bf16.mxu1 %v5143_v37 }
 0x2cd   : > { %v2071_v53 = vmax.f32 %v2008_v42, 0.0 }
 0x2ce   : > { %v2096_v54 = vpack.c.bf16 %v2070_v47, %v2068_v44 }
 0x2cf   : > { %v2097_v55 = vpack.c.bf16 %v2071_v53, %v2069_v52  ;;  %v2011_v56 = vpop.f32.mrb[12].mxu1  ;;  %2463 = vmatpush1.bf16.msra.mxu1 %v5141_v43 }
 0x2d0   : > { %v2012_v58 = vadd.f32 %v2011_v56, %v6083_v62  ;;  %v2013_v59 = vpop.f32.mrb[13].mxu1  ;;  %2464 = vmatprep.subr.bf16.mxu1 %v5146_v51 }
 0x2d1   : > { %v2014_v49 = vadd.f32 %v2013_v59, %v6086_v63  ;;  %v2015_v50 = vpop.f32.mrb[14].mxu1  ;;  %2291 = vmatprep.mubr.bf16.mxu1 %v2097_v55 }
 0x2d2   : > { %v2016_v61 = vadd.f32 %v2015_v50, %v6083_v62  ;;  %v2017_v0 = vpop.f32.mrb[15].mxu1  ;;  %2292 = vmatmul.mubr.bf16.gmra.mrb[40].mxu1 %v2096_v54  ;;  %v2072_v3 = vmax.f32 %v2012_v58, 0.0 }
 0x2d3   : > { %v2018_v1 = vadd.f32 %v2017_v0, %v6086_v63  ;;  %2465 = vmatpush1.bf16.msra.mxu1 %v5144_v57  ;;  %v2073_v6 = vmax.f32 %v2014_v49, 0.0 }
 0x2d4   : > { %v2074_v4 = vmax.f32 %v2016_v61, 0.0  ;;  %2466 = vmatprep.subr.bf16.mxu1 %v5149_v60 }
 0x2d5   : > { %v2075_v7 = vmax.f32 %v2018_v1, 0.0 }
 0x2d6   : > { %v2098_v8 = vpack.c.bf16 %v2074_v4, %v2072_v3 }
 0x2d7   : > { %v2099_v9 = vpack.c.bf16 %v2075_v7, %v2073_v6  ;;  %v2021_v10 = vpop.f32.mrb[16].mxu1  ;;  %2467 = vmatpush1.bf16.msra.mxu1 %v5147_v2 }
 0x2d8   : > { %v2022_v12 = vadd.f32 %v2021_v10, %v6083_v62  ;;  %v2023_v14 = vpop.f32.mrb[17].mxu1  ;;  %2468 = vmatprep.subr.bf16.mxu1 %v5152_v5 }
 0x2d9   : > { %v2024_v15 = vadd.f32 %v2023_v14, %v6086_v63  ;;  %v2025_v16 = vpop.f32.mrb[18].mxu1  ;;  %2299 = vmatprep.mubr.bf16.mxu1 %v2099_v9  ;;  %v5153_v9 = vld [vmem:[%s7082_s7 + $0x70] ss:$8 sps:$4 sm:$0xff]  }
 0x2da   : > { %v2026_v17 = vadd.f32 %v2025_v16, %v6083_v62  ;;  %v2027_v18 = vpop.f32.mrb[19].mxu1  ;;  %2300 = vmatmul.mubr.bf16.gmra.mrb[44].mxu1 %v2098_v8  ;;  %v2076_v20 = vmax.f32 %v2022_v12, 0.0 }
 0x2db   : > { %v2028_v19 = vadd.f32 %v2027_v18, %v6086_v63  ;;  %2469 = vmatpush1.bf16.msra.mxu1 %v5150_v11  ;;  %v2077_v22 = vmax.f32 %v2024_v15, 0.0  ;;  %v6172_v15 = vld [vmem:[%s7081_s6] ss:$0 sm:$0xff] }
 0x2dc   : > { %v2078_v21 = vmax.f32 %v2026_v17, 0.0 }
 0x2dd   : > { %v2079_v23 = vmax.f32 %v2028_v19, 0.0 }
 0x2de   : > { %v2100_v24 = vpack.c.bf16 %v2078_v21, %v2076_v20  ;;  %v5156_v20 = vld [vmem:[%s7084_s9] ss:$8 sps:$4 sm:$0xff]  }
 0x2df   : > { %v2101_v25 = vpack.c.bf16 %v2079_v23, %v2077_v22  ;;  %v2031_v26 = vpop.f32.mrb[20].mxu1  ;;  %v5161_v23 = vld [vmem:[%s7084_s9 + $0x14] ss:$8 sps:$4 sm:$0xff]  }
 0x2e0   : > { %v2032_v27 = vadd.f32 %v2031_v26, %v6083_v62  ;;  %v2033_v28 = vpop.f32.mrb[21].mxu1 }
 0x2e1   : > { %v2034_v29 = vadd.f32 %v2033_v28, %v6086_v63  ;;  %v2035_v30 = vpop.f32.mrb[22].mxu1  ;;  %2307 = vmatprep.mubr.bf16.mxu1 %v2101_v25  ;;  %v5159_v28 = vld [vmem:[%s7084_s9 + $0x10] ss:$8 sps:$4 sm:$0xff]  }
 0x2e2   : > { %v2036_v31 = vadd.f32 %v2035_v30, %v6083_v62  ;;  %v2037_v32 = vpop.f32.mrb[23].mxu1  ;;  %2308 = vmatmul.mubr.bf16.gmra.mrb[48].mxu1 %v2100_v24  ;;  %v2080_v34 = vmax.f32 %v2032_v27, 0.0  ;;  %v5164_v30 = vld [vmem:[%s7084_s9 + $0x24] ss:$8 sps:$4 sm:$0xff]  }
 0x2e3   : > { %v2038_v33 = vadd.f32 %v2037_v32, %v6086_v63  ;;  %v2081_v36 = vmax.f32 %v2034_v29, 0.0 }
 0x2e4   : > { %v2082_v35 = vmax.f32 %v2036_v31, 0.0 }
 0x2e5   : > { %v2083_v37 = vmax.f32 %v2038_v33, 0.0  ;;  %v5162_v33 = vld [vmem:[%s7084_s9 + $0x20] ss:$8 sps:$4 sm:$0xff]  }
 0x2e6   : > { %v2102_v38 = vpack.c.bf16 %v2082_v35, %v2080_v34 }
 0x2e7   : > { %v2103_v39 = vpack.c.bf16 %v2083_v37, %v2081_v36  ;;  %v2041_v40 = vpop.f32.mrb[24].mxu1  ;;  %v5167_v36 = vld [vmem:[%s7084_s9 + $0x34] ss:$8 sps:$4 sm:$0xff]  }
 0x2e8   : > { %v2042_v41 = vadd.f32 %v2041_v40, %v6083_v62  ;;  %v2043_v42 = vpop.f32.mrb[25].mxu1 }
 0x2e9   : > { %v2044_v43 = vadd.f32 %v2043_v42, %v6086_v63  ;;  %v2045_v44 = vpop.f32.mrb[26].mxu1  ;;  %2315 = vmatprep.mubr.bf16.mxu1 %v2103_v39 }
 0x2ea   : > { %v2046_v47 = vadd.f32 %v2045_v44, %v6083_v62  ;;  %v2047_v51 = vpop.f32.mrb[27].mxu1  ;;  %2316 = vmatmul.mubr.bf16.gmra.mrb[52].mxu1 %v2102_v38  ;;  %v2084_v53 = vmax.f32 %v2042_v41, 0.0  ;;  %v5165_v41 = vld [vmem:[%s7084_s9 + $0x30] ss:$8 sps:$4 sm:$0xff]  }
 0x2eb   : > { %v2048_v52 = vadd.f32 %v2047_v51, %v6086_v63  ;;  %v2085_v55 = vmax.f32 %v2044_v43, 0.0  ;;  %v5170_v43 = vld [vmem:[%s7084_s9 + $0x44] ss:$8 sps:$4 sm:$0xff]   ;;  %v5168_v51 = vld [vmem:[%s7084_s9 + $0x40] ss:$8 sps:$4 sm:$0xff]  }
 0x2ec   : > { %v2086_v54 = vmax.f32 %v2046_v47, 0.0 }
 0x2ed   : > { %v2087_v56 = vmax.f32 %v2048_v52, 0.0 }
 0x2ee   : > { %v2104_v57 = vpack.c.bf16 %v2086_v54, %v2084_v53  ;;  %v5173_v54 = vld [vmem:[%s7084_s9 + $0x54] ss:$8 sps:$4 sm:$0xff]  }
 0x2ef   : > { %v2105_v58 = vpack.c.bf16 %v2087_v56, %v2085_v55  ;;  %v2051_v59 = vpop.f32.mrb[28].mxu1 }
 0x2f0   : > { %v2052_v60 = vadd.f32 %v2051_v59, %v6083_v62  ;;  %v2053_v49 = vpop.f32.mrb[29].mxu1  ;;  %v5171_v59 = vld [vmem:[%s7084_s9 + $0x50] ss:$8 sps:$4 sm:$0xff]  }
 0x2f1   : > { %v2054_v50 = vadd.f32 %v2053_v49, %v6086_v63  ;;  %v2055_v61 = vpop.f32.mrb[30].mxu1  ;;  %2323 = vmatprep.mubr.bf16.mxu1 %v2105_v58  ;;  %v5176_v49 = vld [vmem:[%s7084_s9 + $0x64] ss:$8 sps:$4 sm:$0xff]  }
 0x2f2   : > { %v2056_v0 = vadd.f32 %v2055_v61, %v6083_v62  ;;  %v2057_v1 = vpop.f32.mrb[31].mxu1  ;;  %2324 = vmatmul.mubr.bf16.gmra.mrb[56].mxu1 %v2104_v57  ;;  %v2088_v3 = vmax.f32 %v2052_v60, 0.0  ;;  %v5155_v62 = vld [vmem:[%s7082_s7 + $0x74] ss:$8 sps:$4 sm:$0xff]  }
 0x2f3   : > { %v2058_v2 = vadd.f32 %v2057_v1, %v6086_v63  ;;  %v2089_v5 = vmax.f32 %v2054_v50, 0.0  ;;  %2470 = vmatprep.subr.bf16.mxu1 %v5155_v62  ;;  %v5158_v63 = vld [vmem:[%s7084_s9 + $0x4] ss:$8 sps:$4 sm:$0xff]  }
 0x2f4   : > { %v2090_v4 = vmax.f32 %v2056_v0, 0.0  ;;  %2471 = vmatpush1.bf16.msra.mxu1 %v5153_v9  ;;  %v5174_v0 = vld [vmem:[%s7084_s9 + $0x60] ss:$8 sps:$4 sm:$0xff]   ;;  %v5182_v62 = vld [vmem:[%s7084_s9 + $0x84] ss:$8 sps:$4 sm:$0xff]  }
 0x2f5   : > { %v2091_v6 = vmax.f32 %v2058_v2, 0.0  ;;  %2821 = vmatprep.subr.bf16.mxu1 %v5158_v63 }
 0x2f6   : > { %v2106_v7 = vpack.c.bf16 %v2090_v4, %v2088_v3  ;;  %v5179_v3 = vld [vmem:[%s7084_s9 + $0x74] ss:$8 sps:$4 sm:$0xff]  }
 0x2f7   : > { %v2107_v8 = vpack.c.bf16 %v2091_v6, %v2089_v5 }
 0x2f9   : > { %2331 = vmatprep.mubr.bf16.mxu1 %v2107_v8  ;;  %v5177_v8 = vld [vmem:[%s7084_s9 + $0x70] ss:$8 sps:$4 sm:$0xff]  }
 0x2fa   : > { %2332 = vmatmul.mubr.bf16.gmra.mrb[60].mxu1 %v2106_v7 }
 0x2fb   : > { %2488 = vmatprep.mubr.bf16.mxu1 %v5372_v13 }
 0x395   : > { %v4671_v10 = vpop.f32.mrb[32].mxu1 }
 0x396   : > { %v4672_v11 = vpop.f32.mrb[33].mxu1 }
 0x397   : > { %v4673_v12 = vadd.f32 %v4672_v11, %v4671_v10  ;;  %v4674_v14 = vpop.f32.mrb[34].mxu1  ;;  %v5180_v11 = vld [vmem:[%s7084_s9 + $0x80] ss:$8 sps:$4 sm:$0xff]  }
 0x398   : > { %v4675_v16 = vpop.f32.mrb[35].mxu1 }
 0x399   : > { %v4676_v17 = vadd.f32 %v4675_v16, %v4674_v14  ;;  %v2278_v18 = vadd.f32 %v4673_v12, %v6172_v15  ;;  %v5185_v16 = vld [vmem:[%s7084_s9 + $0x94] ss:$8 sps:$4 sm:$0xff]  }
 0x39b   : > { %v2281_v19 = vadd.f32 %v4676_v17, %v6172_v15 }
 0x39d   : > { %v2340_v21 = vpack.c.bf16 %v2281_v19, %v2278_v18  ;;  %v4677_v22 = vpop.f32.mrb[36].mxu1 }
 0x39e   : > { %v4678_v24 = vpop.f32.mrb[37].mxu1 }
 0x39f   : > { %v4679_v25 = vadd.f32 %v4678_v24, %v4677_v22  ;;  %v4680_v26 = vpop.f32.mrb[38].mxu1  ;;  %2489 = vmatmul.mubr.bf16.vlgmr.msra.gmra.mrb[64].mxu1 %v2340_v21  ;;  %v5183_v21 = vld [vmem:[%s7084_s9 + $0x90] ss:$8 sps:$4 sm:$0xff]  }
 0x3a0   : > { %v4681_v27 = vpop.f32.mrb[39].mxu1  ;;  %2498 = vmatprep.mubr.bf16.mxu1 %v5372_v13  ;;  %2822 = vmatpush1.bf16.msra.mxu1 %v5156_v20 }
 0x3a1   : > { %v4682_v29 = vadd.f32 %v4681_v27, %v4680_v26  ;;  %2823 = vmatprep.subr.bf16.mxu1 %v5161_v23  ;;  %v2286_v31 = vadd.f32 %v4679_v25, %v6172_v15  ;;  %v5188_v23 = vld [vmem:[%s7084_s9 + $0xa4] ss:$8 sps:$4 sm:$0xff]   ;;  %v5186_v26 = vld [vmem:[%s7084_s9 + $0xa0] ss:$8 sps:$4 sm:$0xff]  }
 0x3a3   : > { %v2289_v32 = vadd.f32 %v4682_v29, %v6172_v15  ;;  %v5191_v29 = vld [vmem:[%s7084_s9 + $0xb4] ss:$8 sps:$4 sm:$0xff]  }
 0x3a4   : > { %2824 = vmatpush1.bf16.msra.mxu1 %v5159_v28 }
 0x3a5   : > { %v4683_v34 = vpop.f32.mrb[40].mxu1  ;;  %v2341_v35 = vpack.c.bf16 %v2289_v32, %v2286_v31  ;;  %2825 = vmatprep.subr.bf16.mxu1 %v5164_v30 }
 0x3a6   : > { %v4684_v37 = vpop.f32.mrb[41].mxu1 }
 0x3a7   : > { %v4685_v38 = vadd.f32 %v4684_v37, %v4683_v34  ;;  %v4686_v39 = vpop.f32.mrb[42].mxu1  ;;  %2499 = vmatmul.mubr.bf16.gmra.mrb[68].mxu1 %v2341_v35  ;;  %v5189_v34 = vld [vmem:[%s7084_s9 + $0xb0] ss:$8 sps:$4 sm:$0xff]  }
 0x3a8   : > { %v4687_v40 = vpop.f32.mrb[43].mxu1  ;;  %2508 = vmatprep.mubr.bf16.mxu1 %v5372_v13  ;;  %2826 = vmatpush1.bf16.msra.mxu1 %v5162_v33 }
 0x3a9   : > { %v4688_v42 = vadd.f32 %v4687_v40, %v4686_v39  ;;  %2827 = vmatprep.subr.bf16.mxu1 %v5167_v36  ;;  %v2294_v44 = vadd.f32 %v4685_v38, %v6172_v15  ;;  %v5194_v36 = vld [vmem:[%s7084_s9 + $0xc4] ss:$8 sps:$4 sm:$0xff]   ;;  %v5192_v39 = vld [vmem:[%s7084_s9 + $0xc0] ss:$8 sps:$4 sm:$0xff]  }
 0x3ab   : > { %v2297_v47 = vadd.f32 %v4688_v42, %v6172_v15  ;;  %v5197_v42 = vld [vmem:[%s7084_s9 + $0xd4] ss:$8 sps:$4 sm:$0xff]  }
 0x3ac   : > { %2828 = vmatpush1.bf16.msra.mxu1 %v5165_v41 }
 0x3ad   : > { %v4689_v52 = vpop.f32.mrb[44].mxu1  ;;  %v2342_v53 = vpack.c.bf16 %v2297_v47, %v2294_v44  ;;  %2829 = vmatprep.subr.bf16.mxu1 %v5170_v43 }
 0x3ae   : > { %v4690_v55 = vpop.f32.mrb[45].mxu1 }
 0x3af   : > { %v4691_v56 = vadd.f32 %v4690_v55, %v4689_v52  ;;  %v4692_v57 = vpop.f32.mrb[46].mxu1  ;;  %2509 = vmatmul.mubr.bf16.gmra.mrb[72].mxu1 %v2342_v53  ;;  %v5195_v52 = vld [vmem:[%s7084_s9 + $0xd0] ss:$8 sps:$4 sm:$0xff]  }
 0x3b0   : > { %v4693_v58 = vpop.f32.mrb[47].mxu1  ;;  %2518 = vmatprep.mubr.bf16.mxu1 %v5372_v13  ;;  %2830 = vmatpush1.bf16.msra.mxu1 %v5168_v51 }
 0x3b1   : > { %v4694_v60 = vadd.f32 %v4693_v58, %v4692_v57  ;;  %2831 = vmatprep.subr.bf16.mxu1 %v5173_v54  ;;  %v2302_v50 = vadd.f32 %v4691_v56, %v6172_v15  ;;  %v5200_v57 = vld [vmem:[%s7084_s9 + $0xe4] ss:$8 sps:$4 sm:$0xff]   ;;  %v5203_v58 = vld [vmem:[%s7084_s9 + $0xf4] ss:$8 sps:$4 sm:$0xff]  }
 0x3b3   : > { %v2305_v61 = vadd.f32 %v4694_v60, %v6172_v15  ;;  %v5206_v60 = vld [vmem:[%s7086_s11 + $0x4] ss:$28 sps:$4 sm:$0xff]  }
 0x3b4   : > { %2832 = vmatpush1.bf16.msra.mxu1 %v5171_v59  ;;  %v5204_v59 = vld [vmem:[%s7086_s11] ss:$28 sps:$4 sm:$0xff]   ;;  %3723 = vmatprep.subr.bf16.mxu0 %v5206_v60 }
 0x3b5   : > { %v4695_v1 = vpop.f32.mrb[48].mxu1  ;;  %v2343_v2 = vpack.c.bf16 %v2305_v61, %v2302_v50  ;;  %2833 = vmatprep.subr.bf16.mxu1 %v5176_v49  ;;  %v5209_v49 = vld [vmem:[%s7086_s11 + $0xc] ss:$28 sps:$4 sm:$0xff]   ;;  %v5212_v50 = vld [vmem:[%s7086_s11 + $0x3c] ss:$28 sps:$4 sm:$0xff]   ;;  %3724 = vmatpush1.bf16.msra.mxu0 %v5204_v59 }
 0x3b6   : > { %v4696_v4 = vpop.f32.mrb[49].mxu1  ;;  %v5210_v61 = vld [vmem:[%s7086_s11 + $0x38] ss:$28 sps:$4 sm:$0xff]   ;;  %3725 = vmatprep.subr.bf16.mxu0 %v5212_v50 }
 0x3b7   : > { %v4697_v5 = vadd.f32 %v4696_v4, %v4695_v1  ;;  %v4698_v6 = vpop.f32.mrb[50].mxu1  ;;  %2519 = vmatmul.mubr.bf16.gmra.mrb[76].mxu1 %v2343_v2  ;;  %v5216_v1 = vld [vmem:[%s7086_s11 + $0x70] ss:$28 sps:$4 sm:$0xff]   ;;  %v5230_v4 = vld [vmem:[%s7086_s11 + $0xe4] ss:$28 sps:$4 sm:$0xff]  }
 0x3b8   : > { %v4699_v7 = vpop.f32.mrb[51].mxu1  ;;  %2528 = vmatprep.mubr.bf16.mxu1 %v5372_v13  ;;  %2834 = vmatpush1.bf16.msra.mxu1 %v5174_v0  ;;  %v5218_v0 = vld [vmem:[%s7086_s11 + $0x74] ss:$28 sps:$4 sm:$0xff]   ;;  %v5224_v2 = vld [vmem:[%s7086_s11 + $0xac] ss:$28 sps:$4 sm:$0xff]  }
 0x3b9   : > { %v4700_v9 = vadd.f32 %v4699_v7, %v4698_v6  ;;  %2835 = vmatprep.subr.bf16.mxu1 %v5179_v3  ;;  %v2310_v63 = vadd.f32 %v4697_v5, %v6172_v15  ;;  %3726 = vmatpush1.bf16.msra.mxu0 %v5210_v61  ;;  %v5222_v3 = vld [vmem:[%s7086_s11 + $0xa8] ss:$28 sps:$4 sm:$0xff]   ;;  %v5228_v5 = vld [vmem:[%s7086_s11 + $0xe0] ss:$28 sps:$4 sm:$0xff]   ;;  %v5234_v7 = vld [vmem:[%s7086_s11 + $0x118] ss:$28 sps:$4 sm:$0xff]  }
 0x3ba   : > { %3727 = vmatprep.subr.bf16.mxu0 %v5218_v0  ;;  %v5236_v6 = vld [vmem:[%s7086_s11 + $0x11c] ss:$28 sps:$4 sm:$0xff]  }
 0x3bb   : > { %v2313_v10 = vadd.f32 %v4700_v9, %v6172_v15  ;;  %v5240_v9 = vld [vmem:[%s7086_s11 + $0x150] ss:$28 sps:$4 sm:$0xff]   ;;  %v5219_v61 = vld [vmem:[%s7086_s11 + $0x78] ss:$28 sps:$4 sm:$0xff]  }
 0x3bc   : > { %2836 = vmatpush1.bf16.msra.mxu1 %v5177_v8  ;;  %v5242_v8 = vld [vmem:[%s7086_s11 + $0x154] ss:$28 sps:$4 sm:$0xff]  }
 0x3bd   : > { %v4701_v12 = vpop.f32.mrb[52].mxu1  ;;  %v2344_v14 = vpack.c.bf16 %v2313_v10, %v2310_v63  ;;  %2837 = vmatprep.subr.bf16.mxu1 %v5182_v62  ;;  %3728 = vmatpush1.bf16.msra.mxu0 %v5216_v1  ;;  %v5248_v62 = vld [vmem:[%s7086_s11 + $0x18c] ss:$28 sps:$4 sm:$0xff]   ;;  %v5254_v10 = vld [vmem:[%s7086_s11 + $0x1c4] ss:$28 sps:$4 sm:$0xff]  }
 0x3be   : > { %v4702_v17 = vpop.f32.mrb[53].mxu1  ;;  %3729 = vmatprep.subr.bf16.mxu0 %v5224_v2  ;;  %v5246_v63 = vld [vmem:[%s7086_s11 + $0x188] ss:$28 sps:$4 sm:$0xff]   ;;  %v5227_v2 = vld [vmem:[%s7086_s11 + $0xb4] ss:$28 sps:$4 sm:$0xff]  }
 0x3bf   : > { %v4703_v18 = vadd.f32 %v4702_v17, %v4701_v12  ;;  %v4704_v19 = vpop.f32.mrb[54].mxu1  ;;  %2529 = vmatmul.mubr.bf16.gmra.mrb[80].mxu1 %v2344_v14  ;;  %v5260_v12 = vld [vmem:[%s7086_s11 + $0x1fc] ss:$28 sps:$4 sm:$0xff]   ;;  %v5264_v17 = vld [vmem:[%s7086_s11 + $0x230] ss:$28 sps:$4 sm:$0xff]  }
 0x3c0   : > { %v4705_v20 = vpop.f32.mrb[55].mxu1  ;;  %2538 = vmatprep.mubr.bf16.mxu1 %v5372_v13  ;;  %2838 = vmatpush1.bf16.msra.mxu1 %v5180_v11  ;;  %v5252_v11 = vld [vmem:[%s7086_s11 + $0x1c0] ss:$28 sps:$4 sm:$0xff]   ;;  %v5258_v14 = vld [vmem:[%s7086_s11 + $0x1f8] ss:$28 sps:$4 sm:$0xff]  }
 0x3c1   : > { %v4706_v22 = vadd.f32 %v4705_v20, %v4704_v19  ;;  %2839 = vmatprep.subr.bf16.mxu1 %v5185_v16  ;;  %v2318_v24 = vadd.f32 %v4703_v18, %v6172_v15  ;;  %3730 = vmatpush1.bf16.msra.mxu0 %v5222_v3  ;;  %v5266_v16 = vld [vmem:[%s7086_s11 + $0x234] ss:$28 sps:$4 sm:$0xff]   ;;  %v5272_v18 = vld [vmem:[%s7086_s11 + $0x26c] ss:$28 sps:$4 sm:$0xff]   ;;  %v5278_v20 = vld [vmem:[%s7086_s11 + $0x2a4] ss:$28 sps:$4 sm:$0xff]  }
 0x3c2   : > { %3731 = vmatprep.subr.bf16.mxu0 %v5230_v4  ;;  %v5270_v19 = vld [vmem:[%s7086_s11 + $0x268] ss:$28 sps:$4 sm:$0xff]  }
 0x3c3   : > { %v2321_v25 = vadd.f32 %v4706_v22, %v6172_v15  ;;  %v5284_v22 = vld [vmem:[%s7086_s11 + $0x2dc] ss:$28 sps:$4 sm:$0xff]  }
 0x3c4   : > { %2840 = vmatpush1.bf16.msra.mxu1 %v5183_v21  ;;  %v5276_v21 = vld [vmem:[%s7086_s11 + $0x2a0] ss:$28 sps:$4 sm:$0xff]  }
 0x3c5   : > { %v4707_v27 = vpop.f32.mrb[56].mxu1  ;;  %v2345_v28 = vpack.c.bf16 %v2321_v25, %v2318_v24  ;;  %2841 = vmatprep.subr.bf16.mxu1 %v5188_v23  ;;  %3732 = vmatpush1.bf16.msra.mxu0 %v5228_v5  ;;  %v5282_v23 = vld [vmem:[%s7086_s11 + $0x2d8] ss:$28 sps:$4 sm:$0xff]   ;;  %v2364_v24 = vld [vmem:[%s7083_s8] sm:$0x3] }
 0x3c6   : > { %v4708_v30 = vpop.f32.mrb[57].mxu1  ;;  %3733 = vmatprep.subr.bf16.mxu0 %v5236_v6  ;;  %v6381_v25 = vrot.slane %v2364_v24, %v5985_v46 }
 0x3c7   : > { %v4709_v31 = vadd.f32 %v4708_v30, %v4707_v27  ;;  %v4710_v32 = vpop.f32.mrb[58].mxu1  ;;  %2539 = vmatmul.mubr.bf16.gmra.mrb[84].mxu1 %v2345_v28 }
 0x3c8   : > { %v4711_v33 = vpop.f32.mrb[59].mxu1  ;;  %2548 = vmatprep.mubr.bf16.mxu1 %v5372_v13  ;;  %2842 = vmatpush1.bf16.msra.mxu1 %v5186_v26  ;;  %v6384_v26 = vrot.slane %v2364_v24, %v5991_v48 }
 0x3c9   : > { %v4712_v35 = vadd.f32 %v4711_v33, %v4710_v32  ;;  %2843 = vmatprep.subr.bf16.mxu1 %v5191_v29  ;;  %v2326_v37 = vadd.f32 %v4709_v31, %v6172_v15  ;;  %3734 = vmatpush1.bf16.msra.mxu0 %v5234_v7 }
 0x3ca   : > { %3735 = vmatprep.subr.bf16.mxu0 %v5242_v8  ;;  %v5225_v8 = vld [vmem:[%s7086_s11 + $0xb0] ss:$28 sps:$4 sm:$0xff]  }
 0x3cb   : > { %v2329_v38 = vadd.f32 %v4712_v35, %v6172_v15 }
 0x3cc   : > { %2844 = vmatpush1.bf16.msra.mxu1 %v5189_v34 }
 0x3cd   : > { %v4713_v40 = vpop.f32.mrb[60].mxu1  ;;  %v2346_v41 = vpack.c.bf16 %v2329_v38, %v2326_v37  ;;  %2845 = vmatprep.subr.bf16.mxu1 %v5194_v36  ;;  %3736 = vmatpush1.bf16.msra.mxu0 %v5240_v9 }
 0x3ce   : > { %v4714_v43 = vpop.f32.mrb[61].mxu1  ;;  %3737 = vmatprep.subr.bf16.mxu0 %v5248_v62 }
 0x3cf   : > { %v4715_v44 = vadd.f32 %v4714_v43, %v4713_v40  ;;  %v4716_v47 = vpop.f32.mrb[62].mxu1  ;;  %2549 = vmatmul.mubr.bf16.gmra.mrb[88].mxu1 %v2346_v41 }
 0x3d0   : > { %v4717_v51 = vpop.f32.mrb[63].mxu1  ;;  %2558 = vmatprep.mubr.bf16.mxu1 %v5372_v13  ;;  %2846 = vmatpush1.bf16.msra.mxu1 %v5192_v39  ;;  %v5198_v13 = vld [vmem:[%s7084_s9 + $0xe0] ss:$8 sps:$4 sm:$0xff]  }
 0x3d1   : > { %v4718_v53 = vadd.f32 %v4717_v51, %v4716_v47  ;;  %2847 = vmatprep.subr.bf16.mxu1 %v5197_v42  ;;  %v2334_v54 = vadd.f32 %v4715_v44, %v6172_v15  ;;  %3738 = vmatpush1.bf16.msra.mxu0 %v5246_v63  ;;  %v5207_v42 = vld [vmem:[%s7086_s11 + $0x8] ss:$28 sps:$4 sm:$0xff]  }
 0x3d2   : > { %3739 = vmatprep.subr.bf16.mxu0 %v5254_v10  ;;  %v5215_v47 = vld [vmem:[%s7086_s11 + $0x44] ss:$28 sps:$4 sm:$0xff]   ;;  %v5233_v63 = vld [vmem:[%s7086_s11 + $0xec] ss:$28 sps:$4 sm:$0xff]  }
 0x3d3   : > { %v2337_v55 = vadd.f32 %v4718_v53, %v6172_v15  ;;  %v5201_v15 = vld [vmem:[%s7084_s9 + $0xf0] ss:$8 sps:$4 sm:$0xff]  }
 0x3d4   : > { %2848 = vmatpush1.bf16.msra.mxu1 %v5195_v52 }
 0x3d5   : > { %v2347_v56 = vpack.c.bf16 %v2337_v55, %v2334_v54  ;;  %2849 = vmatprep.subr.bf16.mxu1 %v5200_v57  ;;  %3740 = vmatpush1.bf16.msra.mxu0 %v5252_v11 }
 0x3d6   : > { %3741 = vmatprep.subr.bf16.mxu0 %v5260_v12 }
 0x3d7   : > { %2559 = vmatmul.mubr.bf16.gmra.mrb[92].mxu1 %v2347_v56  ;;  %v5213_v56 = vld [vmem:[%s7086_s11 + $0x40] ss:$28 sps:$4 sm:$0xff]  }
 0x3d8   : > { %2850 = vmatpush1.bf16.msra.mxu1 %v5198_v13 }
 0x3d9   : > { %2851 = vmatprep.subr.bf16.mxu1 %v5203_v58  ;;  %3742 = vmatpush1.bf16.msra.mxu0 %v5258_v14  ;;  %v5221_v58 = vld [vmem:[%s7086_s11 + $0x7c] ss:$28 sps:$4 sm:$0xff]  }
 0x3da   : > { %3743 = vmatprep.subr.bf16.mxu0 %v5266_v16 }
 0x3dc   : > { %2852 = vmatpush1.bf16.msra.mxu1 %v5201_v15 }
 0x3dd   : > { %3836 = vmatprep.subr.bf16.mxu1 %v5209_v49  ;;  %3744 = vmatpush1.bf16.msra.mxu0 %v5264_v17  ;;  %v5231_v17 = vld [vmem:[%s7086_s11 + $0xe8] ss:$28 sps:$4 sm:$0xff]  }
 0x3de   : > { %3745 = vmatprep.subr.bf16.mxu0 %v5272_v18 }
 0x3e1   : > { %3746 = vmatpush1.bf16.msra.mxu0 %v5270_v19 }
 0x3e2   : > { %3747 = vmatprep.subr.bf16.mxu0 %v5278_v20  ;;  %v5239_v20 = vld [vmem:[%s7086_s11 + $0x124] ss:$28 sps:$4 sm:$0xff]  }
 0x3e5   : > { %3748 = vmatpush1.bf16.msra.mxu0 %v5276_v21 }
 0x3e6   : > { %3749 = vmatprep.subr.bf16.mxu0 %v5284_v22 }
 0x3e9   : > { %3750 = vmatpush1.bf16.msra.mxu0 %v5282_v23 }
 0x472   : > { %v2490_v27 = vpop.f32.mrb[64].mxu1 }
 0x473   : > { %v2491_v28 = vadd.f32 %v2490_v27, %v6381_v25  ;;  %v2492_v29 = vpop.f32.mrb[65].mxu1 }
 0x474   : > { %v2493_v30 = vadd.f32 %v2492_v29, %v6384_v26  ;;  %v2494_v31 = vpop.f32.mrb[66].mxu1 }
 0x475   : > { %v2495_v32 = vadd.f32 %v2494_v31, %v6381_v25  ;;  %v2496_v33 = vpop.f32.mrb[67].mxu1  ;;  %v2569_v35 = vmax.f32 %v2491_v28, 0.0  ;;  %v5237_v28 = vld [vmem:[%s7086_s11 + $0x120] ss:$28 sps:$4 sm:$0xff]  }
 0x476   : > { %v2497_v34 = vadd.f32 %v2496_v33, %v6384_v26  ;;  %v2570_v37 = vmax.f32 %v2493_v30, 0.0  ;;  %v5245_v31 = vld [vmem:[%s7086_s11 + $0x15c] ss:$28 sps:$4 sm:$0xff]  }
 0x477   : > { %v2571_v36 = vmax.f32 %v2495_v32, 0.0 }
 0x478   : > { %v2572_v38 = vmax.f32 %v2497_v34, 0.0 }
 0x479   : > { %v2601_v39 = vpack.c.bf16 %v2571_v36, %v2569_v35 }
 0x47a   : > { %v2602_v40 = vpack.c.bf16 %v2572_v38, %v2570_v37  ;;  %v2500_v41 = vpop.f32.mrb[68].mxu1  ;;  %v5243_v37 = vld [vmem:[%s7086_s11 + $0x158] ss:$28 sps:$4 sm:$0xff]  }
 0x47b   : > { %v2501_v43 = vadd.f32 %v2500_v41, %v6381_v25  ;;  %v2502_v44 = vpop.f32.mrb[69].mxu1 }
 0x47c   : > { %v2503_v51 = vadd.f32 %v2502_v44, %v6384_v26  ;;  %v2504_v52 = vpop.f32.mrb[70].mxu1  ;;  %2853 = vmatprep.mubr.bf16.mxu1 %v2602_v40  ;;  %v5251_v40 = vld [vmem:[%s7086_s11 + $0x194] ss:$28 sps:$4 sm:$0xff]  }
 0x47d   : > { %v2505_v53 = vadd.f32 %v2504_v52, %v6381_v25  ;;  %v2506_v54 = vpop.f32.mrb[71].mxu1  ;;  %2854 = vmatmul.mubr.bf16.vlgmr.msra.gmra.mrb[96].mxu1 %v2601_v39  ;;  %v2573_v57 = vmax.f32 %v2501_v43, 0.0 }
 0x47e   : > { %v2507_v55 = vadd.f32 %v2506_v54, %v6384_v26  ;;  %3837 = vmatpush1.bf16.msra.mxu1 %v5207_v42  ;;  %v2574_v15 = vmax.f32 %v2503_v51, 0.0  ;;  %v5249_v51 = vld [vmem:[%s7086_s11 + $0x190] ss:$28 sps:$4 sm:$0xff]  }
 0x47f   : > { %v2575_v13 = vmax.f32 %v2505_v53, 0.0  ;;  %3838 = vmatprep.subr.bf16.mxu1 %v5215_v47  ;;  %v5257_v54 = vld [vmem:[%s7086_s11 + $0x1cc] ss:$28 sps:$4 sm:$0xff]  }
 0x480   : > { %v2576_v59 = vmax.f32 %v2507_v55, 0.0 }
 0x481   : > { %v2603_v60 = vpack.c.bf16 %v2575_v13, %v2573_v57 }
 0x482   : > { %v2604_v49 = vpack.c.bf16 %v2576_v59, %v2574_v15  ;;  %v2510_v50 = vpop.f32.mrb[72].mxu1  ;;  %3839 = vmatpush1.bf16.msra.mxu1 %v5213_v56  ;;  %v5255_v15 = vld [vmem:[%s7086_s11 + $0x1c8] ss:$28 sps:$4 sm:$0xff]  }
 0x483   : > { %v2511_v0 = vadd.f32 %v2510_v50, %v6381_v25  ;;  %v2512_v1 = vpop.f32.mrb[73].mxu1  ;;  %3840 = vmatprep.subr.bf16.mxu1 %v5221_v58 }
 0x484   : > { %v2513_v3 = vadd.f32 %v2512_v1, %v6384_v26  ;;  %v2514_v4 = vpop.f32.mrb[74].mxu1  ;;  %2863 = vmatprep.mubr.bf16.mxu1 %v2604_v49  ;;  %v5263_v49 = vld [vmem:[%s7086_s11 + $0x204] ss:$28 sps:$4 sm:$0xff]  }
 0x485   : > { %v2515_v5 = vadd.f32 %v2514_v4, %v6381_v25  ;;  %v2516_v6 = vpop.f32.mrb[75].mxu1  ;;  %2864 = vmatmul.mubr.bf16.gmra.mrb[100].mxu1 %v2603_v60  ;;  %v2577_v9 = vmax.f32 %v2511_v0, 0.0 }
 0x486   : > { %v2517_v7 = vadd.f32 %v2516_v6, %v6384_v26  ;;  %3841 = vmatpush1.bf16.msra.mxu1 %v5219_v61  ;;  %v2578_v10 = vmax.f32 %v2513_v3, 0.0  ;;  %v5261_v3 = vld [vmem:[%s7086_s11 + $0x200] ss:$28 sps:$4 sm:$0xff]  }
 0x487   : > { %v2579_v62 = vmax.f32 %v2515_v5, 0.0  ;;  %3842 = vmatprep.subr.bf16.mxu1 %v5227_v2  ;;  %v5269_v6 = vld [vmem:[%s7086_s11 + $0x23c] ss:$28 sps:$4 sm:$0xff]  }
 0x488   : > { %v2580_v11 = vmax.f32 %v2517_v7, 0.0 }
 0x489   : > { %v2605_v12 = vpack.c.bf16 %v2579_v62, %v2577_v9 }
 0x48a   : > { %v2606_v14 = vpack.c.bf16 %v2580_v11, %v2578_v10  ;;  %v2520_v16 = vpop.f32.mrb[76].mxu1  ;;  %3843 = vmatpush1.bf16.msra.mxu1 %v5225_v8  ;;  %v5267_v10 = vld [vmem:[%s7086_s11 + $0x238] ss:$28 sps:$4 sm:$0xff]  }
 0x48b   : > { %v2521_v18 = vadd.f32 %v2520_v16, %v6381_v25  ;;  %v2522_v19 = vpop.f32.mrb[77].mxu1  ;;  %3844 = vmatprep.subr.bf16.mxu1 %v5233_v63 }
 0x48c   : > { %v2523_v21 = vadd.f32 %v2522_v19, %v6384_v26  ;;  %v2524_v22 = vpop.f32.mrb[78].mxu1  ;;  %2873 = vmatprep.mubr.bf16.mxu1 %v2606_v14  ;;  %v5275_v14 = vld [vmem:[%s7086_s11 + $0x274] ss:$28 sps:$4 sm:$0xff]  }
 0x48d   : > { %v2525_v23 = vadd.f32 %v2524_v22, %v6381_v25  ;;  %v2526_v24 = vpop.f32.mrb[79].mxu1  ;;  %2874 = vmatmul.mubr.bf16.gmra.mrb[104].mxu1 %v2605_v12  ;;  %v2581_v29 = vmax.f32 %v2521_v18, 0.0 }
 0x48e   : > { %v2527_v27 = vadd.f32 %v2526_v24, %v6384_v26  ;;  %3845 = vmatpush1.bf16.msra.mxu1 %v5231_v17  ;;  %v2582_v32 = vmax.f32 %v2523_v21, 0.0  ;;  %v5273_v21 = vld [vmem:[%s7086_s11 + $0x270] ss:$28 sps:$4 sm:$0xff]  }
 0x48f   : > { %v2583_v30 = vmax.f32 %v2525_v23, 0.0  ;;  %3846 = vmatprep.subr.bf16.mxu1 %v5239_v20  ;;  %v5281_v24 = vld [vmem:[%s7086_s11 + $0x2ac] ss:$28 sps:$4 sm:$0xff]  }
 0x490   : > { %v2584_v33 = vmax.f32 %v2527_v27, 0.0 }
 0x491   : > { %v2607_v34 = vpack.c.bf16 %v2583_v30, %v2581_v29 }
 0x492   : > { %v2608_v35 = vpack.c.bf16 %v2584_v33, %v2582_v32  ;;  %v2530_v36 = vpop.f32.mrb[80].mxu1  ;;  %3847 = vmatpush1.bf16.msra.mxu1 %v5237_v28  ;;  %v5279_v32 = vld [vmem:[%s7086_s11 + $0x2a8] ss:$28 sps:$4 sm:$0xff]  }
 0x493   : > { %v2531_v38 = vadd.f32 %v2530_v36, %v6381_v25  ;;  %v2532_v39 = vpop.f32.mrb[81].mxu1  ;;  %3848 = vmatprep.subr.bf16.mxu1 %v5245_v31 }
 0x494   : > { %v2533_v41 = vadd.f32 %v2532_v39, %v6384_v26  ;;  %v2534_v42 = vpop.f32.mrb[82].mxu1  ;;  %2883 = vmatprep.mubr.bf16.mxu1 %v2608_v35  ;;  %v5287_v35 = vld [vmem:[%s7086_s11 + $0x2e4] ss:$28 sps:$4 sm:$0xff]  }
 0x495   : > { %v2535_v43 = vadd.f32 %v2534_v42, %v6381_v25  ;;  %v2536_v44 = vpop.f32.mrb[83].mxu1  ;;  %2884 = vmatmul.mubr.bf16.gmra.mrb[108].mxu1 %v2607_v34  ;;  %v2585_v52 = vmax.f32 %v2531_v38, 0.0 }
 0x496   : > { %v2537_v47 = vadd.f32 %v2536_v44, %v6384_v26  ;;  %3849 = vmatpush1.bf16.msra.mxu1 %v5243_v37  ;;  %v2586_v55 = vmax.f32 %v2533_v41, 0.0  ;;  %v5285_v41 = vld [vmem:[%s7086_s11 + $0x2e0] ss:$28 sps:$4 sm:$0xff]  }
 0x497   : > { %v2587_v53 = vmax.f32 %v2535_v43, 0.0  ;;  %3850 = vmatprep.subr.bf16.mxu1 %v5251_v40 }
 0x498   : > { %v2588_v56 = vmax.f32 %v2537_v47, 0.0 }
 0x499   : > { %v2609_v57 = vpack.c.bf16 %v2587_v53, %v2585_v52  ;;  %v5288_v53 = vld [vmem:[%s7086_s11 + $0x310] ss:$28 sps:$4 sm:$0xff]  }
 0x49a   : > { %v2610_v13 = vpack.c.bf16 %v2588_v56, %v2586_v55  ;;  %v2540_v58 = vpop.f32.mrb[84].mxu1  ;;  %3851 = vmatpush1.bf16.msra.mxu1 %v5249_v51  ;;  %v5296_v55 = vld [vmem:[%s7086_s11 + $0x34c] ss:$28 sps:$4 sm:$0xff]   ;;  %v5299_v56 = vld [vmem:[%s7086_s11 + $0x354] ss:$28 sps:$4 sm:$0xff]  }
 0x49b   : > { %v2541_v59 = vadd.f32 %v2540_v58, %v6381_v25  ;;  %v2542_v60 = vpop.f32.mrb[85].mxu1  ;;  %3852 = vmatprep.subr.bf16.mxu1 %v5257_v54  ;;  %v5291_v54 = vld [vmem:[%s7086_s11 + $0x318] ss:$28 sps:$4 sm:$0xff]  }
 0x49c   : > { %v2543_v50 = vadd.f32 %v2542_v60, %v6384_v26  ;;  %v2544_v61 = vpop.f32.mrb[86].mxu1  ;;  %2893 = vmatprep.mubr.bf16.mxu1 %v2610_v13  ;;  %v5297_v13 = vld [vmem:[%s7086_s11 + $0x350] ss:$28 sps:$4 sm:$0xff]  }
 0x49d   : > { %v2545_v0 = vadd.f32 %v2544_v61, %v6381_v25  ;;  %v2546_v1 = vpop.f32.mrb[87].mxu1  ;;  %2894 = vmatmul.mubr.bf16.gmra.mrb[112].mxu1 %v2609_v57  ;;  %v2589_v4 = vmax.f32 %v2541_v59, 0.0  ;;  %v5294_v57 = vld [vmem:[%s7086_s11 + $0x348] ss:$28 sps:$4 sm:$0xff]   ;;  %v5302_v58 = vld [vmem:[%s7086_s11 + $0x14] ss:$28 sps:$4 sm:$0xff]  }
 0x49e   : > { %v2547_v2 = vadd.f32 %v2546_v1, %v6384_v26  ;;  %3853 = vmatpush1.bf16.msra.mxu1 %v5255_v15  ;;  %v2590_v7 = vmax.f32 %v2543_v50, 0.0  ;;  %v5303_v15 = vld [vmem:[%s7086_s11 + $0x1d8] ss:$28 sps:$4 sm:$0xff]   ;;  %v2649_v59 = vld [vmem:[%s7085_s10] sm:$0x3] }
 0x49f   : > { %v2591_v5 = vmax.f32 %v2545_v0, 0.0  ;;  %3854 = vmatprep.subr.bf16.mxu1 %v5263_v49  ;;  %v6533_v60 = vrot.slane %v2649_v59, %v5985_v46  ;;  %v6536_v49 = vrot.slane %v2649_v59, %v5991_v48 }
 0x4a0   : > { %v2592_v8 = vmax.f32 %v2547_v2, 0.0 }
 0x4a1   : > { %v2611_v9 = vpack.c.bf16 %v2591_v5, %v2589_v4 }
 0x4a2   : > { %v2612_v62 = vpack.c.bf16 %v2592_v8, %v2590_v7  ;;  %v2550_v63 = vpop.f32.mrb[88].mxu1  ;;  %3855 = vmatpush1.bf16.msra.mxu1 %v5261_v3 }
 0x4a3   : > { %v2551_v11 = vadd.f32 %v2550_v63, %v6381_v25  ;;  %v2552_v12 = vpop.f32.mrb[89].mxu1  ;;  %3856 = vmatprep.subr.bf16.mxu1 %v5269_v6 }
 0x4a4   : > { %v2553_v16 = vadd.f32 %v2552_v12, %v6384_v26  ;;  %v2554_v17 = vpop.f32.mrb[90].mxu1  ;;  %2903 = vmatprep.mubr.bf16.mxu1 %v2612_v62  ;;  %v5304_v12 = vld [vmem:[%s7086_s11 + $0x18] ss:$28 sps:$4 sm:$0xff]  }
 0x4a5   : > { %v2555_v18 = vadd.f32 %v2554_v17, %v6381_v25  ;;  %v2556_v19 = vpop.f32.mrb[91].mxu1  ;;  %2904 = vmatmul.mubr.bf16.gmra.mrb[116].mxu1 %v2611_v9  ;;  %v2593_v22 = vmax.f32 %v2551_v11, 0.0  ;;  %v5300_v11 = vld [vmem:[%s7086_s11 + $0x10] ss:$28 sps:$4 sm:$0xff]  }
 0x4a6   : > { %v2557_v20 = vadd.f32 %v2556_v19, %v6384_v26  ;;  %3857 = vmatpush1.bf16.msra.mxu1 %v5267_v10  ;;  %v2594_v27 = vmax.f32 %v2553_v16, 0.0  ;;  %v5307_v17 = vld [vmem:[%s7086_s11 + $0x4c] ss:$28 sps:$4 sm:$0xff]  }
 0x4a7   : > { %v2595_v23 = vmax.f32 %v2555_v18, 0.0  ;;  %3858 = vmatprep.subr.bf16.mxu1 %v5275_v14  ;;  %v5311_v18 = vld [vmem:[%s7086_s11 + $0x210] ss:$28 sps:$4 sm:$0xff]  }
 0x4a8   : > { %v2596_v28 = vmax.f32 %v2557_v20, 0.0 }
 0x4a9   : > { %v2613_v29 = vpack.c.bf16 %v2595_v23, %v2593_v22 }
 0x4aa   : > { %v2614_v30 = vpack.c.bf16 %v2596_v28, %v2594_v27  ;;  %v2560_v31 = vpop.f32.mrb[92].mxu1  ;;  %3859 = vmatpush1.bf16.msra.mxu1 %v5273_v21  ;;  %v5312_v27 = vld [vmem:[%s7086_s11 + $0x50] ss:$28 sps:$4 sm:$0xff]  }
 0x4ab   : > { %v2561_v33 = vadd.f32 %v2560_v31, %v6381_v25  ;;  %v2562_v34 = vpop.f32.mrb[93].mxu1  ;;  %3860 = vmatprep.subr.bf16.mxu1 %v5281_v24  ;;  %v5305_v24 = vld [vmem:[%s7086_s11 + $0x48] ss:$28 sps:$4 sm:$0xff]  }
 0x4ac   : > { %v2563_v36 = vadd.f32 %v2562_v34, %v6384_v26  ;;  %v2564_v37 = vpop.f32.mrb[94].mxu1  ;;  %2913 = vmatprep.mubr.bf16.mxu1 %v2614_v30  ;;  %v5310_v30 = vld [vmem:[%s7086_s11 + $0x84] ss:$28 sps:$4 sm:$0xff]  }
 0x4ad   : > { %v2565_v38 = vadd.f32 %v2564_v37, %v6381_v25  ;;  %v2566_v39 = vpop.f32.mrb[95].mxu1  ;;  %2914 = vmatmul.mubr.bf16.gmra.mrb[120].mxu1 %v2613_v29  ;;  %v2597_v42 = vmax.f32 %v2561_v33, 0.0  ;;  %v5290_v25 = vld [vmem:[%s7086_s11 + $0x314] ss:$28 sps:$4 sm:$0xff]   ;;  %v5319_v31 = vld [vmem:[%s7086_s11 + $0x248] ss:$28 sps:$4 sm:$0xff]  }
 0x4ae   : > { %v2567_v40 = vadd.f32 %v2566_v39, %v6384_v26  ;;  %3861 = vmatpush1.bf16.msra.mxu1 %v5279_v32  ;;  %v2598_v44 = vmax.f32 %v2563_v36, 0.0  ;;  %v5293_v26 = vld [vmem:[%s7086_s11 + $0x31c] ss:$28 sps:$4 sm:$0xff]   ;;  %3751 = vmatprep.subr.bf16.mxu0 %v5290_v25 }
 0x4af   : > { %v2599_v43 = vmax.f32 %v2565_v38, 0.0  ;;  %3862 = vmatprep.subr.bf16.mxu1 %v5287_v35  ;;  %3752 = vmatpush1.bf16.msra.mxu0 %v5288_v53  ;;  %v5308_v37 = vld [vmem:[%s7086_s11 + $0x80] ss:$28 sps:$4 sm:$0xff]   ;;  %v5320_v38 = vld [vmem:[%s7086_s11 + $0x88] ss:$28 sps:$4 sm:$0xff]  }
 0x4b0   : > { %v2600_v47 = vmax.f32 %v2567_v40, 0.0  ;;  %3753 = vmatprep.subr.bf16.mxu0 %v5296_v55  ;;  %v5313_v25 = vld [vmem:[%s7086_s11 + $0xb8] ss:$28 sps:$4 sm:$0xff]  }
 0x4b1   : > { %v2615_v51 = vpack.c.bf16 %v2599_v43, %v2597_v42  ;;  %v5327_v42 = vld [vmem:[%s7086_s11 + $0x280] ss:$28 sps:$4 sm:$0xff]   ;;  %v5318_v55 = vld [vmem:[%s7086_s11 + $0xf4] ss:$28 sps:$4 sm:$0xff]  }
 0x4b2   : > { %v2616_v52 = vpack.c.bf16 %v2600_v47, %v2598_v44  ;;  %3863 = vmatpush1.bf16.msra.mxu1 %v5285_v41  ;;  %v5315_v41 = vld [vmem:[%s7086_s11 + $0xbc] ss:$28 sps:$4 sm:$0xff]  }
 0x4b3   : > { %3864 = vmatprep.subr.bf16.mxu1 %v5293_v26  ;;  %3754 = vmatpush1.bf16.msra.mxu0 %v5294_v57  ;;  %v5328_v26 = vld [vmem:[%s7086_s11 + $0xc0] ss:$28 sps:$4 sm:$0xff]  }
 0x4b4   : > { %2923 = vmatprep.mubr.bf16.mxu1 %v2616_v52  ;;  %3949 = vmatprep.subr.bf16.mxu0 %v5302_v58 }
 0x4b5   : > { %2924 = vmatmul.mubr.bf16.gmra.mrb[124].mxu1 %v2615_v51 }
 0x4b6   : > { %3865 = vmatpush1.bf16.msra.mxu1 %v5291_v54 }
 0x4b7   : > { %3866 = vmatprep.subr.bf16.mxu1 %v5299_v56  ;;  %v5335_v56 = vld [vmem:[%s7086_s11 + $0x2b8] ss:$28 sps:$4 sm:$0xff]  }
 0x4ba   : > { %3867 = vmatpush1.bf16.msra.mxu1 %v5297_v13 }
 0x4bb   : > { %4719 = vmatprep.subr.bf16.mxu1 %v5303_v15 }
 0x550   : > { %v2855_v50 = vpop.f32.mrb[96].mxu1 }
 0x551   : > { %v2856_v61 = vadd.f32 %v2855_v50, %v6533_v60  ;;  %v2857_v0 = vpop.f32.mrb[97].mxu1  ;;  %v5316_v50 = vld [vmem:[%s7086_s11 + $0xf0] ss:$28 sps:$4 sm:$0xff]  }
 0x552   : > { %v2858_v1 = vadd.f32 %v2857_v0, %v6536_v49  ;;  %v2859_v2 = vpop.f32.mrb[98].mxu1 }
 0x553   : > { %v2860_v3 = vadd.f32 %v2859_v2, %v6533_v60  ;;  %v2861_v4 = vpop.f32.mrb[99].mxu1  ;;  %v2934_v6 = vmax.f32 %v2856_v61, 0.0  ;;  %v5336_v61 = vld [vmem:[%s7086_s11 + $0xf8] ss:$28 sps:$4 sm:$0xff]   ;;  %v5323_v2 = vld [vmem:[%s7086_s11 + $0x12c] ss:$28 sps:$4 sm:$0xff]  }
 0x554   : > { %v2862_v5 = vadd.f32 %v2861_v4, %v6536_v49  ;;  %v2935_v8 = vmax.f32 %v2858_v1, 0.0 }
 0x555   : > { %v2936_v7 = vmax.f32 %v2860_v3, 0.0  ;;  %v5343_v3 = vld [vmem:[%s7086_s11 + $0x2f0] ss:$28 sps:$4 sm:$0xff]  }
 0x556   : > { %v2937_v9 = vmax.f32 %v2862_v5, 0.0 }
 0x557   : > { %v6542_v62 = vpack.c.bf16 %v2936_v7, %v2934_v6 }
 0x558   : > { %v6544_v63 = vpack.c.bf16 %v2937_v9, %v2935_v8  ;;  %v2865_v10 = vpop.f32.mrb[100].mxu1  ;;  %v5321_v9 = vld [vmem:[%s7086_s11 + $0x128] ss:$28 sps:$4 sm:$0xff]  }
 0x559   : > { %v2866_v14 = vadd.f32 %v2865_v10, %v6533_v60  ;;  %v2867_v16 = vpop.f32.mrb[101].mxu1  ;;  %v5344_v10 = vld [vmem:[%s7086_s11 + $0x130] ss:$28 sps:$4 sm:$0xff]  }
 0x55a   : > { %v2868_v19 = vadd.f32 %v2867_v16, %v6536_v49  ;;  %v2869_v20 = vpop.f32.mrb[102].mxu1  ;;  %3755 = vmatprep.mubr.bf16.mxu0 %v6544_v63  ;;  %3868 = vmatprep.mubr.bf16.mxu1 %v6544_v63  ;;  %v5351_v16 = vld [vmem:[%s7086_s11 + $0x328] ss:$28 sps:$4 sm:$0xff]  }
 0x55b   : > { %v2870_v21 = vadd.f32 %v2869_v20, %v6533_v60  ;;  %v2871_v22 = vpop.f32.mrb[103].mxu1  ;;  %3756 = vmatmul.mubr.bf16.vlgmr.msra.gmra.mrb[32].mxu0 %v6542_v62  ;;  %3869 = vmatmul.mubr.bf16.vlgmr.msra.gmra.mrb[128].mxu1 %v6542_v62  ;;  %v2938_v28 = vmax.f32 %v2866_v14, 0.0  ;;  %v5326_v14 = vld [vmem:[%s7086_s11 + $0x164] ss:$28 sps:$4 sm:$0xff]  }
 0x55c   : > { %v2872_v23 = vadd.f32 %v2871_v22, %v6536_v49  ;;  %3950 = vmatpush1.bf16.msra.mxu0 %v5300_v11  ;;  %4720 = vmatpush3.bf16.msra.mxu1 %v5304_v12  ;;  %v2939_v32 = vmax.f32 %v2868_v19, 0.0  ;;  %v5324_v22 = vld [vmem:[%s7086_s11 + $0x160] ss:$28 sps:$4 sm:$0xff]  }
 0x55d   : > { %v2940_v29 = vmax.f32 %v2870_v21, 0.0  ;;  %3951 = vmatprep.subr.bf16.mxu0 %v5307_v17  ;;  %4721 = vmatprep.subr.bf16.mxu1 %v5311_v18 }
 0x55e   : > { %v2941_v33 = vmax.f32 %v2872_v23, 0.0  ;;  %v5352_v23 = vld [vmem:[%s7086_s11 + $0x168] ss:$28 sps:$4 sm:$0xff]  }
 0x55f   : > { %v6578_v34 = vpack.c.bf16 %v2940_v29, %v2938_v28  ;;  %v5331_v28 = vld [vmem:[%s7086_s11 + $0x19c] ss:$28 sps:$4 sm:$0xff]  }
 0x560   : > { %v6580_v35 = vpack.c.bf16 %v2941_v33, %v2939_v32  ;;  %v2875_v36 = vpop.f32.mrb[104].mxu1  ;;  %3952 = vmatpush1.bf16.msra.mxu0 %v5305_v24  ;;  %4722 = vmatpush3.bf16.msra.mxu1 %v5312_v27  ;;  %v5359_v29 = vld [vmem:[%s7086_s11 + $0x360] ss:$28 sps:$4 sm:$0xff]  }
 0x561   : > { %v2876_v39 = vadd.f32 %v2875_v36, %v6533_v60  ;;  %v2877_v40 = vpop.f32.mrb[105].mxu1  ;;  %3953 = vmatprep.subr.bf16.mxu0 %v5310_v30  ;;  %4723 = vmatprep.subr.bf16.mxu1 %v5319_v31 }
 0x562   : > { %v2878_v43 = vadd.f32 %v2877_v40, %v6536_v49  ;;  %v2879_v44 = vpop.f32.mrb[106].mxu1  ;;  %3765 = vmatprep.mubr.bf16.mxu0 %v6580_v35  ;;  %3878 = vmatprep.mubr.bf16.mxu1 %v6580_v35 }
 0x563   : > { %v2880_v47 = vadd.f32 %v2879_v44, %v6533_v60  ;;  %v2881_v51 = vpop.f32.mrb[107].mxu1  ;;  %3766 = vmatmul.mubr.bf16.gmra.mrb[36].mxu0 %v6578_v34  ;;  %3879 = vmatmul.mubr.bf16.gmra.mrb[132].mxu1 %v6578_v34  ;;  %v2942_v53 = vmax.f32 %v2876_v39, 0.0 }
 0x564   : > { %v2882_v52 = vadd.f32 %v2881_v51, %v6536_v49  ;;  %3954 = vmatpush1.bf16.msra.mxu0 %v5308_v37  ;;  %4724 = vmatpush3.bf16.msra.mxu1 %v5320_v38  ;;  %v2943_v57 = vmax.f32 %v2878_v43, 0.0  ;;  %v5329_v37 = vld [vmem:[%s7086_s11 + $0x198] ss:$28 sps:$4 sm:$0xff]   ;;  %v5360_v38 = vld [vmem:[%s7086_s11 + $0x1a0] ss:$28 sps:$4 sm:$0xff]  }
 0x565   : > { %v2944_v54 = vmax.f32 %v2880_v47, 0.0  ;;  %3955 = vmatprep.subr.bf16.mxu0 %v5315_v41  ;;  %4725 = vmatprep.subr.bf16.mxu1 %v5327_v42  ;;  %v5334_v41 = vld [vmem:[%s7086_s11 + $0x1d4] ss:$28 sps:$4 sm:$0xff]  }
 0x566   : > { %v2945_v13 = vmax.f32 %v2882_v52, 0.0  ;;  %v5332_v52 = vld [vmem:[%s7086_s11 + $0x1d0] ss:$28 sps:$4 sm:$0xff]  }
 0x567   : > { %v6614_v58 = vpack.c.bf16 %v2944_v54, %v2942_v53  ;;  %v5339_v53 = vld [vmem:[%s7086_s11 + $0x20c] ss:$28 sps:$4 sm:$0xff]  }
 0x568   : > { %v6616_v15 = vpack.c.bf16 %v2945_v13, %v2943_v57  ;;  %v2885_v59 = vpop.f32.mrb[108].mxu1  ;;  %3956 = vmatpush1.bf16.msra.mxu0 %v5313_v25  ;;  %4726 = vmatpush3.bf16.msra.mxu1 %v5328_v26 }
 0x569   : > { %v2886_v0 = vadd.f32 %v2885_v59, %v6533_v60  ;;  %v2887_v1 = vpop.f32.mrb[109].mxu1  ;;  %3957 = vmatprep.subr.bf16.mxu0 %v5318_v55  ;;  %4727 = vmatprep.subr.bf16.mxu1 %v5335_v56  ;;  %v5337_v59 = vld [vmem:[%s7086_s11 + $0x208] ss:$28 sps:$4 sm:$0xff]  }
 0x56a   : > { %v2888_v4 = vadd.f32 %v2887_v1, %v6536_v49  ;;  %v2889_v5 = vpop.f32.mrb[110].mxu1  ;;  %3775 = vmatprep.mubr.bf16.mxu0 %v6616_v15  ;;  %3888 = vmatprep.mubr.bf16.mxu1 %v6616_v15 }
 0x56b   : > { %v2890_v6 = vadd.f32 %v2889_v5, %v6533_v60  ;;  %v2891_v7 = vpop.f32.mrb[111].mxu1  ;;  %3776 = vmatmul.mubr.bf16.gmra.mrb[40].mxu0 %v6614_v58  ;;  %3889 = vmatmul.mubr.bf16.gmra.mrb[136].mxu1 %v6614_v58  ;;  %v2946_v11 = vmax.f32 %v2886_v0, 0.0  ;;  %v5342_v0 = vld [vmem:[%s7086_s11 + $0x244] ss:$28 sps:$4 sm:$0xff]  }
 0x56c   : > { %v2892_v8 = vadd.f32 %v2891_v7, %v6536_v49  ;;  %3958 = vmatpush1.bf16.msra.mxu0 %v5316_v50  ;;  %4728 = vmatpush3.bf16.msra.mxu1 %v5336_v61  ;;  %v2947_v17 = vmax.f32 %v2888_v4, 0.0 }
 0x56d   : > { %v2948_v12 = vmax.f32 %v2890_v6, 0.0  ;;  %3959 = vmatprep.subr.bf16.mxu0 %v5323_v2  ;;  %4729 = vmatprep.subr.bf16.mxu1 %v5343_v3  ;;  %v5340_v6 = vld [vmem:[%s7086_s11 + $0x240] ss:$28 sps:$4 sm:$0xff]  }
 0x56e   : > { %v2949_v18 = vmax.f32 %v2892_v8, 0.0 }
 0x56f   : > { %v6650_v19 = vpack.c.bf16 %v2948_v12, %v2946_v11 }
 0x570   : > { %v6652_v20 = vpack.c.bf16 %v2949_v18, %v2947_v17  ;;  %v2895_v21 = vpop.f32.mrb[112].mxu1  ;;  %3960 = vmatpush1.bf16.msra.mxu0 %v5321_v9  ;;  %4730 = vmatpush3.bf16.msra.mxu1 %v5344_v10  ;;  %v5347_v9 = vld [vmem:[%s7086_s11 + $0x27c] ss:$28 sps:$4 sm:$0xff]  }
 0x571   : > { %v2896_v24 = vadd.f32 %v2895_v21, %v6533_v60  ;;  %v2897_v27 = vpop.f32.mrb[113].mxu1  ;;  %3961 = vmatprep.subr.bf16.mxu0 %v5326_v14  ;;  %4731 = vmatprep.subr.bf16.mxu1 %v5351_v16  ;;  %v5345_v17 = vld [vmem:[%s7086_s11 + $0x278] ss:$28 sps:$4 sm:$0xff]  }
 0x572   : > { %v2898_v30 = vadd.f32 %v2897_v27, %v6536_v49  ;;  %v2899_v31 = vpop.f32.mrb[114].mxu1  ;;  %3785 = vmatprep.mubr.bf16.mxu0 %v6652_v20  ;;  %3898 = vmatprep.mubr.bf16.mxu1 %v6652_v20 }
 0x573   : > { %v2900_v32 = vadd.f32 %v2899_v31, %v6533_v60  ;;  %v2901_v33 = vpop.f32.mrb[115].mxu1  ;;  %3786 = vmatmul.mubr.bf16.gmra.mrb[44].mxu0 %v6650_v19  ;;  %3899 = vmatmul.mubr.bf16.gmra.mrb[140].mxu1 %v6650_v19  ;;  %v2950_v39 = vmax.f32 %v2896_v24, 0.0 }
 0x574   : > { %v2902_v36 = vadd.f32 %v2901_v33, %v6536_v49  ;;  %3962 = vmatpush1.bf16.msra.mxu0 %v5324_v22  ;;  %4732 = vmatpush3.bf16.msra.mxu1 %v5352_v23  ;;  %v2951_v42 = vmax.f32 %v2898_v30, 0.0  ;;  %v5350_v22 = vld [vmem:[%s7086_s11 + $0x2b4] ss:$28 sps:$4 sm:$0xff]   ;;  %v5355_v33 = vld [vmem:[%s7086_s11 + $0x2ec] ss:$28 sps:$4 sm:$0xff]  }
 0x575   : > { %v2952_v40 = vmax.f32 %v2900_v32, 0.0  ;;  %3963 = vmatprep.subr.bf16.mxu0 %v5331_v28  ;;  %4733 = vmatprep.subr.bf16.mxu1 %v5359_v29  ;;  %v5348_v30 = vld [vmem:[%s7086_s11 + $0x2b0] ss:$28 sps:$4 sm:$0xff]  }
 0x576   : > { %v2953_v43 = vmax.f32 %v2902_v36, 0.0 }
 0x577   : > { %v6683_v44 = vpack.c.bf16 %v2952_v40, %v2950_v39 }
 0x578   : > { %v6685_v47 = vpack.c.bf16 %v2953_v43, %v2951_v42  ;;  %v2905_v51 = vpop.f32.mrb[116].mxu1  ;;  %3964 = vmatpush1.bf16.msra.mxu0 %v5329_v37  ;;  %4734 = vmatpush3.bf16.msra.mxu1 %v5360_v38 }
 0x579   : > { %v2906_v25 = vadd.f32 %v2905_v51, %v6533_v60  ;;  %v2907_v26 = vpop.f32.mrb[117].mxu1  ;;  %3965 = vmatprep.subr.bf16.mxu0 %v5334_v41  ;;  %v5353_v41 = vld [vmem:[%s7086_s11 + $0x2e8] ss:$28 sps:$4 sm:$0xff]  }
 0x57a   : > { %v2908_v54 = vadd.f32 %v2907_v26, %v6536_v49  ;;  %v2909_v55 = vpop.f32.mrb[118].mxu1  ;;  %3795 = vmatprep.mubr.bf16.mxu0 %v6685_v47  ;;  %3908 = vmatprep.mubr.bf16.mxu1 %v6685_v47  ;;  %v5358_v51 = vld [vmem:[%s7086_s11 + $0x324] ss:$28 sps:$4 sm:$0xff]  }
 0x57b   : > { %v2910_v56 = vadd.f32 %v2909_v55, %v6533_v60  ;;  %v2911_v57 = vpop.f32.mrb[119].mxu1  ;;  %3796 = vmatmul.mubr.bf16.gmra.mrb[48].mxu0 %v6683_v44  ;;  %3909 = vmatmul.mubr.bf16.gmra.mrb[144].mxu1 %v6683_v44  ;;  %v2954_v50 = vmax.f32 %v2906_v25, 0.0 }
 0x57c   : > { %v2912_v13 = vadd.f32 %v2911_v57, %v6536_v49  ;;  %3966 = vmatpush1.bf16.msra.mxu0 %v5332_v52  ;;  %v2955_v1 = vmax.f32 %v2908_v54, 0.0  ;;  %v5361_v54 = vld [vmem:[%s7086_s11 + $0x358] ss:$28 sps:$4 sm:$0xff]  }
 0x57d   : > { %v2956_v61 = vmax.f32 %v2910_v56, 0.0  ;;  %3967 = vmatprep.subr.bf16.mxu0 %v5339_v53  ;;  %v5363_v53 = vld [vmem:[%s7086_s11 + $0x35c] ss:$28 sps:$4 sm:$0xff]  }
 0x57e   : > { %v2957_v2 = vmax.f32 %v2912_v13, 0.0 }
 0x57f   : > { %v6707_v3 = vpack.c.bf16 %v2956_v61, %v2954_v50 }
 0x580   : > { %v6709_v4 = vpack.c.bf16 %v2957_v2, %v2955_v1  ;;  %v2915_v5 = vpop.f32.mrb[120].mxu1  ;;  %3968 = vmatpush1.bf16.msra.mxu0 %v5337_v59 }
 0x581   : > { %v2916_v7 = vadd.f32 %v2915_v5, %v6533_v60  ;;  %v2917_v8 = vpop.f32.mrb[121].mxu1  ;;  %3969 = vmatprep.subr.bf16.mxu0 %v5342_v0 }
 0x582   : > { %v2918_v10 = vadd.f32 %v2917_v8, %v6536_v49  ;;  %v2919_v11 = vpop.f32.mrb[122].mxu1  ;;  %3805 = vmatprep.mubr.bf16.mxu0 %v6709_v4  ;;  %3918 = vmatprep.mubr.bf16.mxu1 %v6709_v4 }
 0x583   : > { %v2920_v12 = vadd.f32 %v2919_v11, %v6533_v60  ;;  %v2921_v14 = vpop.f32.mrb[123].mxu1  ;;  %3806 = vmatmul.mubr.bf16.gmra.mrb[52].mxu0 %v6707_v3  ;;  %3919 = vmatmul.mubr.bf16.gmra.mrb[148].mxu1 %v6707_v3  ;;  %v2958_v18 = vmax.f32 %v2916_v7, 0.0 }
 0x584   : > { %v2922_v16 = vadd.f32 %v2921_v14, %v6536_v49  ;;  %3970 = vmatpush1.bf16.msra.mxu0 %v5340_v6  ;;  %v2959_v23 = vmax.f32 %v2918_v10, 0.0 }
 0x585   : > { %v2960_v21 = vmax.f32 %v2920_v12, 0.0  ;;  %3971 = vmatprep.subr.bf16.mxu0 %v5347_v9 }
 0x586   : > { %v2961_v24 = vmax.f32 %v2922_v16, 0.0 }
 0x587   : > { %v6731_v27 = vpack.c.bf16 %v2960_v21, %v2958_v18 }
 0x588   : > { %v6733_v28 = vpack.c.bf16 %v2961_v24, %v2959_v23  ;;  %v2925_v29 = vpop.f32.mrb[124].mxu1  ;;  %3972 = vmatpush1.bf16.msra.mxu0 %v5345_v17 }
 0x589   : > { %v2926_v31 = vadd.f32 %v2925_v29, %v6533_v60  ;;  %v2927_v32 = vpop.f32.mrb[125].mxu1  ;;  %3973 = vmatprep.subr.bf16.mxu0 %v5350_v22 }
 0x58a   : > { %v2928_v36 = vadd.f32 %v2927_v32, %v6536_v49  ;;  %v2929_v37 = vpop.f32.mrb[126].mxu1  ;;  %3815 = vmatprep.mubr.bf16.mxu0 %v6733_v28  ;;  %3928 = vmatprep.mubr.bf16.mxu1 %v6733_v28 }
 0x58b   : > { %v2930_v38 = vadd.f32 %v2929_v37, %v6533_v60  ;;  %v2931_v39 = vpop.f32.mrb[127].mxu1  ;;  %3816 = vmatmul.mubr.bf16.gmra.mrb[56].mxu0 %v6731_v27  ;;  %3929 = vmatmul.mubr.bf16.gmra.mrb[152].mxu1 %v6731_v27  ;;  %v2962_v42 = vmax.f32 %v2926_v31, 0.0 }
 0x58c   : > { %v2932_v40 = vadd.f32 %v2931_v39, %v6536_v49  ;;  %3974 = vmatpush1.bf16.msra.mxu0 %v5348_v30  ;;  %v2963_v60 = vmax.f32 %v2928_v36, 0.0  ;;  %v5356_v49 = vld [vmem:[%s7086_s11 + $0x320] ss:$28 sps:$4 sm:$0xff]  }
 0x58d   : > { %v2964_v43 = vmax.f32 %v2930_v38, 0.0  ;;  %3975 = vmatprep.subr.bf16.mxu0 %v5355_v33 }
 0x58e   : > { %v2965_v52 = vmax.f32 %v2932_v40, 0.0 }
 0x58f   : > { %v2980_v25 = vpack.c.bf16 %v2964_v43, %v2962_v42 }
 0x590   : > { %v2981_v26 = vpack.c.bf16 %v2965_v52, %v2963_v60  ;;  %3976 = vmatpush1.bf16.msra.mxu0 %v5353_v41 }
 0x591   : > { %3977 = vmatprep.subr.bf16.mxu0 %v5358_v51 }
 0x592   : > { %3825 = vmatprep.mubr.bf16.mxu0 %v2981_v26  ;;  %3938 = vmatprep.mubr.bf16.mxu1 %v2981_v26 }
 0x593   : > { %3826 = vmatmul.mubr.bf16.gmra.mrb[60].mxu0 %v2980_v25  ;;  %3939 = vmatmul.mubr.bf16.gmra.mrb[156].mxu1 %v2980_v25 }
 0x594   : > { %3978 = vmatpush1.bf16.msra.mxu0 %v5356_v49  ;;  %3981 = vmatprep.mubr.bf16.mxu0 %v6544_v63 }
 0x595   : > { %4094 = vmatprep.mubr.bf16.mxu1 %v6544_v63  ;;  %3979 = vmatprep.subr.bf16.mxu0 %v5363_v53  ;;  %v6796_v63 = vld [vmem:[%s7087_s12] sm:$0x7f] }
 0x598   : > { %3980 = vmatpush1.bf16.msra.mxu0 %v5361_v54 }
 0x59b   : > { %3982 = vmatmul.mubr.bf16.vlgmr.msra.gmra.mrb[64].mxu0 %v6542_v62  ;;  %4095 = vmatmul.mubr.bf16.vlgmr.msra.gmra.mrb[160].mxu1 %v6542_v62  ;;  %v3122_v62 = vsub.s32 2, %v5982_v45 }
 0x59c   : > { %3991 = vmatprep.mubr.bf16.mxu0 %v6580_v35  ;;  %4102 = vmatprep.mubr.bf16.mxu1 %v6580_v35  ;;  %v6801_v35 = vrot.slane %v6796_v63, %v5985_v46 }
 0x5a3   : > { %3992 = vmatmul.mubr.bf16.gmra.mrb[68].mxu0 %v6578_v34  ;;  %4103 = vmatmul.mubr.bf16.gmra.mrb[164].mxu1 %v6578_v34  ;;  %v3126_v34 = vsub.s32 3, %v5982_v45 }
 0x5a4   : > { %4001 = vmatprep.mubr.bf16.mxu0 %v6616_v15  ;;  %4110 = vmatprep.mubr.bf16.mxu1 %v6616_v15  ;;  %v6808_v15 = vrot.slane %v6796_v63, %v5991_v48 }
 0x5ab   : > { %4002 = vmatmul.mubr.bf16.gmra.mrb[72].mxu0 %v6614_v58  ;;  %4111 = vmatmul.mubr.bf16.gmra.mrb[168].mxu1 %v6614_v58  ;;  %v6804_v58 = vrot.slane %v6796_v63, %v3122_v62 }
 0x5ac   : > { %4011 = vmatprep.mubr.bf16.mxu0 %v6652_v20  ;;  %4118 = vmatprep.mubr.bf16.mxu1 %v6652_v20 }
 0x5b3   : > { %4012 = vmatmul.mubr.bf16.gmra.mrb[76].mxu0 %v6650_v19  ;;  %4119 = vmatmul.mubr.bf16.gmra.mrb[172].mxu1 %v6650_v19  ;;  %v6811_v19 = vrot.slane %v6796_v63, %v3126_v34 }
 0x5b4   : > { %4021 = vmatprep.mubr.bf16.mxu0 %v6685_v47  ;;  %4126 = vmatprep.mubr.bf16.mxu1 %v6685_v47 }
 0x5bb   : > { %4022 = vmatmul.mubr.bf16.gmra.mrb[80].mxu0 %v6683_v44  ;;  %4127 = vmatmul.mubr.bf16.gmra.mrb[176].mxu1 %v6683_v44 }
 0x5bc   : > { %4031 = vmatprep.mubr.bf16.mxu0 %v6709_v4  ;;  %4134 = vmatprep.mubr.bf16.mxu1 %v6709_v4 }
 0x5c3   : > { %4032 = vmatmul.mubr.bf16.gmra.mrb[84].mxu0 %v6707_v3  ;;  %4135 = vmatmul.mubr.bf16.gmra.mrb[180].mxu1 %v6707_v3 }
 0x5c4   : > { %4041 = vmatprep.mubr.bf16.mxu0 %v6733_v28  ;;  %4142 = vmatprep.mubr.bf16.mxu1 %v6733_v28 }
 0x5cb   : > { %4042 = vmatmul.mubr.bf16.gmra.mrb[88].mxu0 %v6731_v27  ;;  %4143 = vmatmul.mubr.bf16.gmra.mrb[184].mxu1 %v6731_v27 }
 0x5cc   : > { %4051 = vmatprep.mubr.bf16.mxu0 %v2981_v26  ;;  %4150 = vmatprep.mubr.bf16.mxu1 %v2981_v26 }
 0x5d3   : > { %4052 = vmatmul.mubr.bf16.gmra.mrb[92].mxu0 %v2980_v25  ;;  %4151 = vmatmul.mubr.bf16.gmra.mrb[188].mxu1 %v2980_v25 }
 0x62e   : > { %v3757_v46 = vpop.f32.mrb[32].mxu0  ;;  %v3870_v20 = vpop.f32.mrb[128].mxu1 }
 0x62f   : > { %v3758_v44 = vadd.f32 %v3757_v46, %v6801_v35  ;;  %v3871_v48 = vadd.f32 %v3870_v20, %v6804_v58  ;;  %v3759_v47 = vpop.f32.mrb[33].mxu0  ;;  %v3872_v55 = vpop.f32.mrb[129].mxu1 }
 0x630   : > { %v3760_v56 = vadd.f32 %v3759_v47, %v6808_v15  ;;  %v3873_v57 = vadd.f32 %v3872_v55, %v6811_v19  ;;  %v3761_v13 = vpop.f32.mrb[34].mxu0  ;;  %v3874_v59 = vpop.f32.mrb[130].mxu1 }
 0x631   : > { %4159 = vst [vmem:[%s6818_s28] sm:$0xff] %v3758_v44  ;;  %4161 = vst [vmem:[%s6818_s28 + $0x10] sm:$0xff] %v3871_v48  ;;  %v3762_v50 = vadd.f32 %v3761_v13, %v6801_v35  ;;  %v3875_v61 = vadd.f32 %v3874_v59, %v6804_v58  ;;  %v3763_v0 = vpop.f32.mrb[35].mxu0  ;;  %v3876_v1 = vpop.f32.mrb[131].mxu1 }
 0x632   : > { %4160 = vst [vmem:[%s6818_s28 + $0x8] sm:$0xff] %v3760_v56  ;;  %4162 = vst [vmem:[%s6818_s28 + $0x18] sm:$0xff] %v3873_v57  ;;  %v3764_v2 = vadd.f32 %v3763_v0, %v6808_v15  ;;  %v3877_v3 = vadd.f32 %v3876_v1, %v6811_v19 }
 0x633   : > { %4166 = vst [vmem:[%s6818_s28 + $0x38] sm:$0xff] %v3762_v50  ;;  %4168 = vst [vmem:[%s6818_s28 + $0x48] sm:$0xff] %v3875_v61 }
 0x634   : > { %4167 = vst [vmem:[%s6818_s28 + $0x40] sm:$0xff] %v3764_v2  ;;  %4169 = vst [vmem:[%s6818_s28 + $0x50] sm:$0xff] %v3877_v3 }
 0x636   : > { %v3767_v4 = vpop.f32.mrb[36].mxu0  ;;  %v3880_v5 = vpop.f32.mrb[132].mxu1 }
 0x637   : > { %v3768_v6 = vadd.f32 %v3767_v4, %v6801_v35  ;;  %v3881_v7 = vadd.f32 %v3880_v5, %v6804_v58  ;;  %v3769_v8 = vpop.f32.mrb[37].mxu0  ;;  %v3882_v9 = vpop.f32.mrb[133].mxu1 }
 0x638   : > { %v3770_v10 = vadd.f32 %v3769_v8, %v6808_v15  ;;  %v3883_v11 = vadd.f32 %v3882_v9, %v6811_v19  ;;  %v3771_v12 = vpop.f32.mrb[38].mxu0  ;;  %v3884_v14 = vpop.f32.mrb[134].mxu1 }
 0x639   : > { %4173 = vst [vmem:[%s6818_s28 + $0x70] sm:$0xff] %v3768_v6  ;;  %4175 = vst [vmem:[%s6818_s28 + $0x80] sm:$0xff] %v3881_v7  ;;  %v3772_v16 = vadd.f32 %v3771_v12, %v6801_v35  ;;  %v3885_v17 = vadd.f32 %v3884_v14, %v6804_v58  ;;  %v3773_v18 = vpop.f32.mrb[39].mxu0  ;;  %v3886_v21 = vpop.f32.mrb[135].mxu1 }
 0x63a   : > { %4174 = vst [vmem:[%s6818_s28 + $0x78] sm:$0xff] %v3770_v10  ;;  %4176 = vst [vmem:[%s6818_s28 + $0x88] sm:$0xff] %v3883_v11  ;;  %v3774_v22 = vadd.f32 %v3773_v18, %v6808_v15  ;;  %v3887_v23 = vadd.f32 %v3886_v21, %v6811_v19 }
 0x63b   : > { %4180 = vst [vmem:[%s6818_s28 + $0xa8] sm:$0xff] %v3772_v16  ;;  %4182 = vst [vmem:[%s6818_s28 + $0xb8] sm:$0xff] %v3885_v17 }
 0x63c   : > { %4181 = vst [vmem:[%s6818_s28 + $0xb0] sm:$0xff] %v3774_v22  ;;  %4183 = vst [vmem:[%s6818_s28 + $0xc0] sm:$0xff] %v3887_v23 }
 0x63e   : > { %v3777_v24 = vpop.f32.mrb[40].mxu0  ;;  %v3890_v27 = vpop.f32.mrb[136].mxu1 }
 0x63f   : > { %v3778_v28 = vadd.f32 %v3777_v24, %v6801_v35  ;;  %v3891_v29 = vadd.f32 %v3890_v27, %v6804_v58  ;;  %v3779_v30 = vpop.f32.mrb[41].mxu0  ;;  %v3892_v31 = vpop.f32.mrb[137].mxu1 }
 0x640   : > { %v3780_v32 = vadd.f32 %v3779_v30, %v6808_v15  ;;  %v3893_v33 = vadd.f32 %v3892_v31, %v6811_v19  ;;  %v3781_v36 = vpop.f32.mrb[42].mxu0  ;;  %v3894_v37 = vpop.f32.mrb[138].mxu1 }
 0x641   : > { %4187 = vst [vmem:[%s6818_s28 + $0xe0] sm:$0xff] %v3778_v28  ;;  %4189 = vst [vmem:[%s6818_s28 + $0xf0] sm:$0xff] %v3891_v29  ;;  %v3782_v38 = vadd.f32 %v3781_v36, %v6801_v35  ;;  %v3895_v39 = vadd.f32 %v3894_v37, %v6804_v58  ;;  %v3783_v40 = vpop.f32.mrb[43].mxu0  ;;  %v3896_v41 = vpop.f32.mrb[139].mxu1 }
 0x642   : > { %4188 = vst [vmem:[%s6818_s28 + $0xe8] sm:$0xff] %v3780_v32  ;;  %4190 = vst [vmem:[%s6818_s28 + $0xf8] sm:$0xff] %v3893_v33  ;;  %v3784_v42 = vadd.f32 %v3783_v40, %v6808_v15  ;;  %v3897_v43 = vadd.f32 %v3896_v41, %v6811_v19 }
 0x643   : > { %4194 = vst [vmem:[%s6818_s28 + $0x118] sm:$0xff] %v3782_v38  ;;  %4196 = vst [vmem:[%s6818_s28 + $0x128] sm:$0xff] %v3895_v39 }
 0x644   : > { %4195 = vst [vmem:[%s6818_s28 + $0x120] sm:$0xff] %v3784_v42  ;;  %4197 = vst [vmem:[%s6818_s28 + $0x130] sm:$0xff] %v3897_v43 }
 0x646   : > { %v3787_v51 = vpop.f32.mrb[44].mxu0  ;;  %v3900_v60 = vpop.f32.mrb[140].mxu1 }
 0x647   : > { %v3788_v52 = vadd.f32 %v3787_v51, %v6801_v35  ;;  %v3901_v25 = vadd.f32 %v3900_v60, %v6804_v58  ;;  %v3789_v26 = vpop.f32.mrb[45].mxu0  ;;  %v3902_v49 = vpop.f32.mrb[141].mxu1 }
 0x648   : > { %v3790_v53 = vadd.f32 %v3789_v26, %v6808_v15  ;;  %v3903_v54 = vadd.f32 %v3902_v49, %v6811_v19  ;;  %v3791_v62 = vpop.f32.mrb[46].mxu0  ;;  %v3904_v34 = vpop.f32.mrb[142].mxu1 }
 0x649   : > { %4201 = vst [vmem:[%s6818_s28 + $0x150] sm:$0xff] %v3788_v52  ;;  %4203 = vst [vmem:[%s6818_s28 + $0x160] sm:$0xff] %v3901_v25  ;;  %v3792_v46 = vadd.f32 %v3791_v62, %v6801_v35  ;;  %v3905_v20 = vadd.f32 %v3904_v34, %v6804_v58  ;;  %v3793_v44 = vpop.f32.mrb[47].mxu0  ;;  %v3906_v48 = vpop.f32.mrb[143].mxu1 }
 0x64a   : > { %4202 = vst [vmem:[%s6818_s28 + $0x158] sm:$0xff] %v3790_v53  ;;  %4204 = vst [vmem:[%s6818_s28 + $0x168] sm:$0xff] %v3903_v54  ;;  %v3794_v47 = vadd.f32 %v3793_v44, %v6808_v15  ;;  %v3907_v55 = vadd.f32 %v3906_v48, %v6811_v19  ;;  %v3130_v44 = vsub.s32 4, %v5982_v45 }
 0x64b   : > { %4208 = vst [vmem:[%s6818_s28 + $0x188] sm:$0xff] %v3792_v46  ;;  %4210 = vst [vmem:[%s6818_s28 + $0x198] sm:$0xff] %v3905_v20 }
 0x64c   : > { %4209 = vst [vmem:[%s6818_s28 + $0x190] sm:$0xff] %v3794_v47  ;;  %4211 = vst [vmem:[%s6818_s28 + $0x1a0] sm:$0xff] %v3907_v55 }
 0x64e   : > { %v3797_v56 = vpop.f32.mrb[48].mxu0  ;;  %v3910_v57 = vpop.f32.mrb[144].mxu1 }
 0x64f   : > { %v3798_v13 = vadd.f32 %v3797_v56, %v6801_v35  ;;  %v3911_v59 = vadd.f32 %v3910_v57, %v6804_v58  ;;  %v3799_v50 = vpop.f32.mrb[49].mxu0  ;;  %v3912_v61 = vpop.f32.mrb[145].mxu1  ;;  %v3134_v57 = vsub.s32 5, %v5982_v45 }
 0x650   : > { %v3800_v0 = vadd.f32 %v3799_v50, %v6808_v15  ;;  %v3913_v1 = vadd.f32 %v3912_v61, %v6811_v19  ;;  %v3801_v2 = vpop.f32.mrb[50].mxu0  ;;  %v3914_v3 = vpop.f32.mrb[146].mxu1 }
 0x651   : > { %4215 = vst [vmem:[%s6818_s28 + $0x1c0] sm:$0xff] %v3798_v13  ;;  %4217 = vst [vmem:[%s6818_s28 + $0x1d0] sm:$0xff] %v3911_v59  ;;  %v3802_v4 = vadd.f32 %v3801_v2, %v6801_v35  ;;  %v3915_v5 = vadd.f32 %v3914_v3, %v6804_v58  ;;  %v3803_v6 = vpop.f32.mrb[51].mxu0  ;;  %v3916_v7 = vpop.f32.mrb[147].mxu1  ;;  %v3138_v2 = vsub.s32 6, %v5982_v45  ;;  %v6950_v3 = vrot.slane %v6796_v63, %v3130_v44 }
 0x652   : > { %4216 = vst [vmem:[%s6818_s28 + $0x1c8] sm:$0xff] %v3800_v0  ;;  %4218 = vst [vmem:[%s6818_s28 + $0x1d8] sm:$0xff] %v3913_v1  ;;  %v3804_v8 = vadd.f32 %v3803_v6, %v6808_v15  ;;  %v3917_v9 = vadd.f32 %v3916_v7, %v6811_v19 }
 0x653   : > { %4222 = vst [vmem:[%s6818_s28 + $0x1f8] sm:$0xff] %v3802_v4  ;;  %4224 = vst [vmem:[%s6818_s28 + $0x208] sm:$0xff] %v3915_v5 }
 0x654   : > { %4223 = vst [vmem:[%s6818_s28 + $0x200] sm:$0xff] %v3804_v8  ;;  %4225 = vst [vmem:[%s6818_s28 + $0x210] sm:$0xff] %v3917_v9 }
 0x656   : > { %v3807_v10 = vpop.f32.mrb[52].mxu0  ;;  %v3920_v11 = vpop.f32.mrb[148].mxu1 }
 0x657   : > { %v3808_v12 = vadd.f32 %v3807_v10, %v6801_v35  ;;  %v3921_v14 = vadd.f32 %v3920_v11, %v6804_v58  ;;  %v3809_v16 = vpop.f32.mrb[53].mxu0  ;;  %v3922_v17 = vpop.f32.mrb[149].mxu1 }
 0x658   : > { %v3810_v18 = vadd.f32 %v3809_v16, %v6808_v15  ;;  %v3923_v21 = vadd.f32 %v3922_v17, %v6811_v19  ;;  %v3811_v22 = vpop.f32.mrb[54].mxu0  ;;  %v3924_v23 = vpop.f32.mrb[150].mxu1 }
 0x659   : > { %4229 = vst [vmem:[%s6818_s28 + $0x230] sm:$0xff] %v3808_v12  ;;  %4231 = vst [vmem:[%s6818_s28 + $0x240] sm:$0xff] %v3921_v14  ;;  %v3812_v24 = vadd.f32 %v3811_v22, %v6801_v35  ;;  %v3925_v27 = vadd.f32 %v3924_v23, %v6804_v58  ;;  %v3813_v28 = vpop.f32.mrb[55].mxu0  ;;  %v3926_v29 = vpop.f32.mrb[151].mxu1 }
 0x65a   : > { %4230 = vst [vmem:[%s6818_s28 + $0x238] sm:$0xff] %v3810_v18  ;;  %4232 = vst [vmem:[%s6818_s28 + $0x248] sm:$0xff] %v3923_v21  ;;  %v3814_v30 = vadd.f32 %v3813_v28, %v6808_v15  ;;  %v3927_v31 = vadd.f32 %v3926_v29, %v6811_v19 }
 0x65b   : > { %4236 = vst [vmem:[%s6818_s28 + $0x268] sm:$0xff] %v3812_v24  ;;  %4238 = vst [vmem:[%s6818_s28 + $0x278] sm:$0xff] %v3925_v27 }
 0x65c   : > { %4237 = vst [vmem:[%s6818_s28 + $0x270] sm:$0xff] %v3814_v30  ;;  %4239 = vst [vmem:[%s6818_s28 + $0x280] sm:$0xff] %v3927_v31 }
 0x65e   : > { %v3817_v32 = vpop.f32.mrb[56].mxu0  ;;  %v3930_v33 = vpop.f32.mrb[152].mxu1 }
 0x65f   : > { %v3818_v36 = vadd.f32 %v3817_v32, %v6801_v35  ;;  %v3931_v37 = vadd.f32 %v3930_v33, %v6804_v58  ;;  %v3819_v38 = vpop.f32.mrb[57].mxu0  ;;  %v3932_v39 = vpop.f32.mrb[153].mxu1 }
 0x660   : > { %v3820_v40 = vadd.f32 %v3819_v38, %v6808_v15  ;;  %v3933_v41 = vadd.f32 %v3932_v39, %v6811_v19  ;;  %v3821_v42 = vpop.f32.mrb[58].mxu0  ;;  %v3934_v43 = vpop.f32.mrb[154].mxu1 }
 0x661   : > { %4243 = vst [vmem:[%s6818_s28 + $0x2a0] sm:$0xff] %v3818_v36  ;;  %4245 = vst [vmem:[%s6818_s28 + $0x2b0] sm:$0xff] %v3931_v37  ;;  %v3822_v51 = vadd.f32 %v3821_v42, %v6801_v35  ;;  %v3935_v60 = vadd.f32 %v3934_v43, %v6804_v58  ;;  %v3823_v52 = vpop.f32.mrb[59].mxu0  ;;  %v3936_v25 = vpop.f32.mrb[155].mxu1 }
 0x662   : > { %4244 = vst [vmem:[%s6818_s28 + $0x2a8] sm:$0xff] %v3820_v40  ;;  %4246 = vst [vmem:[%s6818_s28 + $0x2b8] sm:$0xff] %v3933_v41  ;;  %v3824_v26 = vadd.f32 %v3823_v52, %v6808_v15  ;;  %v3937_v49 = vadd.f32 %v3936_v25, %v6811_v19 }
 0x663   : > { %4250 = vst [vmem:[%s6818_s28 + $0x2d8] sm:$0xff] %v3822_v51  ;;  %4252 = vst [vmem:[%s6818_s28 + $0x2e8] sm:$0xff] %v3935_v60 }
 0x664   : > { %4251 = vst [vmem:[%s6818_s28 + $0x2e0] sm:$0xff] %v3824_v26  ;;  %4253 = vst [vmem:[%s6818_s28 + $0x2f0] sm:$0xff] %v3937_v49 }
 0x666   : > { %v3827_v53 = vpop.f32.mrb[60].mxu0  ;;  %v3940_v54 = vpop.f32.mrb[156].mxu1 }
 0x667   : > { %v3828_v62 = vadd.f32 %v3827_v53, %v6801_v35  ;;  %v3941_v34 = vadd.f32 %v3940_v54, %v6804_v58  ;;  %v3829_v46 = vpop.f32.mrb[61].mxu0  ;;  %v3942_v20 = vpop.f32.mrb[157].mxu1 }
 0x668   : > { %v3830_v48 = vadd.f32 %v3829_v46, %v6808_v15  ;;  %v3943_v47 = vadd.f32 %v3942_v20, %v6811_v19  ;;  %v3831_v55 = vpop.f32.mrb[62].mxu0  ;;  %v3944_v56 = vpop.f32.mrb[158].mxu1 }
 0x669   : > { %4257 = vst [vmem:[%s6818_s28 + $0x310] sm:$0xff] %v3828_v62  ;;  %4259 = vst [vmem:[%s6818_s28 + $0x320] sm:$0xff] %v3941_v34  ;;  %v3832_v13 = vadd.f32 %v3831_v55, %v6801_v35  ;;  %v3945_v59 = vadd.f32 %v3944_v56, %v6804_v58  ;;  %v3833_v50 = vpop.f32.mrb[63].mxu0  ;;  %v3946_v61 = vpop.f32.mrb[159].mxu1  ;;  %v6955_v35 = vrot.slane %v6796_v63, %v3134_v57 }
 0x66a   : > { %4258 = vst [vmem:[%s6818_s28 + $0x318] sm:$0xff] %v3830_v48  ;;  %4260 = vst [vmem:[%s6818_s28 + $0x328] sm:$0xff] %v3943_v47  ;;  %v3834_v0 = vadd.f32 %v3833_v50, %v6808_v15  ;;  %v3947_v1 = vadd.f32 %v3946_v61, %v6811_v19  ;;  %v6958_v15 = vrot.slane %v6796_v63, %v3138_v2 }
 0x66b   : > { %4264 = vst [vmem:[%s6818_s28 + $0x348] sm:$0xff] %v3832_v13  ;;  %4266 = vst [vmem:[%s6818_s28 + $0x358] sm:$0xff] %v3945_v59 }
 0x66c   : > { %4265 = vst [vmem:[%s6818_s28 + $0x350] sm:$0xff] %v3834_v0  ;;  %4267 = vst [vmem:[%s6818_s28 + $0x360] sm:$0xff] %v3947_v1 }
 0x66e   : > { %v3983_v58 = vpop.f32.mrb[64].mxu0  ;;  %v4735_v4 = vpop.f32.mrb[160].mxu1 }
 0x66f   : > { %v3984_v45 = vadd.f32 %v3983_v58, %v6950_v3  ;;  %v3985_v19 = vpop.f32.mrb[65].mxu0  ;;  %v4736_v5 = vpop.f32.mrb[161].mxu1 }
 0x670   : > { %v3986_v6 = vadd.f32 %v3985_v19, %v6955_v35  ;;  %v4737_v7 = vadd.f32 %v4736_v5, %v4735_v4  ;;  %v3987_v8 = vpop.f32.mrb[66].mxu0  ;;  %v4738_v9 = vpop.f32.mrb[162].mxu1 }
 0x671   : > { %4163 = vst [vmem:[%s6818_s28 + $0x20] sm:$0xff] %v3984_v45  ;;  %v3988_v10 = vadd.f32 %v3987_v8, %v6950_v3  ;;  %v3989_v11 = vpop.f32.mrb[67].mxu0  ;;  %v4739_v12 = vpop.f32.mrb[163].mxu1 }
 0x672   : > { %4164 = vst [vmem:[%s6818_s28 + $0x28] sm:$0xff] %v3986_v6  ;;  %v4097_v63 = vadd.f32 %v4737_v7, %v6958_v15  ;;  %v3990_v14 = vadd.f32 %v3989_v11, %v6955_v35  ;;  %v4740_v16 = vadd.f32 %v4739_v12, %v4738_v9 }
 0x673   : > { %4170 = vst [vmem:[%s6818_s28 + $0x58] sm:$0xff] %v3988_v10 }
 0x674   : > { %4165 = vst.msk [vmem:[%s6818_s28 + $0x30] sm:$0xff] %vm1218_vm0, %v4097_v63  ;;  %4171 = vst [vmem:[%s6818_s28 + $0x60] sm:$0xff] %v3990_v14  ;;  %v4100_v17 = vadd.f32 %v4740_v16, %v6958_v15 }
 0x676   : > { %4172 = vst.msk [vmem:[%s6818_s28 + $0x68] sm:$0xff] %vm1218_vm0, %v4100_v17  ;;  %v3993_v18 = vpop.f32.mrb[68].mxu0  ;;  %v4741_v21 = vpop.f32.mrb[164].mxu1 }
 0x677   : > { %v3994_v22 = vadd.f32 %v3993_v18, %v6950_v3  ;;  %v3995_v23 = vpop.f32.mrb[69].mxu0  ;;  %v4742_v24 = vpop.f32.mrb[165].mxu1 }
 0x678   : > { %v3996_v27 = vadd.f32 %v3995_v23, %v6955_v35  ;;  %v4743_v28 = vadd.f32 %v4742_v24, %v4741_v21  ;;  %v3997_v29 = vpop.f32.mrb[70].mxu0  ;;  %v4744_v30 = vpop.f32.mrb[166].mxu1 }
 0x679   : > { %4177 = vst [vmem:[%s6818_s28 + $0x90] sm:$0xff] %v3994_v22  ;;  %v3998_v31 = vadd.f32 %v3997_v29, %v6950_v3  ;;  %v3999_v32 = vpop.f32.mrb[71].mxu0  ;;  %v4745_v33 = vpop.f32.mrb[167].mxu1 }
 0x67a   : > { %4178 = vst [vmem:[%s6818_s28 + $0x98] sm:$0xff] %v3996_v27  ;;  %v4105_v36 = vadd.f32 %v4743_v28, %v6958_v15  ;;  %v4000_v37 = vadd.f32 %v3999_v32, %v6955_v35  ;;  %v4746_v38 = vadd.f32 %v4745_v33, %v4744_v30 }
 0x67b   : > { %4184 = vst [vmem:[%s6818_s28 + $0xc8] sm:$0xff] %v3998_v31 }
 0x67c   : > { %4179 = vst.msk [vmem:[%s6818_s28 + $0xa0] sm:$0xff] %vm1218_vm0, %v4105_v36  ;;  %4185 = vst [vmem:[%s6818_s28 + $0xd0] sm:$0xff] %v4000_v37  ;;  %v4108_v39 = vadd.f32 %v4746_v38, %v6958_v15 }
 0x67e   : > { %4186 = vst.msk [vmem:[%s6818_s28 + $0xd8] sm:$0xff] %vm1218_vm0, %v4108_v39  ;;  %v4003_v40 = vpop.f32.mrb[72].mxu0  ;;  %v4747_v41 = vpop.f32.mrb[168].mxu1 }
 0x67f   : > { %v4004_v42 = vadd.f32 %v4003_v40, %v6950_v3  ;;  %v4005_v43 = vpop.f32.mrb[73].mxu0  ;;  %v4748_v51 = vpop.f32.mrb[169].mxu1 }
 0x680   : > { %v4006_v60 = vadd.f32 %v4005_v43, %v6955_v35  ;;  %v4749_v52 = vadd.f32 %v4748_v51, %v4747_v41  ;;  %v4007_v25 = vpop.f32.mrb[74].mxu0  ;;  %v4750_v26 = vpop.f32.mrb[170].mxu1 }
 0x681   : > { %4191 = vst [vmem:[%s6818_s28 + $0x100] sm:$0xff] %v4004_v42  ;;  %v4008_v49 = vadd.f32 %v4007_v25, %v6950_v3  ;;  %v4009_v53 = vpop.f32.mrb[75].mxu0  ;;  %v4751_v54 = vpop.f32.mrb[171].mxu1 }
 0x682   : > { %4192 = vst [vmem:[%s6818_s28 + $0x108] sm:$0xff] %v4006_v60  ;;  %v4113_v62 = vadd.f32 %v4749_v52, %v6958_v15  ;;  %v4010_v34 = vadd.f32 %v4009_v53, %v6955_v35  ;;  %v4752_v46 = vadd.f32 %v4751_v54, %v4750_v26 }
 0x683   : > { %4198 = vst [vmem:[%s6818_s28 + $0x138] sm:$0xff] %v4008_v49 }
 0x684   : > { %4193 = vst.msk [vmem:[%s6818_s28 + $0x110] sm:$0xff] %vm1218_vm0, %v4113_v62  ;;  %4199 = vst [vmem:[%s6818_s28 + $0x140] sm:$0xff] %v4010_v34  ;;  %v4116_v20 = vadd.f32 %v4752_v46, %v6958_v15 }
 0x686   : > { %4200 = vst.msk [vmem:[%s6818_s28 + $0x148] sm:$0xff] %vm1218_vm0, %v4116_v20  ;;  %v4013_v44 = vpop.f32.mrb[76].mxu0  ;;  %v4753_v48 = vpop.f32.mrb[172].mxu1 }
 0x687   : > { %v4014_v47 = vadd.f32 %v4013_v44, %v6950_v3  ;;  %v4015_v55 = vpop.f32.mrb[77].mxu0  ;;  %v4754_v56 = vpop.f32.mrb[173].mxu1 }
 0x688   : > { %v4016_v57 = vadd.f32 %v4015_v55, %v6955_v35  ;;  %v4755_v13 = vadd.f32 %v4754_v56, %v4753_v48  ;;  %v4017_v59 = vpop.f32.mrb[78].mxu0  ;;  %v4756_v50 = vpop.f32.mrb[174].mxu1 }
 0x689   : > { %4205 = vst [vmem:[%s6818_s28 + $0x170] sm:$0xff] %v4014_v47  ;;  %v4018_v61 = vadd.f32 %v4017_v59, %v6950_v3  ;;  %v4019_v0 = vpop.f32.mrb[79].mxu0  ;;  %v4757_v1 = vpop.f32.mrb[175].mxu1 }
 0x68a   : > { %4206 = vst [vmem:[%s6818_s28 + $0x178] sm:$0xff] %v4016_v57  ;;  %v4121_v2 = vadd.f32 %v4755_v13, %v6958_v15  ;;  %v4020_v58 = vadd.f32 %v4019_v0, %v6955_v35  ;;  %v4758_v4 = vadd.f32 %v4757_v1, %v4756_v50 }
 0x68b   : > { %4212 = vst [vmem:[%s6818_s28 + $0x1a8] sm:$0xff] %v4018_v61 }
 0x68c   : > { %4207 = vst.msk [vmem:[%s6818_s28 + $0x180] sm:$0xff] %vm1218_vm0, %v4121_v2  ;;  %4213 = vst [vmem:[%s6818_s28 + $0x1b0] sm:$0xff] %v4020_v58  ;;  %v4124_v45 = vadd.f32 %v4758_v4, %v6958_v15 }
 0x68e   : > { %4214 = vst.msk [vmem:[%s6818_s28 + $0x1b8] sm:$0xff] %vm1218_vm0, %v4124_v45  ;;  %v4023_v19 = vpop.f32.mrb[80].mxu0  ;;  %v4759_v5 = vpop.f32.mrb[176].mxu1 }
 0x68f   : > { %v4024_v6 = vadd.f32 %v4023_v19, %v6950_v3  ;;  %v4025_v7 = vpop.f32.mrb[81].mxu0  ;;  %v4760_v8 = vpop.f32.mrb[177].mxu1 }
 0x690   : > { %v4026_v9 = vadd.f32 %v4025_v7, %v6955_v35  ;;  %v4761_v10 = vadd.f32 %v4760_v8, %v4759_v5  ;;  %v4027_v11 = vpop.f32.mrb[82].mxu0  ;;  %v4762_v12 = vpop.f32.mrb[178].mxu1 }
 0x691   : > { %4219 = vst [vmem:[%s6818_s28 + $0x1e0] sm:$0xff] %v4024_v6  ;;  %v4028_v63 = vadd.f32 %v4027_v11, %v6950_v3  ;;  %v4029_v14 = vpop.f32.mrb[83].mxu0  ;;  %v4763_v16 = vpop.f32.mrb[179].mxu1 }
 0x692   : > { %4220 = vst [vmem:[%s6818_s28 + $0x1e8] sm:$0xff] %v4026_v9  ;;  %v4129_v17 = vadd.f32 %v4761_v10, %v6958_v15  ;;  %v4030_v18 = vadd.f32 %v4029_v14, %v6955_v35  ;;  %v4764_v21 = vadd.f32 %v4763_v16, %v4762_v12 }
 0x693   : > { %4226 = vst [vmem:[%s6818_s28 + $0x218] sm:$0xff] %v4028_v63 }
 0x694   : > { %4221 = vst.msk [vmem:[%s6818_s28 + $0x1f0] sm:$0xff] %vm1218_vm0, %v4129_v17  ;;  %4227 = vst [vmem:[%s6818_s28 + $0x220] sm:$0xff] %v4030_v18  ;;  %v4132_v22 = vadd.f32 %v4764_v21, %v6958_v15 }
 0x696   : > { %4228 = vst.msk [vmem:[%s6818_s28 + $0x228] sm:$0xff] %vm1218_vm0, %v4132_v22  ;;  %v4033_v23 = vpop.f32.mrb[84].mxu0  ;;  %v4765_v24 = vpop.f32.mrb[180].mxu1 }
 0x697   : > { %v4034_v27 = vadd.f32 %v4033_v23, %v6950_v3  ;;  %v4035_v28 = vpop.f32.mrb[85].mxu0  ;;  %v4766_v29 = vpop.f32.mrb[181].mxu1 }
 0x698   : > { %v4036_v30 = vadd.f32 %v4035_v28, %v6955_v35  ;;  %v4767_v31 = vadd.f32 %v4766_v29, %v4765_v24  ;;  %v4037_v32 = vpop.f32.mrb[86].mxu0  ;;  %v4768_v33 = vpop.f32.mrb[182].mxu1 }
 0x699   : > { %4233 = vst [vmem:[%s6818_s28 + $0x250] sm:$0xff] %v4034_v27  ;;  %v4038_v36 = vadd.f32 %v4037_v32, %v6950_v3  ;;  %v4039_v37 = vpop.f32.mrb[87].mxu0  ;;  %v4769_v38 = vpop.f32.mrb[183].mxu1 }
 0x69a   : > { %4234 = vst [vmem:[%s6818_s28 + $0x258] sm:$0xff] %v4036_v30  ;;  %v4137_v39 = vadd.f32 %v4767_v31, %v6958_v15  ;;  %v4040_v40 = vadd.f32 %v4039_v37, %v6955_v35  ;;  %v4770_v41 = vadd.f32 %v4769_v38, %v4768_v33 }
 0x69b   : > { %4240 = vst [vmem:[%s6818_s28 + $0x288] sm:$0xff] %v4038_v36 }
 0x69c   : > { %4235 = vst.msk [vmem:[%s6818_s28 + $0x260] sm:$0xff] %vm1218_vm0, %v4137_v39  ;;  %4241 = vst [vmem:[%s6818_s28 + $0x290] sm:$0xff] %v4040_v40  ;;  %v4140_v42 = vadd.f32 %v4770_v41, %v6958_v15 }
 0x69e   : > { %4242 = vst.msk [vmem:[%s6818_s28 + $0x298] sm:$0xff] %vm1218_vm0, %v4140_v42  ;;  %v4043_v43 = vpop.f32.mrb[88].mxu0  ;;  %v4771_v51 = vpop.f32.mrb[184].mxu1 }
 0x69f   : > { %v4044_v60 = vadd.f32 %v4043_v43, %v6950_v3  ;;  %v4045_v52 = vpop.f32.mrb[89].mxu0  ;;  %v4772_v25 = vpop.f32.mrb[185].mxu1 }
 0x6a0   : > { %v4046_v26 = vadd.f32 %v4045_v52, %v6955_v35  ;;  %v4773_v49 = vadd.f32 %v4772_v25, %v4771_v51  ;;  %v4047_v53 = vpop.f32.mrb[90].mxu0  ;;  %v4774_v54 = vpop.f32.mrb[186].mxu1 }
 0x6a1   : > { %4247 = vst [vmem:[%s6818_s28 + $0x2c0] sm:$0xff] %v4044_v60  ;;  %v4048_v62 = vadd.f32 %v4047_v53, %v6950_v3  ;;  %v4049_v34 = vpop.f32.mrb[91].mxu0  ;;  %v4775_v46 = vpop.f32.mrb[187].mxu1 }
 0x6a2   : > { %4248 = vst [vmem:[%s6818_s28 + $0x2c8] sm:$0xff] %v4046_v26  ;;  %v4145_v20 = vadd.f32 %v4773_v49, %v6958_v15  ;;  %v4050_v44 = vadd.f32 %v4049_v34, %v6955_v35  ;;  %v4776_v48 = vadd.f32 %v4775_v46, %v4774_v54 }
 0x6a3   : > { %4254 = vst [vmem:[%s6818_s28 + $0x2f8] sm:$0xff] %v4048_v62 }
 0x6a4   : > { %4249 = vst.msk [vmem:[%s6818_s28 + $0x2d0] sm:$0xff] %vm1218_vm0, %v4145_v20  ;;  %4255 = vst [vmem:[%s6818_s28 + $0x300] sm:$0xff] %v4050_v44  ;;  %v4148_v47 = vadd.f32 %v4776_v48, %v6958_v15 }
 0x6a6   : > { %4256 = vst.msk [vmem:[%s6818_s28 + $0x308] sm:$0xff] %vm1218_vm0, %v4148_v47  ;;  %v4053_v55 = vpop.f32.mrb[92].mxu0  ;;  %v4777_v56 = vpop.f32.mrb[188].mxu1 }
 0x6a7   : > { %v4054_v57 = vadd.f32 %v4053_v55, %v6950_v3  ;;  %v4055_v13 = vpop.f32.mrb[93].mxu0  ;;  %v4778_v59 = vpop.f32.mrb[189].mxu1 }
 0x6a8   : > { %v4056_v50 = vadd.f32 %v4055_v13, %v6955_v35  ;;  %v4779_v61 = vadd.f32 %v4778_v59, %v4777_v56  ;;  %v4057_v0 = vpop.f32.mrb[94].mxu0  ;;  %v4780_v1 = vpop.f32.mrb[190].mxu1 }
 0x6a9   : > { %4261 = vst [vmem:[%s6818_s28 + $0x330] sm:$0xff] %v4054_v57  ;;  %v4058_v2 = vadd.f32 %v4057_v0, %v6950_v3  ;;  %v4059_v58 = vpop.f32.mrb[95].mxu0  ;;  %v4781_v4 = vpop.f32.mrb[191].mxu1 }
 0x6aa   : > { %4262 = vst [vmem:[%s6818_s28 + $0x338] sm:$0xff] %v4056_v50  ;;  %v4153_v45 = vadd.f32 %v4779_v61, %v6958_v15  ;;  %v4060_v19 = vadd.f32 %v4059_v58, %v6955_v35  ;;  %v4782_v5 = vadd.f32 %v4781_v4, %v4780_v1 }
 0x6ab   : > { %4268 = vst [vmem:[%s6818_s28 + $0x368] sm:$0xff] %v4058_v2 }
 0x6ac   : > { %4263 = vst.msk [vmem:[%s6818_s28 + $0x340] sm:$0xff] %vm1218_vm0, %v4153_v45  ;;  %4269 = vst [vmem:[%s6818_s28 + $0x370] sm:$0xff] %v4060_v19  ;;  %v4156_v6 = vadd.f32 %v4782_v5, %v6958_v15 }
 0x6ae   : > { %4270 = vst.msk [vmem:[%s6818_s28 + $0x378] sm:$0xff] %vm1218_vm0, %v4156_v6 }
 0x6af PF: > { %s23_s25 = sadd.s32 1, %s5370_s25  }
 0x6b0   : > { %p20_p4 = scmp.ge.s32.totalorder %s23_s25, 6  }
 0x6b2   :  { %22 = sbr.rel (!%p20_p4) target bundleno = 1 (0x1), region = 102 }

</bundles_post_ra>
